<compile_context>
chip_gen: v7x
topology: tpu7x:2x2x1
jax: 0.10.0
libtpu: 0.0.40
codegen_flags: <defaults>
</compile_context>

<pallas_src>
import functools

import jax
import jax.numpy as jnp
from jax.experimental import pallas as pl
from jax.experimental.pallas import tpu as pltpu


# ----------------------------- kernel -----------------------------------------


def lstm_lm_kernel(x_ref, wih0_ref, b0_ref, whh0_ref, wih1_ref, whh1_ref, b1_ref,
                   wfc_ref, bfc_ref, out_ref, gx0_ref, *, seq_len, batch_pad,
                   gate_pad):
    """Whole-sequence 2-layer LSTM + fc + tanh (inference semantics).

    x_ref:    (T*BP, E)   time-major flattened input, batch padded to BP=8
    wih0_ref: (E, 4P)     layer-0 input weights, gate-column-padded, i/f/o scaled 0.5
    b0_ref:   (1, 4P)     layer-0 fused bias (b_ih + b_hh), same padding/scaling
    whh0_ref: (P, 4P)     layer-0 recurrent weights, row+column padded, scaled
    wih1_ref: (P, 4P)     layer-1 input weights, row+column padded, scaled
    whh1_ref: (P, 4P)     layer-1 recurrent weights, row+column padded, scaled
    b1_ref:   (1, 4P)     layer-1 fused bias
    wfc_ref:  (4P, Qp)    fc weights, row-padded per concat block, columns padded
    bfc_ref:  (1, Qp)     fc bias, columns padded
    out_ref:  (BP, Qp)
    gx0_ref:  (T*BP, 4P)  VMEM scratch for the hoisted layer-0 input projection
    """
    T, BP, P = seq_len, batch_pad, gate_pad
    P4 = 4 * P

    # Hoisted layer-0 input projection for ALL timesteps: one big MXU call, off the
    # serial dependency chain.  Stored to VMEM scratch so the unrolled loop reads it
    # back per step instead of keeping T*BP*4P f32 live in vregs.
    gx0_ref[...] = jnp.dot(x_ref[...], wih0_ref[...],
                           preferred_element_type=jnp.float32) + b0_ref[...]

    whh0 = whh0_ref[...]
    wih1 = wih1_ref[...]
    whh1 = whh1_ref[...]
    b1b = jnp.broadcast_to(b1_ref[...], (BP, P4))   # hoisted (no per-iter broadcast)

    h0 = jnp.zeros((BP, P), jnp.float32)
    c0 = jnp.zeros((BP, P), jnp.float32)
    h1 = jnp.zeros((BP, P), jnp.float32)
    c1 = jnp.zeros((BP, P), jnp.float32)

    def sigmoid_half(v):
        # The 0.5 pre-scale of sigmoid(z) = 0.5*tanh(0.5*z)+0.5 was folded into the
        # i/f/o weight columns at repack time, so v == 0.5*z here.
        return 0.5 * jnp.tanh(v) + 0.5

    def lstm_cell(g, c):
        # PyTorch gate order i, f, g, o; each gate occupies its own 128-lane block so
        # these slices are pure vreg selection (no lane shuffles).
        i = sigmoid_half(g[:, 0:P])
        f = sigmoid_half(g[:, P:2 * P])
        gg = jnp.tanh(g[:, 2 * P:3 * P])
        o = sigmoid_half(g[:, 3 * P:4 * P])
        c_new = f * c + i * gg
        h_new = o * jnp.tanh(c_new)
        return h_new, c_new

    # Layer-1 recurrent contribution, precomputed as soon as h1_{t-1} is available so
    # it overlaps layer-0's step-t work.  h1 starts at zero -> r1 = b1.
    r1 = b1b

    # Fully-unrolled recurrence (static T): one basic block, max scheduler visibility.
    for t in range(T):
        # ---- layer 0: only h0 @ W_hh0 is on the serial path ----
        g0 = gx0_ref[t * BP:(t + 1) * BP, :] + jnp.dot(
            h0, whh0, preferred_element_type=jnp.float32)
        h0, c0 = lstm_cell(g0, c0)

        # ---- layer 1: dependent matmul contracts only over h0_t (128) ----
        g1 = jnp.dot(h0, wih1, preferred_element_type=jnp.float32) + r1
        h1, c1 = lstm_cell(g1, c1)

        if t + 1 < T:   # precompute next step's recurrent half off the critical path
            r1 = jnp.dot(h1, whh1, preferred_element_type=jnp.float32) + b1b

    # fc(concat(h0, c0, h1, c1)) + tanh.  Padded gate lanes of h/c are exactly zero
    # and the matching fc rows are zero, so this is exact; padded output columns are
    # sliced off in the wrapper.
    cat = jnp.concatenate([h0, c0, h1, c1], axis=1)                  # (BP, 4P)
    out = jnp.dot(cat, wfc_ref[...],
                  preferred_element_type=jnp.float32) + bfc_ref[...]
    out_ref[...] = jnp.tanh(out)                                     # lane-dense store


# ----------------------------- host-side weight repack -------------------------


def _round_up(n, m):
    return ((n + m - 1) // m) * m


def _scale_sigmoid_gate_cols(w, H):
    """Fold the 0.5 sigmoid pre-scale into the i/f/o gate columns (gates 0,1,3)."""
    scale = jnp.concatenate([jnp.full((H,), 0.5), jnp.full((H,), 0.5),
                             jnp.ones((H,)), jnp.full((H,), 0.5)]).astype(w.dtype)
    return w * scale[None, :]


def _pad_gate_cols(w, H, P):
    """(in, 4H) -> (in, 4P): gate k occupies columns [k*P, k*P+H), rest zero."""
    blocks = [jnp.pad(w[:, k * H:(k + 1) * H], ((0, 0), (0, P - H))) for k in range(4)]
    return jnp.concatenate(blocks, axis=1)


def _pad_rows(w, H, P):
    """(H, n) -> (P, n): zero rows appended."""
    return jnp.pad(w, ((0, P - H), (0, 0)))


def _pad_fc_rows(w, H, P):
    """(4H, Q) -> (4P, Q): block j rows [j*P, j*P+H) <- w[j*H:(j+1)*H], rest zero."""
    blocks = [jnp.pad(w[j * H:(j + 1) * H, :], ((0, P - H), (0, 0))) for j in range(4)]
    return jnp.concatenate(blocks, axis=0)


def prepare_padded_params(params):
    """One-time weight repack: per-gate 128-lane alignment, sigmoid 0.5 pre-scale
    folded into i/f/o columns, fc output padded to 128 lanes."""
    H = int(params["H"])
    P = _round_up(H, 128)
    Q = params["wfc"].shape[1]
    Qp = _round_up(Q, 128)
    s = lambda w: _scale_sigmoid_gate_cols(w, H)
    return {
        "wih0": _pad_gate_cols(s(params["wih0"]), H, P),                        # (E, 4P)
        "b0":   _pad_gate_cols(s(params["b0"]), H, P),                          # (1, 4P)
        "whh0": _pad_rows(_pad_gate_cols(s(params["whh0"]), H, P), H, P),       # (P, 4P)
        "wih1": _pad_rows(_pad_gate_cols(s(params["wih1"]), H, P), H, P),       # (P, 4P)
        "whh1": _pad_rows(_pad_gate_cols(s(params["whh1"]), H, P), H, P),       # (P, 4P)
        "b1":   _pad_gate_cols(s(params["b1"]), H, P),                          # (1, 4P)
        "wfc":  jnp.pad(_pad_fc_rows(params["wfc"], H, P), ((0, 0), (0, Qp - Q))),  # (4P, Qp)
        "bfc":  jnp.pad(params["bfc"], ((0, 0), (0, Qp - Q))),                  # (1, Qp)
    }


# ----------------------------- pallas_call wrapper ------------------------------


@functools.partial(jax.jit, static_argnums=(2,))
def _forward_impl(x, padded, q):
    B, T, E = x.shape
    BP = max(8, _round_up(B, 8))          # full sublane group(s)
    P = padded["whh0"].shape[0]
    Qp = padded["wfc"].shape[1]

    # Time-major flatten + batch pad so each timestep's rows are a whole (8,128) tile
    # group; tiny and fused under jit.
    x_tm = jnp.transpose(x, (1, 0, 2))                       # (T, B, E)
    x_tm = jnp.pad(x_tm, ((0, 0), (0, BP - B), (0, 0)))      # (T, BP, E)
    x_tm = x_tm.reshape(T * BP, E)

    kernel = functools.partial(lstm_lm_kernel, seq_len=T, batch_pad=BP, gate_pad=P)
    vmem = lambda: pl.BlockSpec(memory_space=pltpu.MemorySpace.VMEM)

    out_full = pl.pallas_call(
        kernel,
        out_shape=jax.ShapeDtypeStruct((BP, Qp), jnp.float32),
        in_specs=[vmem() for _ in range(9)],     # no grid -> whole arrays resident
        out_specs=vmem(),
        scratch_shapes=[pltpu.VMEM((T * BP, 4 * P), jnp.float32)],   # gx0 scratch
        # Explicit limit: footprint today ~1.5 MiB; keeps v7x (32 MiB scoped default)
        # safe if T/B grow.
        compiler_params=pltpu.CompilerParams(vmem_limit_bytes=32 * 1024 * 1024),
    )(x_tm, padded["wih0"], padded["b0"], padded["whh0"],
      padded["wih1"], padded["whh1"], padded["b1"],
      padded["wfc"], padded["bfc"])

    return out_full[:B, :q]


def language_model_forward(x, padded, question_feature):
    """x: (B, T, E) float32 (batch-first, like nn.LSTM(batch_first=True)).
    padded: output of prepare_padded_params.  Returns (B, question_feature)."""
    return _forward_impl(x, padded, int(question_feature))


# ----------------------------- pure-JAX reference ------------------------------


def _ref_sigmoid(x):
    return 1.0 / (1.0 + jnp.exp(-x))


def reference_forward(x, params):
    """Pure-JAX reference matching PyTorch LSTM semantics (inference)."""
    B, T, E = x.shape
    H = params["H"]
    h0 = jnp.zeros((B, H), jnp.float32)
    c0 = jnp.zeros((B, H), jnp.float32)
    h1 = jnp.zeros((B, H), jnp.float32)
    c1 = jnp.zeros((B, H), jnp.float32)
    for t in range(T):
        xt = x[:, t, :]
        g = xt @ params["wih0"] + h0 @ params["whh0"] + params["b0"]
        i, f, gg, o = jnp.split(g, 4, axis=1)
        c0 = _ref_sigmoid(f) * c0 + _ref_sigmoid(i) * jnp.tanh(gg)
        h0 = _ref_sigmoid(o) * jnp.tanh(c0)
        g = h0 @ params["wih1"] + h1 @ params["whh1"] + params["b1"]
        i, f, gg, o = jnp.split(g, 4, axis=1)
        c1 = _ref_sigmoid(f) * c1 + _ref_sigmoid(i) * jnp.tanh(gg)
        h1 = _ref_sigmoid(o) * jnp.tanh(c1)
    cat = jnp.concatenate([h0, c0, h1, c1], axis=1)
    return jnp.tanh(cat @ params["wfc"] + params["bfc"])


def init_params(key, embedding_size, hidden_dim, question_feature):
    """Deterministic init mimicking PyTorch's uniform(-1/sqrt(H), 1/sqrt(H))."""
    H = hidden_dim
    k = 1.0 / jnp.sqrt(H)
    keys = jax.random.split(key, 10)
    u = lambda kk, shape: jax.random.uniform(kk, shape, jnp.float32, -k, k)
    return {
        "H": H,
        # pre-transposed to (in, 4H); gate order i, f, g, o as in PyTorch
        "wih0": u(keys[0], (embedding_size, 4 * H)),
        "whh0": u(keys[1], (H, 4 * H)),
        "b0":   (u(keys[2], (1, 4 * H)) + u(keys[3], (1, 4 * H))),   # b_ih + b_hh
        "wih1": u(keys[4], (H, 4 * H)),
        "whh1": u(keys[5], (H, 4 * H)),
        "b1":   (u(keys[6], (1, 4 * H)) + u(keys[7], (1, 4 * H))),
        # fc: PyTorch weight is (Q, 4H); stored transposed (4H, Q)
        "wfc":  u(keys[8], (4 * H, question_feature)),
        "bfc":  u(keys[9], (1, question_feature)),
    }


if __name__ == "__main__":
    # config: embedding_size=32, num_hidden_units=32, num_layers=2, dropout=0.0,
    #         question_feature=16
    B, T, E, H, Q = 2, 8, 32, 32, 16

    key = jax.random.PRNGKey(0)
    kx, kp = jax.random.split(key)
    x = jax.random.normal(kx, (B, T, E), jnp.float32)
    params = init_params(kp, E, H, Q)
    padded = prepare_padded_params(params)   # one-time weight repack

    out = language_model_forward(x, padded, Q)
    out = jax.block_until_ready(out)

    ref = reference_forward(x, params)
    assert out.shape == (B, Q), out.shape
    max_err = float(jnp.max(jnp.abs(out - ref)))
    assert max_err < 5e-5, max_err

    print("KERNEL_OK")
</pallas_src>

<mosaic_0001>
module attributes {stable_mosaic.version = 11 : i64} {
  func.func @lstm_lm_kernel(%arg0: memref<64x32xf32, #tpu.memory_space<vmem>>, %arg1: memref<32x512xf32, #tpu.memory_space<vmem>>, %arg2: memref<1x512xf32, #tpu.memory_space<vmem>>, %arg3: memref<128x512xf32, #tpu.memory_space<vmem>>, %arg4: memref<128x512xf32, #tpu.memory_space<vmem>>, %arg5: memref<128x512xf32, #tpu.memory_space<vmem>>, %arg6: memref<1x512xf32, #tpu.memory_space<vmem>>, %arg7: memref<512x128xf32, #tpu.memory_space<vmem>>, %arg8: memref<1x128xf32, #tpu.memory_space<vmem>>, %arg9: memref<8x128xf32, #tpu.memory_space<vmem>>, %arg10: memref<64x512xf32, #tpu.memory_space<vmem>>) attributes {dimension_semantics = [], scalar_prefetch = 0 : i64, scratch_operands = 1 : i64, tpu.core_type = #tpu.core_type<tc>} {
    %c0 = arith.constant 0 : index
    %c0_0 = arith.constant 0 : index
    %0 = vector.load %arg0[%c0, %c0_0] : memref<64x32xf32, #tpu.memory_space<vmem>>, vector<64x32xf32>
    %c0_1 = arith.constant 0 : index
    %c0_2 = arith.constant 0 : index
    %1 = vector.load %arg1[%c0_1, %c0_2] : memref<32x512xf32, #tpu.memory_space<vmem>>, vector<32x512xf32>
    %cst = arith.constant dense<0.000000e+00> : vector<64x512xf32>
    %2 = tpu.matmul %0, %1, %cst {dimension_numbers = #tpu.dot_dimension_numbers<[1], [0], [0], [1], [0, 0, 1, 1], [], []>} : vector<64x32xf32>, vector<32x512xf32>, vector<64x512xf32> -> vector<64x512xf32>
    %c0_3 = arith.constant 0 : index
    %c0_4 = arith.constant 0 : index
    %3 = vector.load %arg2[%c0_3, %c0_4] : memref<1x512xf32, #tpu.memory_space<vmem>>, vector<1x512xf32>
    %4 = vector.broadcast %3 : vector<1x512xf32> to vector<64x512xf32>
    %5 = arith.addf %2, %4 : vector<64x512xf32>
    %c0_5 = arith.constant 0 : index
    %c0_6 = arith.constant 0 : index
    %6 = vector.load %arg10[%c0_5, %c0_6] : memref<64x512xf32, #tpu.memory_space<vmem>>, vector<64x512xf32>
    tpu.vector_store %arg10[%c0_5, %c0_6], %5 {strides = array<i32>} : memref<64x512xf32, #tpu.memory_space<vmem>>, vector<64x512xf32>,
    %c0_7 = arith.constant 0 : index
    %c0_8 = arith.constant 0 : index
    %7 = vector.load %arg3[%c0_7, %c0_8] : memref<128x512xf32, #tpu.memory_space<vmem>>, vector<128x512xf32>
    %c0_9 = arith.constant 0 : index
    %c0_10 = arith.constant 0 : index
    %8 = vector.load %arg4[%c0_9, %c0_10] : memref<128x512xf32, #tpu.memory_space<vmem>>, vector<128x512xf32>
    %c0_11 = arith.constant 0 : index
    %c0_12 = arith.constant 0 : index
    %9 = vector.load %arg5[%c0_11, %c0_12] : memref<128x512xf32, #tpu.memory_space<vmem>>, vector<128x512xf32>
    %c0_13 = arith.constant 0 : index
    %c0_14 = arith.constant 0 : index
    %10 = vector.load %arg6[%c0_13, %c0_14] : memref<1x512xf32, #tpu.memory_space<vmem>>, vector<1x512xf32>
    %11 = vector.shape_cast %10 : vector<1x512xf32> to vector<1x512xf32>
    %12 = vector.broadcast %11 : vector<1x512xf32> to vector<8x512xf32>
    %cst_15 = arith.constant 0.000000e+00 : f32
    %13 = vector.broadcast %cst_15 : f32 to vector<8x128xf32>
    %cst_16 = arith.constant 0.000000e+00 : f32
    %14 = vector.broadcast %cst_16 : f32 to vector<8x128xf32>
    %cst_17 = arith.constant 0.000000e+00 : f32
    %15 = vector.broadcast %cst_17 : f32 to vector<8x128xf32>
    %c0_18 = arith.constant 0 : index
    %c0_19 = arith.constant 0 : index
    %16 = vector.load %arg10[%c0_18, %c0_19] : memref<64x512xf32, #tpu.memory_space<vmem>>, vector<8x512xf32>
    %cst_20 = arith.constant dense<0.000000e+00> : vector<8x512xf32>
    %17 = tpu.matmul %13, %7, %cst_20 {dimension_numbers = #tpu.dot_dimension_numbers<[1], [0], [0], [1], [0, 0, 1, 1], [], []>} : vector<8x128xf32>, vector<128x512xf32>, vector<8x512xf32> -> vector<8x512xf32>
    %18 = arith.addf %16, %17 : vector<8x512xf32>
    %19 = vector.extract_strided_slice %18 {offsets = [0, 0], sizes = [8, 128], strides = [1, 1]} : vector<8x512xf32> to vector<8x128xf32>
    %20 = math.tanh %19 : vector<8x128xf32>
    %cst_21 = arith.constant 5.000000e-01 : f32
    %21 = vector.broadcast %cst_21 : f32 to vector<8x128xf32>
    %22 = arith.mulf %21, %20 : vector<8x128xf32>
    %cst_22 = arith.constant 5.000000e-01 : f32
    %23 = vector.broadcast %cst_22 : f32 to vector<8x128xf32>
    %24 = arith.addf %22, %23 : vector<8x128xf32>
    %25 = vector.extract_strided_slice %18 {offsets = [0, 128], sizes = [8, 128], strides = [1, 1]} : vector<8x512xf32> to vector<8x128xf32>
    %26 = math.tanh %25 : vector<8x128xf32>
    %cst_23 = arith.constant 5.000000e-01 : f32
    %27 = vector.broadcast %cst_23 : f32 to vector<8x128xf32>
    %28 = arith.mulf %27, %26 : vector<8x128xf32>
    %cst_24 = arith.constant 5.000000e-01 : f32
    %29 = vector.broadcast %cst_24 : f32 to vector<8x128xf32>
    %30 = arith.addf %28, %29 : vector<8x128xf32>
    %31 = vector.extract_strided_slice %18 {offsets = [0, 256], sizes = [8, 128], strides = [1, 1]} : vector<8x512xf32> to vector<8x128xf32>
    %32 = math.tanh %31 : vector<8x128xf32>
    %33 = vector.extract_strided_slice %18 {offsets = [0, 384], sizes = [8, 128], strides = [1, 1]} : vector<8x512xf32> to vector<8x128xf32>
    %34 = math.tanh %33 : vector<8x128xf32>
    %cst_25 = arith.constant 5.000000e-01 : f32
    %35 = vector.broadcast %cst_25 : f32 to vector<8x128xf32>
    %36 = arith.mulf %35, %34 : vector<8x128xf32>
    %cst_26 = arith.constant 5.000000e-01 : f32
    %37 = vector.broadcast %cst_26 : f32 to vector<8x128xf32>
    %38 = arith.addf %36, %37 : vector<8x128xf32>
    %39 = arith.mulf %30, %14 : vector<8x128xf32>
    %40 = arith.mulf %24, %32 : vector<8x128xf32>
    %41 = arith.addf %39, %40 : vector<8x128xf32>
    %42 = math.tanh %41 : vector<8x128xf32>
    %43 = arith.mulf %38, %42 : vector<8x128xf32>
    %cst_27 = arith.constant dense<0.000000e+00> : vector<8x512xf32>
    %44 = tpu.matmul %43, %8, %cst_27 {dimension_numbers = #tpu.dot_dimension_numbers<[1], [0], [0], [1], [0, 0, 1, 1], [], []>} : vector<8x128xf32>, vector<128x512xf32>, vector<8x512xf32> -> vector<8x512xf32>
    %45 = arith.addf %44, %12 : vector<8x512xf32>
    %46 = vector.extract_strided_slice %45 {offsets = [0, 0], sizes = [8, 128], strides = [1, 1]} : vector<8x512xf32> to vector<8x128xf32>
    %47 = math.tanh %46 : vector<8x128xf32>
    %cst_28 = arith.constant 5.000000e-01 : f32
    %48 = vector.broadcast %cst_28 : f32 to vector<8x128xf32>
    %49 = arith.mulf %48, %47 : vector<8x128xf32>
    %cst_29 = arith.constant 5.000000e-01 : f32
    %50 = vector.broadcast %cst_29 : f32 to vector<8x128xf32>
    %51 = arith.addf %49, %50 : vector<8x128xf32>
    %52 = vector.extract_strided_slice %45 {offsets = [0, 128], sizes = [8, 128], strides = [1, 1]} : vector<8x512xf32> to vector<8x128xf32>
    %53 = math.tanh %52 : vector<8x128xf32>
    %cst_30 = arith.constant 5.000000e-01 : f32
    %54 = vector.broadcast %cst_30 : f32 to vector<8x128xf32>
    %55 = arith.mulf %54, %53 : vector<8x128xf32>
    %cst_31 = arith.constant 5.000000e-01 : f32
    %56 = vector.broadcast %cst_31 : f32 to vector<8x128xf32>
    %57 = arith.addf %55, %56 : vector<8x128xf32>
    %58 = vector.extract_strided_slice %45 {offsets = [0, 256], sizes = [8, 128], strides = [1, 1]} : vector<8x512xf32> to vector<8x128xf32>
    %59 = math.tanh %58 : vector<8x128xf32>
    %60 = vector.extract_strided_slice %45 {offsets = [0, 384], sizes = [8, 128], strides = [1, 1]} : vector<8x512xf32> to vector<8x128xf32>
    %61 = math.tanh %60 : vector<8x128xf32>
    %cst_32 = arith.constant 5.000000e-01 : f32
    %62 = vector.broadcast %cst_32 : f32 to vector<8x128xf32>
    %63 = arith.mulf %62, %61 : vector<8x128xf32>
    %cst_33 = arith.constant 5.000000e-01 : f32
    %64 = vector.broadcast %cst_33 : f32 to vector<8x128xf32>
    %65 = arith.addf %63, %64 : vector<8x128xf32>
    %66 = arith.mulf %57, %15 : vector<8x128xf32>
    %67 = arith.mulf %51, %59 : vector<8x128xf32>
    %68 = arith.addf %66, %67 : vector<8x128xf32>
    %69 = math.tanh %68 : vector<8x128xf32>
    %70 = arith.mulf %65, %69 : vector<8x128xf32>
    %cst_34 = arith.constant dense<0.000000e+00> : vector<8x512xf32>
    %71 = tpu.matmul %70, %9, %cst_34 {dimension_numbers = #tpu.dot_dimension_numbers<[1], [0], [0], [1], [0, 0, 1, 1], [], []>} : vector<8x128xf32>, vector<128x512xf32>, vector<8x512xf32> -> vector<8x512xf32>
    %72 = arith.addf %71, %12 : vector<8x512xf32>
    %c8 = arith.constant 8 : index
    %c0_35 = arith.constant 0 : index
    %73 = vector.load %arg10[%c8, %c0_35] : memref<64x512xf32, #tpu.memory_space<vmem>>, vector<8x512xf32>
    %cst_36 = arith.constant dense<0.000000e+00> : vector<8x512xf32>
    %74 = tpu.matmul %43, %7, %cst_36 {dimension_numbers = #tpu.dot_dimension_numbers<[1], [0], [0], [1], [0, 0, 1, 1], [], []>} : vector<8x128xf32>, vector<128x512xf32>, vector<8x512xf32> -> vector<8x512xf32>
    %75 = arith.addf %73, %74 : vector<8x512xf32>
    %76 = vector.extract_strided_slice %75 {offsets = [0, 0], sizes = [8, 128], strides = [1, 1]} : vector<8x512xf32> to vector<8x128xf32>
    %77 = math.tanh %76 : vector<8x128xf32>
    %cst_37 = arith.constant 5.000000e-01 : f32
    %78 = vector.broadcast %cst_37 : f32 to vector<8x128xf32>
    %79 = arith.mulf %78, %77 : vector<8x128xf32>
    %cst_38 = arith.constant 5.000000e-01 : f32
    %80 = vector.broadcast %cst_38 : f32 to vector<8x128xf32>
    %81 = arith.addf %79, %80 : vector<8x128xf32>
    %82 = vector.extract_strided_slice %75 {offsets = [0, 128], sizes = [8, 128], strides = [1, 1]} : vector<8x512xf32> to vector<8x128xf32>
    %83 = math.tanh %82 : vector<8x128xf32>
    %cst_39 = arith.constant 5.000000e-01 : f32
    %84 = vector.broadcast %cst_39 : f32 to vector<8x128xf32>
    %85 = arith.mulf %84, %83 : vector<8x128xf32>
    %cst_40 = arith.constant 5.000000e-01 : f32
    %86 = vector.broadcast %cst_40 : f32 to vector<8x128xf32>
    %87 = arith.addf %85, %86 : vector<8x128xf32>
    %88 = vector.extract_strided_slice %75 {offsets = [0, 256], sizes = [8, 128], strides = [1, 1]} : vector<8x512xf32> to vector<8x128xf32>
    %89 = math.tanh %88 : vector<8x128xf32>
    %90 = vector.extract_strided_slice %75 {offsets = [0, 384], sizes = [8, 128], strides = [1, 1]} : vector<8x512xf32> to vector<8x128xf32>
    %91 = math.tanh %90 : vector<8x128xf32>
    %cst_41 = arith.constant 5.000000e-01 : f32
    %92 = vector.broadcast %cst_41 : f32 to vector<8x128xf32>
    %93 = arith.mulf %92, %91 : vector<8x128xf32>
    %cst_42 = arith.constant 5.000000e-01 : f32
    %94 = vector.broadcast %cst_42 : f32 to vector<8x128xf32>
    %95 = arith.addf %93, %94 : vector<8x128xf32>
    %96 = arith.mulf %87, %41 : vector<8x128xf32>
    %97 = arith.mulf %81, %89 : vector<8x128xf32>
    %98 = arith.addf %96, %97 : vector<8x128xf32>
    %99 = math.tanh %98 : vector<8x128xf32>
    %100 = arith.mulf %95, %99 : vector<8x128xf32>
    %cst_43 = arith.constant dense<0.000000e+00> : vector<8x512xf32>
    %101 = tpu.matmul %100, %8, %cst_43 {dimension_numbers = #tpu.dot_dimension_numbers<[1], [0], [0], [1], [0, 0, 1, 1], [], []>} : vector<8x128xf32>, vector<128x512xf32>, vector<8x512xf32> -> vector<8x512xf32>
    %102 = arith.addf %101, %72 : vector<8x512xf32>
    %103 = vector.extract_strided_slice %102 {offsets = [0, 0], sizes = [8, 128], strides = [1, 1]} : vector<8x512xf32> to vector<8x128xf32>
    %104 = math.tanh %103 : vector<8x128xf32>
    %cst_44 = arith.constant 5.000000e-01 : f32
    %105 = vector.broadcast %cst_44 : f32 to vector<8x128xf32>
    %106 = arith.mulf %105, %104 : vector<8x128xf32>
    %cst_45 = arith.constant 5.000000e-01 : f32
    %107 = vector.broadcast %cst_45 : f32 to vector<8x128xf32>
    %108 = arith.addf %106, %107 : vector<8x128xf32>
    %109 = vector.extract_strided_slice %102 {offsets = [0, 128], sizes = [8, 128], strides = [1, 1]} : vector<8x512xf32> to vector<8x128xf32>
    %110 = math.tanh %109 : vector<8x128xf32>
    %cst_46 = arith.constant 5.000000e-01 : f32
    %111 = vector.broadcast %cst_46 : f32 to vector<8x128xf32>
    %112 = arith.mulf %111, %110 : vector<8x128xf32>
    %cst_47 = arith.constant 5.000000e-01 : f32
    %113 = vector.broadcast %cst_47 : f32 to vector<8x128xf32>
    %114 = arith.addf %112, %113 : vector<8x128xf32>
    %115 = vector.extract_strided_slice %102 {offsets = [0, 256], sizes = [8, 128], strides = [1, 1]} : vector<8x512xf32> to vector<8x128xf32>
    %116 = math.tanh %115 : vector<8x128xf32>
    %117 = vector.extract_strided_slice %102 {offsets = [0, 384], sizes = [8, 128], strides = [1, 1]} : vector<8x512xf32> to vector<8x128xf32>
    %118 = math.tanh %117 : vector<8x128xf32>
    %cst_48 = arith.constant 5.000000e-01 : f32
    %119 = vector.broadcast %cst_48 : f32 to vector<8x128xf32>
    %120 = arith.mulf %119, %118 : vector<8x128xf32>
    %cst_49 = arith.constant 5.000000e-01 : f32
    %121 = vector.broadcast %cst_49 : f32 to vector<8x128xf32>
    %122 = arith.addf %120, %121 : vector<8x128xf32>
    %123 = arith.mulf %114, %68 : vector<8x128xf32>
    %124 = arith.mulf %108, %116 : vector<8x128xf32>
    %125 = arith.addf %123, %124 : vector<8x128xf32>
    %126 = math.tanh %125 : vector<8x128xf32>
    %127 = arith.mulf %122, %126 : vector<8x128xf32>
    %cst_50 = arith.constant dense<0.000000e+00> : vector<8x512xf32>
    %128 = tpu.matmul %127, %9, %cst_50 {dimension_numbers = #tpu.dot_dimension_numbers<[1], [0], [0], [1], [0, 0, 1, 1], [], []>} : vector<8x128xf32>, vector<128x512xf32>, vector<8x512xf32> -> vector<8x512xf32>
    %129 = arith.addf %128, %12 : vector<8x512xf32>
    %c16 = arith.constant 16 : index
    %c0_51 = arith.constant 0 : index
    %130 = vector.load %arg10[%c16, %c0_51] : memref<64x512xf32, #tpu.memory_space<vmem>>, vector<8x512xf32>
    %cst_52 = arith.constant dense<0.000000e+00> : vector<8x512xf32>
    %131 = tpu.matmul %100, %7, %cst_52 {dimension_numbers = #tpu.dot_dimension_numbers<[1], [0], [0], [1], [0, 0, 1, 1], [], []>} : vector<8x128xf32>, vector<128x512xf32>, vector<8x512xf32> -> vector<8x512xf32>
    %132 = arith.addf %130, %131 : vector<8x512xf32>
    %133 = vector.extract_strided_slice %132 {offsets = [0, 0], sizes = [8, 128], strides = [1, 1]} : vector<8x512xf32> to vector<8x128xf32>
    %134 = math.tanh %133 : vector<8x128xf32>
    %cst_53 = arith.constant 5.000000e-01 : f32
    %135 = vector.broadcast %cst_53 : f32 to vector<8x128xf32>
    %136 = arith.mulf %135, %134 : vector<8x128xf32>
    %cst_54 = arith.constant 5.000000e-01 : f32
    %137 = vector.broadcast %cst_54 : f32 to vector<8x128xf32>
    %138 = arith.addf %136, %137 : vector<8x128xf32>
    %139 = vector.extract_strided_slice %132 {offsets = [0, 128], sizes = [8, 128], strides = [1, 1]} : vector<8x512xf32> to vector<8x128xf32>
    %140 = math.tanh %139 : vector<8x128xf32>
    %cst_55 = arith.constant 5.000000e-01 : f32
    %141 = vector.broadcast %cst_55 : f32 to vector<8x128xf32>
    %142 = arith.mulf %141, %140 : vector<8x128xf32>
    %cst_56 = arith.constant 5.000000e-01 : f32
    %143 = vector.broadcast %cst_56 : f32 to vector<8x128xf32>
    %144 = arith.addf %142, %143 : vector<8x128xf32>
    %145 = vector.extract_strided_slice %132 {offsets = [0, 256], sizes = [8, 128], strides = [1, 1]} : vector<8x512xf32> to vector<8x128xf32>
    %146 = math.tanh %145 : vector<8x128xf32>
    %147 = vector.extract_strided_slice %132 {offsets = [0, 384], sizes = [8, 128], strides = [1, 1]} : vector<8x512xf32> to vector<8x128xf32>
    %148 = math.tanh %147 : vector<8x128xf32>
    %cst_57 = arith.constant 5.000000e-01 : f32
    %149 = vector.broadcast %cst_57 : f32 to vector<8x128xf32>
    %150 = arith.mulf %149, %148 : vector<8x128xf32>
    %cst_58 = arith.constant 5.000000e-01 : f32
    %151 = vector.broadcast %cst_58 : f32 to vector<8x128xf32>
    %152 = arith.addf %150, %151 : vector<8x128xf32>
    %153 = arith.mulf %144, %98 : vector<8x128xf32>
    %154 = arith.mulf %138, %146 : vector<8x128xf32>
    %155 = arith.addf %153, %154 : vector<8x128xf32>
    %156 = math.tanh %155 : vector<8x128xf32>
    %157 = arith.mulf %152, %156 : vector<8x128xf32>
    %cst_59 = arith.constant dense<0.000000e+00> : vector<8x512xf32>
    %158 = tpu.matmul %157, %8, %cst_59 {dimension_numbers = #tpu.dot_dimension_numbers<[1], [0], [0], [1], [0, 0, 1, 1], [], []>} : vector<8x128xf32>, vector<128x512xf32>, vector<8x512xf32> -> vector<8x512xf32>
    %159 = arith.addf %158, %129 : vector<8x512xf32>
    %160 = vector.extract_strided_slice %159 {offsets = [0, 0], sizes = [8, 128], strides = [1, 1]} : vector<8x512xf32> to vector<8x128xf32>
    %161 = math.tanh %160 : vector<8x128xf32>
    %cst_60 = arith.constant 5.000000e-01 : f32
    %162 = vector.broadcast %cst_60 : f32 to vector<8x128xf32>
    %163 = arith.mulf %162, %161 : vector<8x128xf32>
    %cst_61 = arith.constant 5.000000e-01 : f32
    %164 = vector.broadcast %cst_61 : f32 to vector<8x128xf32>
    %165 = arith.addf %163, %164 : vector<8x128xf32>
    %166 = vector.extract_strided_slice %159 {offsets = [0, 128], sizes = [8, 128], strides = [1, 1]} : vector<8x512xf32> to vector<8x128xf32>
    %167 = math.tanh %166 : vector<8x128xf32>
    %cst_62 = arith.constant 5.000000e-01 : f32
    %168 = vector.broadcast %cst_62 : f32 to vector<8x128xf32>
    %169 = arith.mulf %168, %167 : vector<8x128xf32>
    %cst_63 = arith.constant 5.000000e-01 : f32
    %170 = vector.broadcast %cst_63 : f32 to vector<8x128xf32>
    %171 = arith.addf %169, %170 : vector<8x128xf32>
    %172 = vector.extract_strided_slice %159 {offsets = [0, 256], sizes = [8, 128], strides = [1, 1]} : vector<8x512xf32> to vector<8x128xf32>
    %173 = math.tanh %172 : vector<8x128xf32>
    %174 = vector.extract_strided_slice %159 {offsets = [0, 384], sizes = [8, 128], strides = [1, 1]} : vector<8x512xf32> to vector<8x128xf32>
    %175 = math.tanh %174 : vector<8x128xf32>
    %cst_64 = arith.constant 5.000000e-01 : f32
    %176 = vector.broadcast %cst_64 : f32 to vector<8x128xf32>
    %177 = arith.mulf %176, %175 : vector<8x128xf32>
    %cst_65 = arith.constant 5.000000e-01 : f32
    %178 = vector.broadcast %cst_65 : f32 to vector<8x128xf32>
    %179 = arith.addf %177, %178 : vector<8x128xf32>
    %180 = arith.mulf %171, %125 : vector<8x128xf32>
    %181 = arith.mulf %165, %173 : vector<8x128xf32>
    %182 = arith.addf %180, %181 : vector<8x128xf32>
    %183 = math.tanh %182 : vector<8x128xf32>
    %184 = arith.mulf %179, %183 : vector<8x128xf32>
    %cst_66 = arith.constant dense<0.000000e+00> : vector<8x512xf32>
    %185 = tpu.matmul %184, %9, %cst_66 {dimension_numbers = #tpu.dot_dimension_numbers<[1], [0], [0], [1], [0, 0, 1, 1], [], []>} : vector<8x128xf32>, vector<128x512xf32>, vector<8x512xf32> -> vector<8x512xf32>
    %186 = arith.addf %185, %12 : vector<8x512xf32>
    %c24 = arith.constant 24 : index
    %c0_67 = arith.constant 0 : index
    %187 = vector.load %arg10[%c24, %c0_67] : memref<64x512xf32, #tpu.memory_space<vmem>>, vector<8x512xf32>
    %cst_68 = arith.constant dense<0.000000e+00> : vector<8x512xf32>
    %188 = tpu.matmul %157, %7, %cst_68 {dimension_numbers = #tpu.dot_dimension_numbers<[1], [0], [0], [1], [0, 0, 1, 1], [], []>} : vector<8x128xf32>, vector<128x512xf32>, vector<8x512xf32> -> vector<8x512xf32>
    %189 = arith.addf %187, %188 : vector<8x512xf32>
    %190 = vector.extract_strided_slice %189 {offsets = [0, 0], sizes = [8, 128], strides = [1, 1]} : vector<8x512xf32> to vector<8x128xf32>
    %191 = math.tanh %190 : vector<8x128xf32>
    %cst_69 = arith.constant 5.000000e-01 : f32
    %192 = vector.broadcast %cst_69 : f32 to vector<8x128xf32>
    %193 = arith.mulf %192, %191 : vector<8x128xf32>
    %cst_70 = arith.constant 5.000000e-01 : f32
    %194 = vector.broadcast %cst_70 : f32 to vector<8x128xf32>
    %195 = arith.addf %193, %194 : vector<8x128xf32>
    %196 = vector.extract_strided_slice %189 {offsets = [0, 128], sizes = [8, 128], strides = [1, 1]} : vector<8x512xf32> to vector<8x128xf32>
    %197 = math.tanh %196 : vector<8x128xf32>
    %cst_71 = arith.constant 5.000000e-01 : f32
    %198 = vector.broadcast %cst_71 : f32 to vector<8x128xf32>
    %199 = arith.mulf %198, %197 : vector<8x128xf32>
    %cst_72 = arith.constant 5.000000e-01 : f32
    %200 = vector.broadcast %cst_72 : f32 to vector<8x128xf32>
    %201 = arith.addf %199, %200 : vector<8x128xf32>
    %202 = vector.extract_strided_slice %189 {offsets = [0, 256], sizes = [8, 128], strides = [1, 1]} : vector<8x512xf32> to vector<8x128xf32>
    %203 = math.tanh %202 : vector<8x128xf32>
    %204 = vector.extract_strided_slice %189 {offsets = [0, 384], sizes = [8, 128], strides = [1, 1]} : vector<8x512xf32> to vector<8x128xf32>
    %205 = math.tanh %204 : vector<8x128xf32>
    %cst_73 = arith.constant 5.000000e-01 : f32
    %206 = vector.broadcast %cst_73 : f32 to vector<8x128xf32>
    %207 = arith.mulf %206, %205 : vector<8x128xf32>
    %cst_74 = arith.constant 5.000000e-01 : f32
    %208 = vector.broadcast %cst_74 : f32 to vector<8x128xf32>
    %209 = arith.addf %207, %208 : vector<8x128xf32>
    %210 = arith.mulf %201, %155 : vector<8x128xf32>
    %211 = arith.mulf %195, %203 : vector<8x128xf32>
    %212 = arith.addf %210, %211 : vector<8x128xf32>
    %213 = math.tanh %212 : vector<8x128xf32>
    %214 = arith.mulf %209, %213 : vector<8x128xf32>
    %cst_75 = arith.constant dense<0.000000e+00> : vector<8x512xf32>
    %215 = tpu.matmul %214, %8, %cst_75 {dimension_numbers = #tpu.dot_dimension_numbers<[1], [0], [0], [1], [0, 0, 1, 1], [], []>} : vector<8x128xf32>, vector<128x512xf32>, vector<8x512xf32> -> vector<8x512xf32>
    %216 = arith.addf %215, %186 : vector<8x512xf32>
    %217 = vector.extract_strided_slice %216 {offsets = [0, 0], sizes = [8, 128], strides = [1, 1]} : vector<8x512xf32> to vector<8x128xf32>
    %218 = math.tanh %217 : vector<8x128xf32>
    %cst_76 = arith.constant 5.000000e-01 : f32
    %219 = vector.broadcast %cst_76 : f32 to vector<8x128xf32>
    %220 = arith.mulf %219, %218 : vector<8x128xf32>
    %cst_77 = arith.constant 5.000000e-01 : f32
    %221 = vector.broadcast %cst_77 : f32 to vector<8x128xf32>
    %222 = arith.addf %220, %221 : vector<8x128xf32>
    %223 = vector.extract_strided_slice %216 {offsets = [0, 128], sizes = [8, 128], strides = [1, 1]} : vector<8x512xf32> to vector<8x128xf32>
    %224 = math.tanh %223 : vector<8x128xf32>
    %cst_78 = arith.constant 5.000000e-01 : f32
    %225 = vector.broadcast %cst_78 : f32 to vector<8x128xf32>
    %226 = arith.mulf %225, %224 : vector<8x128xf32>
    %cst_79 = arith.constant 5.000000e-01 : f32
    %227 = vector.broadcast %cst_79 : f32 to vector<8x128xf32>
    %228 = arith.addf %226, %227 : vector<8x128xf32>
    %229 = vector.extract_strided_slice %216 {offsets = [0, 256], sizes = [8, 128], strides = [1, 1]} : vector<8x512xf32> to vector<8x128xf32>
    %230 = math.tanh %229 : vector<8x128xf32>
    %231 = vector.extract_strided_slice %216 {offsets = [0, 384], sizes = [8, 128], strides = [1, 1]} : vector<8x512xf32> to vector<8x128xf32>
    %232 = math.tanh %231 : vector<8x128xf32>
    %cst_80 = arith.constant 5.000000e-01 : f32
    %233 = vector.broadcast %cst_80 : f32 to vector<8x128xf32>
    %234 = arith.mulf %233, %232 : vector<8x128xf32>
    %cst_81 = arith.constant 5.000000e-01 : f32
    %235 = vector.broadcast %cst_81 : f32 to vector<8x128xf32>
    %236 = arith.addf %234, %235 : vector<8x128xf32>
    %237 = arith.mulf %228, %182 : vector<8x128xf32>
    %238 = arith.mulf %222, %230 : vector<8x128xf32>
    %239 = arith.addf %237, %238 : vector<8x128xf32>
    %240 = math.tanh %239 : vector<8x128xf32>
    %241 = arith.mulf %236, %240 : vector<8x128xf32>
    %cst_82 = arith.constant dense<0.000000e+00> : vector<8x512xf32>
    %242 = tpu.matmul %241, %9, %cst_82 {dimension_numbers = #tpu.dot_dimension_numbers<[1], [0], [0], [1], [0, 0, 1, 1], [], []>} : vector<8x128xf32>, vector<128x512xf32>, vector<8x512xf32> -> vector<8x512xf32>
    %243 = arith.addf %242, %12 : vector<8x512xf32>
    %c32 = arith.constant 32 : index
    %c0_83 = arith.constant 0 : index
    %244 = vector.load %arg10[%c32, %c0_83] : memref<64x512xf32, #tpu.memory_space<vmem>>, vector<8x512xf32>
    %cst_84 = arith.constant dense<0.000000e+00> : vector<8x512xf32>
    %245 = tpu.matmul %214, %7, %cst_84 {dimension_numbers = #tpu.dot_dimension_numbers<[1], [0], [0], [1], [0, 0, 1, 1], [], []>} : vector<8x128xf32>, vector<128x512xf32>, vector<8x512xf32> -> vector<8x512xf32>
    %246 = arith.addf %244, %245 : vector<8x512xf32>
    %247 = vector.extract_strided_slice %246 {offsets = [0, 0], sizes = [8, 128], strides = [1, 1]} : vector<8x512xf32> to vector<8x128xf32>
    %248 = math.tanh %247 : vector<8x128xf32>
    %cst_85 = arith.constant 5.000000e-01 : f32
    %249 = vector.broadcast %cst_85 : f32 to vector<8x128xf32>
    %250 = arith.mulf %249, %248 : vector<8x128xf32>
    %cst_86 = arith.constant 5.000000e-01 : f32
    %251 = vector.broadcast %cst_86 : f32 to vector<8x128xf32>
    %252 = arith.addf %250, %251 : vector<8x128xf32>
    %253 = vector.extract_strided_slice %246 {offsets = [0, 128], sizes = [8, 128], strides = [1, 1]} : vector<8x512xf32> to vector<8x128xf32>
    %254 = math.tanh %253 : vector<8x128xf32>
    %cst_87 = arith.constant 5.000000e-01 : f32
    %255 = vector.broadcast %cst_87 : f32 to vector<8x128xf32>
    %256 = arith.mulf %255, %254 : vector<8x128xf32>
    %cst_88 = arith.constant 5.000000e-01 : f32
    %257 = vector.broadcast %cst_88 : f32 to vector<8x128xf32>
    %258 = arith.addf %256, %257 : vector<8x128xf32>
    %259 = vector.extract_strided_slice %246 {offsets = [0, 256], sizes = [8, 128], strides = [1, 1]} : vector<8x512xf32> to vector<8x128xf32>
    %260 = math.tanh %259 : vector<8x128xf32>
    %261 = vector.extract_strided_slice %246 {offsets = [0, 384], sizes = [8, 128], strides = [1, 1]} : vector<8x512xf32> to vector<8x128xf32>
    %262 = math.tanh %261 : vector<8x128xf32>
    %cst_89 = arith.constant 5.000000e-01 : f32
    %263 = vector.broadcast %cst_89 : f32 to vector<8x128xf32>
    %264 = arith.mulf %263, %262 : vector<8x128xf32>
    %cst_90 = arith.constant 5.000000e-01 : f32
    %265 = vector.broadcast %cst_90 : f32 to vector<8x128xf32>
    %266 = arith.addf %264, %265 : vector<8x128xf32>
    %267 = arith.mulf %258, %212 : vector<8x128xf32>
    %268 = arith.mulf %252, %260 : vector<8x128xf32>
    %269 = arith.addf %267, %268 : vector<8x128xf32>
    %270 = math.tanh %269 : vector<8x128xf32>
    %271 = arith.mulf %266, %270 : vector<8x128xf32>
    %cst_91 = arith.constant dense<0.000000e+00> : vector<8x512xf32>
    %272 = tpu.matmul %271, %8, %cst_91 {dimension_numbers = #tpu.dot_dimension_numbers<[1], [0], [0], [1], [0, 0, 1, 1], [], []>} : vector<8x128xf32>, vector<128x512xf32>, vector<8x512xf32> -> vector<8x512xf32>
    %273 = arith.addf %272, %243 : vector<8x512xf32>
    %274 = vector.extract_strided_slice %273 {offsets = [0, 0], sizes = [8, 128], strides = [1, 1]} : vector<8x512xf32> to vector<8x128xf32>
    %275 = math.tanh %274 : vector<8x128xf32>
    %cst_92 = arith.constant 5.000000e-01 : f32
    %276 = vector.broadcast %cst_92 : f32 to vector<8x128xf32>
    %277 = arith.mulf %276, %275 : vector<8x128xf32>
    %cst_93 = arith.constant 5.000000e-01 : f32
    %278 = vector.broadcast %cst_93 : f32 to vector<8x128xf32>
    %279 = arith.addf %277, %278 : vector<8x128xf32>
    %280 = vector.extract_strided_slice %273 {offsets = [0, 128], sizes = [8, 128], strides = [1, 1]} : vector<8x512xf32> to vector<8x128xf32>
    %281 = math.tanh %280 : vector<8x128xf32>
    %cst_94 = arith.constant 5.000000e-01 : f32
    %282 = vector.broadcast %cst_94 : f32 to vector<8x128xf32>
    %283 = arith.mulf %282, %281 : vector<8x128xf32>
    %cst_95 = arith.constant 5.000000e-01 : f32
    %284 = vector.broadcast %cst_95 : f32 to vector<8x128xf32>
    %285 = arith.addf %283, %284 : vector<8x128xf32>
    %286 = vector.extract_strided_slice %273 {offsets = [0, 256], sizes = [8, 128], strides = [1, 1]} : vector<8x512xf32> to vector<8x128xf32>
    %287 = math.tanh %286 : vector<8x128xf32>
    %288 = vector.extract_strided_slice %273 {offsets = [0, 384], sizes = [8, 128], strides = [1, 1]} : vector<8x512xf32> to vector<8x128xf32>
    %289 = math.tanh %288 : vector<8x128xf32>
    %cst_96 = arith.constant 5.000000e-01 : f32
    %290 = vector.broadcast %cst_96 : f32 to vector<8x128xf32>
    %291 = arith.mulf %290, %289 : vector<8x128xf32>
    %cst_97 = arith.constant 5.000000e-01 : f32
    %292 = vector.broadcast %cst_97 : f32 to vector<8x128xf32>
    %293 = arith.addf %291, %292 : vector<8x128xf32>
    %294 = arith.mulf %285, %239 : vector<8x128xf32>
    %295 = arith.mulf %279, %287 : vector<8x128xf32>
    %296 = arith.addf %294, %295 : vector<8x128xf32>
    %297 = math.tanh %296 : vector<8x128xf32>
    %298 = arith.mulf %293, %297 : vector<8x128xf32>
    %cst_98 = arith.constant dense<0.000000e+00> : vector<8x512xf32>
    %299 = tpu.matmul %298, %9, %cst_98 {dimension_numbers = #tpu.dot_dimension_numbers<[1], [0], [0], [1], [0, 0, 1, 1], [], []>} : vector<8x128xf32>, vector<128x512xf32>, vector<8x512xf32> -> vector<8x512xf32>
    %300 = arith.addf %299, %12 : vector<8x512xf32>
    %c40 = arith.constant 40 : index
    %c0_99 = arith.constant 0 : index
    %301 = vector.load %arg10[%c40, %c0_99] : memref<64x512xf32, #tpu.memory_space<vmem>>, vector<8x512xf32>
    %cst_100 = arith.constant dense<0.000000e+00> : vector<8x512xf32>
    %302 = tpu.matmul %271, %7, %cst_100 {dimension_numbers = #tpu.dot_dimension_numbers<[1], [0], [0], [1], [0, 0, 1, 1], [], []>} : vector<8x128xf32>, vector<128x512xf32>, vector<8x512xf32> -> vector<8x512xf32>
    %303 = arith.addf %301, %302 : vector<8x512xf32>
    %304 = vector.extract_strided_slice %303 {offsets = [0, 0], sizes = [8, 128], strides = [1, 1]} : vector<8x512xf32> to vector<8x128xf32>
    %305 = math.tanh %304 : vector<8x128xf32>
    %cst_101 = arith.constant 5.000000e-01 : f32
    %306 = vector.broadcast %cst_101 : f32 to vector<8x128xf32>
    %307 = arith.mulf %306, %305 : vector<8x128xf32>
    %cst_102 = arith.constant 5.000000e-01 : f32
    %308 = vector.broadcast %cst_102 : f32 to vector<8x128xf32>
    %309 = arith.addf %307, %308 : vector<8x128xf32>
    %310 = vector.extract_strided_slice %303 {offsets = [0, 128], sizes = [8, 128], strides = [1, 1]} : vector<8x512xf32> to vector<8x128xf32>
    %311 = math.tanh %310 : vector<8x128xf32>
    %cst_103 = arith.constant 5.000000e-01 : f32
    %312 = vector.broadcast %cst_103 : f32 to vector<8x128xf32>
    %313 = arith.mulf %312, %311 : vector<8x128xf32>
    %cst_104 = arith.constant 5.000000e-01 : f32
    %314 = vector.broadcast %cst_104 : f32 to vector<8x128xf32>
    %315 = arith.addf %313, %314 : vector<8x128xf32>
    %316 = vector.extract_strided_slice %303 {offsets = [0, 256], sizes = [8, 128], strides = [1, 1]} : vector<8x512xf32> to vector<8x128xf32>
    %317 = math.tanh %316 : vector<8x128xf32>
    %318 = vector.extract_strided_slice %303 {offsets = [0, 384], sizes = [8, 128], strides = [1, 1]} : vector<8x512xf32> to vector<8x128xf32>
    %319 = math.tanh %318 : vector<8x128xf32>
    %cst_105 = arith.constant 5.000000e-01 : f32
    %320 = vector.broadcast %cst_105 : f32 to vector<8x128xf32>
    %321 = arith.mulf %320, %319 : vector<8x128xf32>
    %cst_106 = arith.constant 5.000000e-01 : f32
    %322 = vector.broadcast %cst_106 : f32 to vector<8x128xf32>
    %323 = arith.addf %321, %322 : vector<8x128xf32>
    %324 = arith.mulf %315, %269 : vector<8x128xf32>
    %325 = arith.mulf %309, %317 : vector<8x128xf32>
    %326 = arith.addf %324, %325 : vector<8x128xf32>
    %327 = math.tanh %326 : vector<8x128xf32>
    %328 = arith.mulf %323, %327 : vector<8x128xf32>
    %cst_107 = arith.constant dense<0.000000e+00> : vector<8x512xf32>
    %329 = tpu.matmul %328, %8, %cst_107 {dimension_numbers = #tpu.dot_dimension_numbers<[1], [0], [0], [1], [0, 0, 1, 1], [], []>} : vector<8x128xf32>, vector<128x512xf32>, vector<8x512xf32> -> vector<8x512xf32>
    %330 = arith.addf %329, %300 : vector<8x512xf32>
    %331 = vector.extract_strided_slice %330 {offsets = [0, 0], sizes = [8, 128], strides = [1, 1]} : vector<8x512xf32> to vector<8x128xf32>
    %332 = math.tanh %331 : vector<8x128xf32>
    %cst_108 = arith.constant 5.000000e-01 : f32
    %333 = vector.broadcast %cst_108 : f32 to vector<8x128xf32>
    %334 = arith.mulf %333, %332 : vector<8x128xf32>
    %cst_109 = arith.constant 5.000000e-01 : f32
    %335 = vector.broadcast %cst_109 : f32 to vector<8x128xf32>
    %336 = arith.addf %334, %335 : vector<8x128xf32>
    %337 = vector.extract_strided_slice %330 {offsets = [0, 128], sizes = [8, 128], strides = [1, 1]} : vector<8x512xf32> to vector<8x128xf32>
    %338 = math.tanh %337 : vector<8x128xf32>
    %cst_110 = arith.constant 5.000000e-01 : f32
    %339 = vector.broadcast %cst_110 : f32 to vector<8x128xf32>
    %340 = arith.mulf %339, %338 : vector<8x128xf32>
    %cst_111 = arith.constant 5.000000e-01 : f32
    %341 = vector.broadcast %cst_111 : f32 to vector<8x128xf32>
    %342 = arith.addf %340, %341 : vector<8x128xf32>
    %343 = vector.extract_strided_slice %330 {offsets = [0, 256], sizes = [8, 128], strides = [1, 1]} : vector<8x512xf32> to vector<8x128xf32>
    %344 = math.tanh %343 : vector<8x128xf32>
    %345 = vector.extract_strided_slice %330 {offsets = [0, 384], sizes = [8, 128], strides = [1, 1]} : vector<8x512xf32> to vector<8x128xf32>
    %346 = math.tanh %345 : vector<8x128xf32>
    %cst_112 = arith.constant 5.000000e-01 : f32
    %347 = vector.broadcast %cst_112 : f32 to vector<8x128xf32>
    %348 = arith.mulf %347, %346 : vector<8x128xf32>
    %cst_113 = arith.constant 5.000000e-01 : f32
    %349 = vector.broadcast %cst_113 : f32 to vector<8x128xf32>
    %350 = arith.addf %348, %349 : vector<8x128xf32>
    %351 = arith.mulf %342, %296 : vector<8x128xf32>
    %352 = arith.mulf %336, %344 : vector<8x128xf32>
    %353 = arith.addf %351, %352 : vector<8x128xf32>
    %354 = math.tanh %353 : vector<8x128xf32>
    %355 = arith.mulf %350, %354 : vector<8x128xf32>
    %cst_114 = arith.constant dense<0.000000e+00> : vector<8x512xf32>
    %356 = tpu.matmul %355, %9, %cst_114 {dimension_numbers = #tpu.dot_dimension_numbers<[1], [0], [0], [1], [0, 0, 1, 1], [], []>} : vector<8x128xf32>, vector<128x512xf32>, vector<8x512xf32> -> vector<8x512xf32>
    %357 = arith.addf %356, %12 : vector<8x512xf32>
    %c48 = arith.constant 48 : index
    %c0_115 = arith.constant 0 : index
    %358 = vector.load %arg10[%c48, %c0_115] : memref<64x512xf32, #tpu.memory_space<vmem>>, vector<8x512xf32>
    %cst_116 = arith.constant dense<0.000000e+00> : vector<8x512xf32>
    %359 = tpu.matmul %328, %7, %cst_116 {dimension_numbers = #tpu.dot_dimension_numbers<[1], [0], [0], [1], [0, 0, 1, 1], [], []>} : vector<8x128xf32>, vector<128x512xf32>, vector<8x512xf32> -> vector<8x512xf32>
    %360 = arith.addf %358, %359 : vector<8x512xf32>
    %361 = vector.extract_strided_slice %360 {offsets = [0, 0], sizes = [8, 128], strides = [1, 1]} : vector<8x512xf32> to vector<8x128xf32>
    %362 = math.tanh %361 : vector<8x128xf32>
    %cst_117 = arith.constant 5.000000e-01 : f32
    %363 = vector.broadcast %cst_117 : f32 to vector<8x128xf32>
    %364 = arith.mulf %363, %362 : vector<8x128xf32>
    %cst_118 = arith.constant 5.000000e-01 : f32
    %365 = vector.broadcast %cst_118 : f32 to vector<8x128xf32>
    %366 = arith.addf %364, %365 : vector<8x128xf32>
    %367 = vector.extract_strided_slice %360 {offsets = [0, 128], sizes = [8, 128], strides = [1, 1]} : vector<8x512xf32> to vector<8x128xf32>
    %368 = math.tanh %367 : vector<8x128xf32>
    %cst_119 = arith.constant 5.000000e-01 : f32
    %369 = vector.broadcast %cst_119 : f32 to vector<8x128xf32>
    %370 = arith.mulf %369, %368 : vector<8x128xf32>
    %cst_120 = arith.constant 5.000000e-01 : f32
    %371 = vector.broadcast %cst_120 : f32 to vector<8x128xf32>
    %372 = arith.addf %370, %371 : vector<8x128xf32>
    %373 = vector.extract_strided_slice %360 {offsets = [0, 256], sizes = [8, 128], strides = [1, 1]} : vector<8x512xf32> to vector<8x128xf32>
    %374 = math.tanh %373 : vector<8x128xf32>
    %375 = vector.extract_strided_slice %360 {offsets = [0, 384], sizes = [8, 128], strides = [1, 1]} : vector<8x512xf32> to vector<8x128xf32>
    %376 = math.tanh %375 : vector<8x128xf32>
    %cst_121 = arith.constant 5.000000e-01 : f32
    %377 = vector.broadcast %cst_121 : f32 to vector<8x128xf32>
    %378 = arith.mulf %377, %376 : vector<8x128xf32>
    %cst_122 = arith.constant 5.000000e-01 : f32
    %379 = vector.broadcast %cst_122 : f32 to vector<8x128xf32>
    %380 = arith.addf %378, %379 : vector<8x128xf32>
    %381 = arith.mulf %372, %326 : vector<8x128xf32>
    %382 = arith.mulf %366, %374 : vector<8x128xf32>
    %383 = arith.addf %381, %382 : vector<8x128xf32>
    %384 = math.tanh %383 : vector<8x128xf32>
    %385 = arith.mulf %380, %384 : vector<8x128xf32>
    %cst_123 = arith.constant dense<0.000000e+00> : vector<8x512xf32>
    %386 = tpu.matmul %385, %8, %cst_123 {dimension_numbers = #tpu.dot_dimension_numbers<[1], [0], [0], [1], [0, 0, 1, 1], [], []>} : vector<8x128xf32>, vector<128x512xf32>, vector<8x512xf32> -> vector<8x512xf32>
    %387 = arith.addf %386, %357 : vector<8x512xf32>
    %388 = vector.extract_strided_slice %387 {offsets = [0, 0], sizes = [8, 128], strides = [1, 1]} : vector<8x512xf32> to vector<8x128xf32>
    %389 = math.tanh %388 : vector<8x128xf32>
    %cst_124 = arith.constant 5.000000e-01 : f32
    %390 = vector.broadcast %cst_124 : f32 to vector<8x128xf32>
    %391 = arith.mulf %390, %389 : vector<8x128xf32>
    %cst_125 = arith.constant 5.000000e-01 : f32
    %392 = vector.broadcast %cst_125 : f32 to vector<8x128xf32>
    %393 = arith.addf %391, %392 : vector<8x128xf32>
    %394 = vector.extract_strided_slice %387 {offsets = [0, 128], sizes = [8, 128], strides = [1, 1]} : vector<8x512xf32> to vector<8x128xf32>
    %395 = math.tanh %394 : vector<8x128xf32>
    %cst_126 = arith.constant 5.000000e-01 : f32
    %396 = vector.broadcast %cst_126 : f32 to vector<8x128xf32>
    %397 = arith.mulf %396, %395 : vector<8x128xf32>
    %cst_127 = arith.constant 5.000000e-01 : f32
    %398 = vector.broadcast %cst_127 : f32 to vector<8x128xf32>
    %399 = arith.addf %397, %398 : vector<8x128xf32>
    %400 = vector.extract_strided_slice %387 {offsets = [0, 256], sizes = [8, 128], strides = [1, 1]} : vector<8x512xf32> to vector<8x128xf32>
    %401 = math.tanh %400 : vector<8x128xf32>
    %402 = vector.extract_strided_slice %387 {offsets = [0, 384], sizes = [8, 128], strides = [1, 1]} : vector<8x512xf32> to vector<8x128xf32>
    %403 = math.tanh %402 : vector<8x128xf32>
    %cst_128 = arith.constant 5.000000e-01 : f32
    %404 = vector.broadcast %cst_128 : f32 to vector<8x128xf32>
    %405 = arith.mulf %404, %403 : vector<8x128xf32>
    %cst_129 = arith.constant 5.000000e-01 : f32
    %406 = vector.broadcast %cst_129 : f32 to vector<8x128xf32>
    %407 = arith.addf %405, %406 : vector<8x128xf32>
    %408 = arith.mulf %399, %353 : vector<8x128xf32>
    %409 = arith.mulf %393, %401 : vector<8x128xf32>
    %410 = arith.addf %408, %409 : vector<8x128xf32>
    %411 = math.tanh %410 : vector<8x128xf32>
    %412 = arith.mulf %407, %411 : vector<8x128xf32>
    %cst_130 = arith.constant dense<0.000000e+00> : vector<8x512xf32>
    %413 = tpu.matmul %412, %9, %cst_130 {dimension_numbers = #tpu.dot_dimension_numbers<[1], [0], [0], [1], [0, 0, 1, 1], [], []>} : vector<8x128xf32>, vector<128x512xf32>, vector<8x512xf32> -> vector<8x512xf32>
    %414 = arith.addf %413, %12 : vector<8x512xf32>
    %c56 = arith.constant 56 : index
    %c0_131 = arith.constant 0 : index
    %415 = vector.load %arg10[%c56, %c0_131] : memref<64x512xf32, #tpu.memory_space<vmem>>, vector<8x512xf32>
    %cst_132 = arith.constant dense<0.000000e+00> : vector<8x512xf32>
    %416 = tpu.matmul %385, %7, %cst_132 {dimension_numbers = #tpu.dot_dimension_numbers<[1], [0], [0], [1], [0, 0, 1, 1], [], []>} : vector<8x128xf32>, vector<128x512xf32>, vector<8x512xf32> -> vector<8x512xf32>
    %417 = arith.addf %415, %416 : vector<8x512xf32>
    %418 = vector.extract_strided_slice %417 {offsets = [0, 0], sizes = [8, 128], strides = [1, 1]} : vector<8x512xf32> to vector<8x128xf32>
    %419 = math.tanh %418 : vector<8x128xf32>
    %cst_133 = arith.constant 5.000000e-01 : f32
    %420 = vector.broadcast %cst_133 : f32 to vector<8x128xf32>
    %421 = arith.mulf %420, %419 : vector<8x128xf32>
    %cst_134 = arith.constant 5.000000e-01 : f32
    %422 = vector.broadcast %cst_134 : f32 to vector<8x128xf32>
    %423 = arith.addf %421, %422 : vector<8x128xf32>
    %424 = vector.extract_strided_slice %417 {offsets = [0, 128], sizes = [8, 128], strides = [1, 1]} : vector<8x512xf32> to vector<8x128xf32>
    %425 = math.tanh %424 : vector<8x128xf32>
    %cst_135 = arith.constant 5.000000e-01 : f32
    %426 = vector.broadcast %cst_135 : f32 to vector<8x128xf32>
    %427 = arith.mulf %426, %425 : vector<8x128xf32>
    %cst_136 = arith.constant 5.000000e-01 : f32
    %428 = vector.broadcast %cst_136 : f32 to vector<8x128xf32>
    %429 = arith.addf %427, %428 : vector<8x128xf32>
    %430 = vector.extract_strided_slice %417 {offsets = [0, 256], sizes = [8, 128], strides = [1, 1]} : vector<8x512xf32> to vector<8x128xf32>
    %431 = math.tanh %430 : vector<8x128xf32>
    %432 = vector.extract_strided_slice %417 {offsets = [0, 384], sizes = [8, 128], strides = [1, 1]} : vector<8x512xf32> to vector<8x128xf32>
    %433 = math.tanh %432 : vector<8x128xf32>
    %cst_137 = arith.constant 5.000000e-01 : f32
    %434 = vector.broadcast %cst_137 : f32 to vector<8x128xf32>
    %435 = arith.mulf %434, %433 : vector<8x128xf32>
    %cst_138 = arith.constant 5.000000e-01 : f32
    %436 = vector.broadcast %cst_138 : f32 to vector<8x128xf32>
    %437 = arith.addf %435, %436 : vector<8x128xf32>
    %438 = arith.mulf %429, %383 : vector<8x128xf32>
    %439 = arith.mulf %423, %431 : vector<8x128xf32>
    %440 = arith.addf %438, %439 : vector<8x128xf32>
    %441 = math.tanh %440 : vector<8x128xf32>
    %442 = arith.mulf %437, %441 : vector<8x128xf32>
    %cst_139 = arith.constant dense<0.000000e+00> : vector<8x512xf32>
    %443 = tpu.matmul %442, %8, %cst_139 {dimension_numbers = #tpu.dot_dimension_numbers<[1], [0], [0], [1], [0, 0, 1, 1], [], []>} : vector<8x128xf32>, vector<128x512xf32>, vector<8x512xf32> -> vector<8x512xf32>
    %444 = arith.addf %443, %414 : vector<8x512xf32>
    %445 = vector.extract_strided_slice %444 {offsets = [0, 0], sizes = [8, 128], strides = [1, 1]} : vector<8x512xf32> to vector<8x128xf32>
    %446 = math.tanh %445 : vector<8x128xf32>
    %cst_140 = arith.constant 5.000000e-01 : f32
    %447 = vector.broadcast %cst_140 : f32 to vector<8x128xf32>
    %448 = arith.mulf %447, %446 : vector<8x128xf32>
    %cst_141 = arith.constant 5.000000e-01 : f32
    %449 = vector.broadcast %cst_141 : f32 to vector<8x128xf32>
    %450 = arith.addf %448, %449 : vector<8x128xf32>
    %451 = vector.extract_strided_slice %444 {offsets = [0, 128], sizes = [8, 128], strides = [1, 1]} : vector<8x512xf32> to vector<8x128xf32>
    %452 = math.tanh %451 : vector<8x128xf32>
    %cst_142 = arith.constant 5.000000e-01 : f32
    %453 = vector.broadcast %cst_142 : f32 to vector<8x128xf32>
    %454 = arith.mulf %453, %452 : vector<8x128xf32>
    %cst_143 = arith.constant 5.000000e-01 : f32
    %455 = vector.broadcast %cst_143 : f32 to vector<8x128xf32>
    %456 = arith.addf %454, %455 : vector<8x128xf32>
    %457 = vector.extract_strided_slice %444 {offsets = [0, 256], sizes = [8, 128], strides = [1, 1]} : vector<8x512xf32> to vector<8x128xf32>
    %458 = math.tanh %457 : vector<8x128xf32>
    %459 = vector.extract_strided_slice %444 {offsets = [0, 384], sizes = [8, 128], strides = [1, 1]} : vector<8x512xf32> to vector<8x128xf32>
    %460 = math.tanh %459 : vector<8x128xf32>
    %cst_144 = arith.constant 5.000000e-01 : f32
    %461 = vector.broadcast %cst_144 : f32 to vector<8x128xf32>
    %462 = arith.mulf %461, %460 : vector<8x128xf32>
    %cst_145 = arith.constant 5.000000e-01 : f32
    %463 = vector.broadcast %cst_145 : f32 to vector<8x128xf32>
    %464 = arith.addf %462, %463 : vector<8x128xf32>
    %465 = arith.mulf %456, %410 : vector<8x128xf32>
    %466 = arith.mulf %450, %458 : vector<8x128xf32>
    %467 = arith.addf %465, %466 : vector<8x128xf32>
    %468 = math.tanh %467 : vector<8x128xf32>
    %469 = arith.mulf %464, %468 : vector<8x128xf32>
    %470 = tpu.concatenate %442, %440, %469, %467 in 1 : vector<8x128xf32>, vector<8x128xf32>, vector<8x128xf32>, vector<8x128xf32> -> vector<8x512xf32>
    %c0_146 = arith.constant 0 : index
    %c0_147 = arith.constant 0 : index
    %471 = vector.load %arg7[%c0_146, %c0_147] : memref<512x128xf32, #tpu.memory_space<vmem>>, vector<512x128xf32>
    %cst_148 = arith.constant dense<0.000000e+00> : vector<8x128xf32>
    %472 = tpu.matmul %470, %471, %cst_148 {dimension_numbers = #tpu.dot_dimension_numbers<[1], [0], [0], [1], [0, 0, 1, 1], [], []>} : vector<8x512xf32>, vector<512x128xf32>, vector<8x128xf32> -> vector<8x128xf32>
    %c0_149 = arith.constant 0 : index
    %c0_150 = arith.constant 0 : index
    %473 = vector.load %arg8[%c0_149, %c0_150] : memref<1x128xf32, #tpu.memory_space<vmem>>, vector<1x128xf32>
    %474 = vector.broadcast %473 : vector<1x128xf32> to vector<8x128xf32>
    %475 = arith.addf %472, %474 : vector<8x128xf32>
    %476 = math.tanh %475 : vector<8x128xf32>
    %c0_151 = arith.constant 0 : index
    %c0_152 = arith.constant 0 : index
    %477 = vector.load %arg9[%c0_151, %c0_152] : memref<8x128xf32, #tpu.memory_space<vmem>>, vector<8x128xf32>
    tpu.vector_store %arg9[%c0_151, %c0_152], %476 {strides = array<i32>} : memref<8x128xf32, #tpu.memory_space<vmem>>, vector<8x128xf32>,
    return
  }
}

</mosaic_0001>

<bundles_post_ra>
// kernel: _forward_impl.1
= control target key start
LH: loop header
LB: loop body
LE: loop exit
PB: predicated region body
PF: predicated region fallthrough
CT: control target
= control target key end

     0   :  { %14 = vsyncpa [#allocation4], 0  ;;  %s7866_s0 = inlined_call_operand.vmem [shape: f32[64,32], index: 0, kind: input, shape index: {}]   ;;  %s7867_s1 = inlined_call_operand.vmem [shape: f32[32,512], index: 1, kind: input, shape index: {}]   ;;  %s7868_s2 = inlined_call_operand.vmem [shape: f32[1,512], index: 2, kind: input, shape index: {}]   ;;  %s7869_s3 = inlined_call_operand.hbm [shape: f32[128,512], index: 3, kind: input, shape index: {}]   ;;  %s7870_s4 = inlined_call_operand.hbm [shape: f32[128,512], index: 4, kind: input, shape index: {}]   ;;  %s7871_s5 = inlined_call_operand.hbm [shape: f32[128,512], index: 5, kind: input, shape index: {}]   ;;  %s7872_s6 = inlined_call_operand.vmem [shape: f32[1,512], index: 6, kind: input, shape index: {}]   ;;  %s7873_s7 = inlined_call_operand.hbm [shape: f32[512,128], index: 7, kind: input, shape index: {}]   ;;  %s7874_s8 = inlined_call_operand.vmem [shape: f32[1,128], index: 8, kind: input, shape index: {}]   ;;  %s7875_s9 = inlined_call_operand.vmem [shape: f32[8,128], index: 9, kind: output, shape index: {}]  }
   0x1   :  { %15 = vsyncpa [#allocation6], 0 }
   0x2   :  { %16 = vsyncpa [#allocation9], 0  ;;  %s6444_s30 = smov [#allocation5]   ;;  %s6445_s11 = smov [#allocation3]  }
   0x3   :  { %s40_s10 = sshll.u32 %s6444_s30, 4  ;;  %s28_s12 = sshll.u32 %s6445_s11, 4  ;;  %s41_s10 = int_to_ptr.vmem [resolvable:$true] %s40_s10  ;;  %s6503_s12 = int_to_ptr.vmem [resolvable:$true] %s28_s12 }
   0x4   :  { %s6350_s15 = scalar_lea.hbm %s7870_s4, 8192 }
   0x5   :  { %p6351_p0 = scmp.ne.s32.totalorder %s7870_s4, %s6350_s15  ;;  %p6354_p1 = scmp.lt.u32.totalorder %s6350_s15, %s7870_s4 }
   0x7   :  { %p6356_p2 = pnand %p6354_p1, %p6351_p0 }
   0x9   :  { %6359 = shalt.err (!%p6356_p2)
}
   0xa   :  { %s6360_s20 = scalar_lea.vmem %s41_s10, 8192  ;;  %p6365_p4 = scmp.lt.s32.totalorder %s41_s10, %s41_s10 }
   0xb   :  { %p6361_p3 = scmp.ne.s32.totalorder %s41_s10, %s6360_s20  ;;  %p6366_p5 = scmp.lt.s32.totalorder %s6360_s20, %s6360_s20 }
   0xd   :  { %p6367_p6 = por %p6366_p5, %p6365_p4 }
   0xf   :  { %p6368_p7 = pnand %p6367_p6, %p6361_p3 }
  0x11   :  { %6371 = shalt.err (!%p6368_p7)
}
  0x12   :  { %s6446_s21 = smov 512   ;;  %s6447_s22 = smov 32  }
  0x13   :  { %46 = dma.hbm_to_vmem [thread:$0]  %s7870_s4, 8192, %s41_s10, [#allocation6], %s6446_s21, %s6446_s21, %s6447_s22  }
  0x14   :  { %s6372_s27 = scalar_lea.hbm %s7869_s3, 8192 }
  0x15   :  { %p6373_p8 = scmp.ne.s32.totalorder %s7869_s3, %s6372_s27  ;;  %p6376_p9 = scmp.lt.u32.totalorder %s6372_s27, %s7869_s3 }
  0x17   :  { %p6378_p10 = pnand %p6376_p9, %p6373_p8 }
  0x19   :  { %6381 = shalt.err (!%p6378_p10)
}
  0x1a   :  { %s6382_s13 = scalar_lea.vmem %s6503_s12, 8192  ;;  %p6387_p12 = scmp.lt.s32.totalorder %s6503_s12, %s6503_s12 }
  0x1b   :  { %p6383_p11 = scmp.ne.s32.totalorder %s6503_s12, %s6382_s13  ;;  %p6388_p13 = scmp.lt.s32.totalorder %s6382_s13, %s6382_s13 }
  0x1d   :  { %p6389_p0 = por %p6388_p13, %p6387_p12 }
  0x1f   :  { %p6390_p1 = pnand %p6389_p0, %p6383_p11 }
  0x21   :  { %6393 = shalt.err (!%p6390_p1)
}
  0x22   :  { %34 = dma.hbm_to_vmem [thread:$0]  %s7869_s3, 8192, %s6503_s12, [#allocation4], %s6446_s21, %s6446_s21, %s6447_s22  }
  0x23   :  { %s6448_s14 = smov [#allocation7]   ;;  %s6449_s16 = smov [#allocation8]  }
  0x24   :  { %s52_s15 = sshll.u32 %s6448_s14, 4  ;;  %s66_s17 = sshll.u32 %s6449_s16, 4  ;;  %s53_s15 = int_to_ptr.vmem [resolvable:$true] %s52_s15  ;;  %s6540_s17 = int_to_ptr.vmem [resolvable:$true] %s66_s17 }
  0x25   :  { %s6394_s20 = scalar_lea.hbm %s7871_s5, 8192 }
  0x26   :  { %p6395_p2 = scmp.ne.s32.totalorder %s7871_s5, %s6394_s20  ;;  %p6398_p3 = scmp.lt.u32.totalorder %s6394_s20, %s7871_s5 }
  0x28   :  { %p6400_p4 = pnand %p6398_p3, %p6395_p2 }
  0x2a   :  { %6403 = shalt.err (!%p6400_p4)
}
  0x2b   :  { %s6404_s3 = scalar_lea.vmem %s53_s15, 8192  ;;  %p6409_p6 = scmp.lt.s32.totalorder %s53_s15, %s53_s15 }
  0x2c   :  { %p6405_p5 = scmp.ne.s32.totalorder %s53_s15, %s6404_s3  ;;  %p6410_p7 = scmp.lt.s32.totalorder %s6404_s3, %s6404_s3 }
  0x2e   :  { %p6411_p8 = por %p6410_p7, %p6409_p6 }
  0x30   :  { %p6412_p9 = pnand %p6411_p8, %p6405_p5 }
  0x32   :  { %6415 = shalt.err (!%p6412_p9)
}
  0x33   :  { %58 = dma.hbm_to_vmem [thread:$0]  %s7871_s5, 8192, %s53_s15, [#allocation6], %s6446_s21, %s6446_s21, %s6447_s22  }
  0x34   :  { %s6416_s30 = scalar_lea.hbm %s7873_s7, 8192 }
  0x35   :  { %p6417_p10 = scmp.ne.s32.totalorder %s7873_s7, %s6416_s30  ;;  %p6420_p11 = scmp.lt.u32.totalorder %s6416_s30, %s7873_s7 }
  0x37   :  { %p6422_p12 = pnand %p6420_p11, %p6417_p10 }
  0x39   :  { %6425 = shalt.err (!%p6422_p12)
}
  0x3a   :  { %s6426_s14 = scalar_lea.vmem %s6540_s17, 8192  ;;  %p6431_p0 = scmp.lt.s32.totalorder %s6540_s17, %s6540_s17 }
  0x3b   :  { %p6427_p13 = scmp.ne.s32.totalorder %s6540_s17, %s6426_s14  ;;  %p6432_p1 = scmp.lt.s32.totalorder %s6426_s14, %s6426_s14 }
  0x3d   :  { %p6433_p2 = por %p6432_p1, %p6431_p0 }
  0x3f   :  { %p6434_p3 = pnand %p6433_p2, %p6427_p13 }
  0x41   :  { %6437 = shalt.err (!%p6434_p3)
}
  0x42   :  { %s6450_s5 = smov 128   ;;  %s6451_s21 = smov 8  }
  0x43   :  { %72 = dma.hbm_to_vmem [thread:$0]  %s7873_s7, 8192, %s6540_s17, [#allocation9], %s6450_s5, %s6450_s5, %s6451_s21  }
  0x44   :  { %6438 = dma.done.wait [#allocation4], 8192  }
  0x45   :  { %6439 = vsyncadd [#allocation4], 4294959104 }
  0x46   :  { %6440 = dma.done.wait [#allocation6], 16384  }
  0x47   :  { %6441 = vsyncadd [#allocation6], 4294950912 }
  0x48   :  { %6442 = dma.done.wait [#allocation9], 8192  }
  0x49   :  { %6443 = vsyncadd [#allocation9], 4294959104  ;;  %v7876_v0 = vmov 0.0   ;;  %v96_v1 = vld [vmem:[%s7867_s1 + $0x8] sm:$0xff]  ;;  %v98_v3 = vld [vmem:[%s7867_s1 + $0x18] sm:$0xff]  ;;  %vm133_vm0 = vcmask 261120  }
  0x4a   :  { %222 = vmatprep.mubr.f32.mxu0 %v7876_v0  ;;  %335 = vmatprep.mubr.f32.mxu1 %v7876_v0  ;;  %v100_v2 = vld [vmem:[%s7867_s1 + $0x28] sm:$0xff]  ;;  %v102_v5 = vld [vmem:[%s7867_s1 + $0x38] sm:$0xff]  ;;  %v95_v6 = vld [vmem:[%s7867_s1] sm:$0xff] }
  0x4b   :  { %v4507_v4 = vpack.c.bf16 %v100_v2, %v96_v1  ;;  %v99_v7 = vld [vmem:[%s7867_s1 + $0x20] sm:$0xff]  ;;  %v4515_v8 = vpack.c.bf16 %v102_v5, %v98_v3  ;;  %v97_v10 = vld [vmem:[%s7867_s1 + $0x10] sm:$0xff]  ;;  %v104_v12 = vld [vmem:[%s7867_s1 + $0x48] sm:$0xff] }
  0x4c   :  { %v4509_v9 = vpack.c.bf16 %v99_v7, %v95_v6  ;;  %v101_v11 = vld [vmem:[%s7867_s1 + $0x30] sm:$0xff]  ;;  %v108_v14 = vld [vmem:[%s7867_s1 + $0x68] sm:$0xff]  ;;  %v106_v15 = vld [vmem:[%s7867_s1 + $0x58] sm:$0xff] }
  0x4d   :  { %4508 = vmatprep.subr.bf16.mxu0 %v4507_v4  ;;  %v4517_v13 = vpack.c.bf16 %v101_v11, %v97_v10  ;;  %v110_v16 = vld [vmem:[%s7867_s1 + $0x78] sm:$0xff]  ;;  %4516 = vmatprep.subr.bf16.mxu1 %v4515_v8  ;;  %v4511_v17 = vpack.c.bf16 %v108_v14, %v104_v12  ;;  %v103_v19 = vld [vmem:[%s7867_s1 + $0x40] sm:$0xff]  ;;  %v105_v21 = vld [vmem:[%s7867_s1 + $0x50] sm:$0xff] }
  0x4e   :  { %4510 = vmatpush1.bf16.msra.mxu0 %v4509_v9  ;;  %v4519_v18 = vpack.c.bf16 %v110_v16, %v106_v15  ;;  %v107_v20 = vld [vmem:[%s7867_s1 + $0x60] sm:$0xff]  ;;  %v109_v23 = vld [vmem:[%s7867_s1 + $0x70] sm:$0xff]  ;;  %v417_v24 = vld [vmem:[#allocation3 + $0x8] sm:$0xff] }
  0x4f   :  { %4518 = vmatpush1.bf16.msra.mxu1 %v4517_v13  ;;  %v4513_v22 = vpack.c.bf16 %v107_v20, %v103_v19  ;;  %4512 = vmatprep.subr.bf16.mxu0 %v4511_v17  ;;  %v4521_v25 = vpack.c.bf16 %v109_v23, %v105_v21  ;;  %v421_v26 = vld [vmem:[#allocation3 + $0x28] sm:$0xff]  ;;  %v419_v27 = vld [vmem:[#allocation3 + $0x18] sm:$0xff]  ;;  %v416_v31 = vld [vmem:[#allocation3] sm:$0xff] }
  0x50   :  { %4520 = vmatprep.subr.bf16.mxu1 %v4519_v18  ;;  %v423_v28 = vld [vmem:[#allocation3 + $0x38] sm:$0xff]  ;;  %v6624_v29 = vpack.c.bf16 %v421_v26, %v417_v24  ;;  %v420_v32 = vld [vmem:[#allocation3 + $0x20] sm:$0xff]  ;;  %v418_v33 = vld [vmem:[#allocation3 + $0x10] sm:$0xff] }
  0x51   :  { %v6626_v30 = vpack.c.bf16 %v423_v28, %v419_v27  ;;  %v87_v34 = vld [vmem:[%s7866_s0] sm:$0xff]  ;;  %v6631_v35 = vpack.c.bf16 %v420_v32, %v416_v31  ;;  %v422_v36 = vld [vmem:[#allocation3 + $0x30] sm:$0xff]  ;;  %v425_v37 = vld [vmem:[#allocation3 + $0x48] sm:$0xff] }
  0x52   :  { %8017 = vst [vmem:[#allocation13_spill] sm:$0xff] %v6624_v29  ;;  %4514 = vmatpush1.bf16.msra.mxu0 %v4513_v22  ;;  %v6634_v38 = vpack.c.bf16 %v422_v36, %v418_v33  ;;  %v429_v39 = vld [vmem:[#allocation3 + $0x68] sm:$0xff]  ;;  %v427_v40 = vld [vmem:[#allocation3 + $0x58] sm:$0xff]  ;;  %v424_v43 = vld [vmem:[#allocation3 + $0x40] sm:$0xff] }
  0x53   :  { %8018 = vst [vmem:[#allocation14_spill] sm:$0xff] %v6626_v30  ;;  %4522 = vmatpush1.bf16.msra.mxu1 %v4521_v25  ;;  %4524 = vmatprep.subr.bf16.mxu0 %v6624_v29  ;;  %v431_v41 = vld [vmem:[#allocation3 + $0x78] sm:$0xff]  ;;  %v6637_v42 = vpack.c.bf16 %v429_v39, %v425_v37  ;;  %v428_v44 = vld [vmem:[#allocation3 + $0x60] sm:$0xff]  ;;  %v426_v45 = vld [vmem:[#allocation3 + $0x50] sm:$0xff] }
  0x54   :  { %4556 = vmatprep.subr.bf16.mxu1 %v6626_v30  ;;  %v88_v46 = vld [vmem:[%s7866_s0 + $0x8] sm:$0xff]  ;;  %v6643_v47 = vpack.c.bf16 %v431_v41, %v427_v40  ;;  %v430_v48 = vld [vmem:[#allocation3 + $0x70] sm:$0xff]  ;;  %v6647_v50 = vpack.c.bf16 %v428_v44, %v424_v43  ;;  %v435_v52 = vld [vmem:[#allocation3 + $0x98] sm:$0xff] }
  0x55   :  { %4420 = vmatmul.mubr.msk.f32.vlgmr.msra.gmra.mrb[0].mxu0 %vm133_vm0, %v87_v34  ;;  %v433_v49 = vld [vmem:[#allocation3 + $0x88] sm:$0xff]  ;;  %v439_v53 = vld [vmem:[#allocation3 + $0xb8] sm:$0xff]  ;;  %v6651_v54 = vpack.c.bf16 %v430_v48, %v426_v45  ;;  %v432_v55 = vld [vmem:[#allocation3 + $0x80] sm:$0xff] }
  0x56   :  { %4428 = vmatmul.mubr.msk.f32.vlgmr.msra.gmra.mrb[0].mxu1 %vm133_vm0, %v87_v34  ;;  %4526 = vmatpush1.bf16.msra.mxu0 %v6631_v35  ;;  %v437_v51 = vld [vmem:[#allocation3 + $0xa8] sm:$0xff]  ;;  %v436_v56 = vld [vmem:[#allocation3 + $0xa0] sm:$0xff]  ;;  %v434_v58 = vld [vmem:[#allocation3 + $0x90] sm:$0xff]  ;;  %v6659_v60 = vpack.c.bf16 %v439_v53, %v435_v52 }
  0x57   :  { %4558 = vmatpush1.bf16.msra.mxu1 %v6634_v38  ;;  %228 = vmatprep.mubr.f32.mxu0 %v7876_v0  ;;  %v6655_v57 = vpack.c.bf16 %v437_v51, %v433_v49  ;;  %v438_v59 = vld [vmem:[#allocation3 + $0xb0] sm:$0xff]  ;;  %v441_v61 = vld [vmem:[#allocation3 + $0xc8] sm:$0xff]  ;;  %v6666_v1 = vpack.c.bf16 %v436_v56, %v432_v55  ;;  %v443_v2 = vld [vmem:[#allocation3 + $0xd8] sm:$0xff] }
  0x58   :  { %341 = vmatprep.mubr.f32.mxu1 %v7876_v0  ;;  %4528 = vmatprep.subr.bf16.mxu0 %v6637_v42  ;;  %v445_v62 = vld [vmem:[#allocation3 + $0xe8] sm:$0xff]  ;;  %v89_v63 = vld [vmem:[%s7866_s0 + $0x10] sm:$0xff]  ;;  %v447_v3 = vld [vmem:[#allocation3 + $0xf8] sm:$0xff]  ;;  %v6670_v4 = vpack.c.bf16 %v438_v59, %v434_v58 }
  0x59   :  { %4421 = vmatmul.mubr.msk.f32.gmra.mrb[2].mxu0 %vm133_vm0, %v88_v46  ;;  %4560 = vmatprep.subr.bf16.mxu1 %v6643_v47  ;;  %v440_v5 = vld [vmem:[#allocation3 + $0xc0] sm:$0xff]  ;;  %v6674_v7 = vpack.c.bf16 %v445_v62, %v441_v61  ;;  %v442_v8 = vld [vmem:[#allocation3 + $0xd0] sm:$0xff]  ;;  %v6678_v10 = vpack.c.bf16 %v447_v3, %v443_v2  ;;  %v449_v11 = vld [vmem:[#allocation3 + $0x108] sm:$0xff] }
  0x5a   :  { %4429 = vmatmul.mubr.msk.f32.gmra.mrb[2].mxu1 %vm133_vm0, %v88_v46  ;;  %4530 = vmatpush1.bf16.msra.mxu0 %v6647_v50  ;;  %v444_v6 = vld [vmem:[#allocation3 + $0xe0] sm:$0xff]  ;;  %v446_v9 = vld [vmem:[#allocation3 + $0xf0] sm:$0xff]  ;;  %v453_v12 = vld [vmem:[#allocation3 + $0x128] sm:$0xff] }
  0x5b   :  { %4562 = vmatpush1.bf16.msra.mxu1 %v6651_v54  ;;  %234 = vmatprep.mubr.f32.mxu0 %v7876_v0  ;;  %v90_v13 = vld [vmem:[%s7866_s0 + $0x18] sm:$0xff]  ;;  %v6685_v14 = vpack.c.bf16 %v444_v6, %v440_v5  ;;  %v6689_v17 = vpack.c.bf16 %v446_v9, %v442_v8  ;;  %v448_v18 = vld [vmem:[#allocation3 + $0x100] sm:$0xff]  ;;  %v6693_v20 = vpack.c.bf16 %v453_v12, %v449_v11  ;;  %v450_v21 = vld [vmem:[#allocation3 + $0x110] sm:$0xff] }
  0x5c   :  { %347 = vmatprep.mubr.f32.mxu1 %v7876_v0  ;;  %4532 = vmatprep.subr.bf16.mxu0 %v6655_v57  ;;  %v451_v15 = vld [vmem:[#allocation3 + $0x118] sm:$0xff]  ;;  %v452_v19 = vld [vmem:[#allocation3 + $0x120] sm:$0xff]  ;;  %v454_v22 = vld [vmem:[#allocation3 + $0x130] sm:$0xff] }
  0x5d   :  { %4422 = vmatmul.mubr.msk.f32.gmra.mrb[4].mxu0 %vm133_vm0, %v89_v63  ;;  %4564 = vmatprep.subr.bf16.mxu1 %v6659_v60  ;;  %v455_v16 = vld [vmem:[#allocation3 + $0x138] sm:$0xff]  ;;  %v457_v24 = vld [vmem:[#allocation3 + $0x148] sm:$0xff]  ;;  %v91_v26 = vld [vmem:[%s7866_s0 + $0x20] sm:$0xff]  ;;  %v6704_v27 = vpack.c.bf16 %v452_v19, %v448_v18  ;;  %v6708_v32 = vpack.c.bf16 %v454_v22, %v450_v21 }
  0x5e   :  { %4430 = vmatmul.mubr.msk.f32.gmra.mrb[4].mxu1 %vm133_vm0, %v89_v63  ;;  %4534 = vmatpush1.bf16.msra.mxu0 %v6666_v1  ;;  %v6697_v23 = vpack.c.bf16 %v455_v16, %v451_v15  ;;  %v461_v25 = vld [vmem:[#allocation3 + $0x168] sm:$0xff]  ;;  %v459_v28 = vld [vmem:[#allocation3 + $0x158] sm:$0xff]  ;;  %v456_v33 = vld [vmem:[#allocation3 + $0x140] sm:$0xff] }
  0x5f   :  { %4566 = vmatpush1.bf16.msra.mxu1 %v6670_v4  ;;  %240 = vmatprep.mubr.f32.mxu0 %v7876_v0  ;;  %v463_v31 = vld [vmem:[#allocation3 + $0x178] sm:$0xff]  ;;  %v460_v34 = vld [vmem:[#allocation3 + $0x160] sm:$0xff]  ;;  %v6712_v36 = vpack.c.bf16 %v461_v25, %v457_v24  ;;  %v458_v37 = vld [vmem:[#allocation3 + $0x150] sm:$0xff] }
  0x60   :  { %353 = vmatprep.mubr.f32.mxu1 %v7876_v0  ;;  %4536 = vmatprep.subr.bf16.mxu0 %v6674_v7  ;;  %v462_v39 = vld [vmem:[#allocation3 + $0x170] sm:$0xff]  ;;  %v6716_v40 = vpack.c.bf16 %v463_v31, %v459_v28  ;;  %v465_v41 = vld [vmem:[#allocation3 + $0x188] sm:$0xff]  ;;  %v6723_v45 = vpack.c.bf16 %v460_v34, %v456_v33  ;;  %v467_v46 = vld [vmem:[#allocation3 + $0x198] sm:$0xff] }
  0x61   :  { %4423 = vmatmul.mubr.msk.f32.gmra.mrb[6].mxu0 %vm133_vm0, %v90_v13  ;;  %4568 = vmatprep.subr.bf16.mxu1 %v6678_v10  ;;  %v469_v43 = vld [vmem:[#allocation3 + $0x1a8] sm:$0xff]  ;;  %v471_v48 = vld [vmem:[#allocation3 + $0x1b8] sm:$0xff]  ;;  %v6727_v49 = vpack.c.bf16 %v462_v39, %v458_v37  ;;  %v464_v51 = vld [vmem:[#allocation3 + $0x180] sm:$0xff] }
  0x62   :  { %4431 = vmatmul.mubr.msk.f32.gmra.mrb[6].mxu1 %vm133_vm0, %v90_v13  ;;  %4538 = vmatpush1.bf16.msra.mxu0 %v6685_v14  ;;  %v92_v44 = vld [vmem:[%s7866_s0 + $0x28] sm:$0xff]  ;;  %v468_v52 = vld [vmem:[#allocation3 + $0x1a0] sm:$0xff]  ;;  %v6731_v53 = vpack.c.bf16 %v469_v43, %v465_v41  ;;  %v466_v55 = vld [vmem:[#allocation3 + $0x190] sm:$0xff]  ;;  %v6735_v58 = vpack.c.bf16 %v471_v48, %v467_v46 }
  0x63   :  { %4570 = vmatpush1.bf16.msra.mxu1 %v6689_v17  ;;  %246 = vmatprep.mubr.f32.mxu0 %v7876_v0  ;;  %v470_v56 = vld [vmem:[#allocation3 + $0x1b0] sm:$0xff]  ;;  %v473_v59 = vld [vmem:[#allocation3 + $0x1c8] sm:$0xff]  ;;  %v6742_v63 = vpack.c.bf16 %v468_v52, %v464_v51  ;;  %v475_v2 = vld [vmem:[#allocation3 + $0x1d8] sm:$0xff] }
  0x64   :  { %359 = vmatprep.mubr.f32.mxu1 %v7876_v0  ;;  %4540 = vmatprep.subr.bf16.mxu0 %v6693_v20  ;;  %v477_v61 = vld [vmem:[#allocation3 + $0x1e8] sm:$0xff]  ;;  %v93_v62 = vld [vmem:[%s7866_s0 + $0x30] sm:$0xff]  ;;  %v479_v3 = vld [vmem:[#allocation3 + $0x1f8] sm:$0xff]  ;;  %v6746_v5 = vpack.c.bf16 %v470_v56, %v466_v55 }
  0x65   :  { %4424 = vmatmul.mubr.msk.f32.gmra.mrb[8].mxu0 %vm133_vm0, %v91_v26  ;;  %4572 = vmatprep.subr.bf16.mxu1 %v6697_v23  ;;  %v472_v6 = vld [vmem:[#allocation3 + $0x1c0] sm:$0xff]  ;;  %v6750_v9 = vpack.c.bf16 %v477_v61, %v473_v59  ;;  %v474_v11 = vld [vmem:[#allocation3 + $0x1d0] sm:$0xff]  ;;  %v6754_v13 = vpack.c.bf16 %v479_v3, %v475_v2  ;;  %v94_v15 = vld [vmem:[%s7866_s0 + $0x38] sm:$0xff] }
  0x66   :  { %4432 = vmatmul.mubr.msk.f32.gmra.mrb[8].mxu1 %vm133_vm0, %v91_v26  ;;  %4542 = vmatpush1.bf16.msra.mxu0 %v6704_v27  ;;  %v476_v8 = vld [vmem:[#allocation3 + $0x1e0] sm:$0xff]  ;;  %v478_v12 = vld [vmem:[#allocation3 + $0x1f0] sm:$0xff]  ;;  %v481_v19 = vld [vmem:[#allocation5 + $0x8] sm:$0xff] }
  0x67   :  { %4574 = vmatpush1.bf16.msra.mxu1 %v6708_v32  ;;  %252 = vmatprep.mubr.f32.mxu0 %v7876_v0  ;;  %v6761_v16 = vpack.c.bf16 %v476_v8, %v472_v6  ;;  %v6765_v18 = vpack.c.bf16 %v478_v12, %v474_v11  ;;  %v485_v21 = vld [vmem:[#allocation5 + $0x28] sm:$0xff]  ;;  %v483_v22 = vld [vmem:[#allocation5 + $0x18] sm:$0xff]  ;;  %v480_v26 = vld [vmem:[#allocation5] sm:$0xff] }
  0x68   :  { %365 = vmatprep.mubr.f32.mxu1 %v7876_v0  ;;  %4544 = vmatprep.subr.bf16.mxu0 %v6712_v36  ;;  %v6780_v24 = vpack.c.bf16 %v485_v21, %v481_v19  ;;  %v487_v25 = vld [vmem:[#allocation5 + $0x38] sm:$0xff]  ;;  %v484_v28 = vld [vmem:[#allocation5 + $0x20] sm:$0xff]  ;;  %v482_v34 = vld [vmem:[#allocation5 + $0x10] sm:$0xff] }
  0x69   :  { %4425 = vmatmul.mubr.msk.f32.gmra.mrb[10].mxu0 %vm133_vm0, %v92_v44  ;;  %4576 = vmatprep.subr.bf16.mxu1 %v6716_v40  ;;  %v6782_v31 = vpack.c.bf16 %v487_v25, %v483_v22  ;;  %v6784_v33 = vpack.c.bf16 %v484_v28, %v480_v26  ;;  %v486_v37 = vld [vmem:[#allocation5 + $0x30] sm:$0xff]  ;;  %v489_v41 = vld [vmem:[#allocation5 + $0x48] sm:$0xff]  ;;  %v495_v48 = vld [vmem:[#allocation5 + $0x78] sm:$0xff] }
  0x6a   :  { %4433 = vmatmul.mubr.msk.f32.gmra.mrb[10].mxu1 %vm133_vm0, %v92_v44  ;;  %4546 = vmatpush1.bf16.msra.mxu0 %v6723_v45  ;;  %v6787_v39 = vpack.c.bf16 %v486_v37, %v482_v34  ;;  %v493_v43 = vld [vmem:[#allocation5 + $0x68] sm:$0xff]  ;;  %v491_v44 = vld [vmem:[#allocation5 + $0x58] sm:$0xff]  ;;  %v488_v51 = vld [vmem:[#allocation5 + $0x40] sm:$0xff] }
  0x6b   :  { %4578 = vmatpush1.bf16.msra.mxu1 %v6727_v49  ;;  %258 = vmatprep.mubr.f32.mxu0 %v7876_v0  ;;  %v6792_v46 = vpack.c.bf16 %v493_v43, %v489_v41  ;;  %v492_v52 = vld [vmem:[#allocation5 + $0x60] sm:$0xff]  ;;  %v6794_v55 = vpack.c.bf16 %v495_v48, %v491_v44  ;;  %v490_v59 = vld [vmem:[#allocation5 + $0x50] sm:$0xff]  ;;  %v497_v2 = vld [vmem:[#allocation5 + $0x88] sm:$0xff] }
  0x6c   :  { %371 = vmatprep.mubr.f32.mxu1 %v7876_v0  ;;  %4548 = vmatprep.subr.bf16.mxu0 %v6731_v53  ;;  %v6796_v56 = vpack.c.bf16 %v492_v52, %v488_v51  ;;  %v494_v61 = vld [vmem:[#allocation5 + $0x70] sm:$0xff]  ;;  %v501_v3 = vld [vmem:[#allocation5 + $0xa8] sm:$0xff]  ;;  %v499_v6 = vld [vmem:[#allocation5 + $0x98] sm:$0xff] }
  0x6d   :  { %4426 = vmatmul.mubr.msk.f32.gmra.mrb[12].mxu0 %vm133_vm0, %v93_v62  ;;  %4580 = vmatprep.subr.bf16.mxu1 %v6735_v58  ;;  %v6804_v8 = vpack.c.bf16 %v501_v3, %v497_v2  ;;  %v503_v11 = vld [vmem:[#allocation5 + $0xb8] sm:$0xff]  ;;  %v496_v12 = vld [vmem:[#allocation5 + $0x80] sm:$0xff]  ;;  %v498_v22 = vld [vmem:[#allocation5 + $0x90] sm:$0xff] }
  0x6e   :  { %4434 = vmatmul.mubr.msk.f32.gmra.mrb[12].mxu1 %vm133_vm0, %v93_v62  ;;  %4550 = vmatpush1.bf16.msra.mxu0 %v6742_v63  ;;  %v6799_v62 = vpack.c.bf16 %v494_v61, %v490_v59  ;;  %v6806_v19 = vpack.c.bf16 %v503_v11, %v499_v6  ;;  %v502_v25 = vld [vmem:[#allocation5 + $0xb0] sm:$0xff]  ;;  %v505_v28 = vld [vmem:[#allocation5 + $0xc8] sm:$0xff]  ;;  %v507_v37 = vld [vmem:[#allocation5 + $0xd8] sm:$0xff] }
  0x6f   :  { %4582 = vmatpush1.bf16.msra.mxu1 %v6746_v5  ;;  %264 = vmatprep.mubr.f32.mxu0 %v7876_v0  ;;  %8019 = vst [vmem:[#allocation15_spill] sm:$0xff] %v6804_v8  ;;  %v6811_v26 = vpack.c.bf16 %v502_v25, %v498_v22  ;;  %v509_v34 = vld [vmem:[#allocation5 + $0xe8] sm:$0xff]  ;;  %v511_v43 = vld [vmem:[#allocation5 + $0xf8] sm:$0xff]  ;;  %v504_v44 = vld [vmem:[#allocation5 + $0xc0] sm:$0xff] }
  0x70   :  { %377 = vmatprep.mubr.f32.mxu1 %v7876_v0  ;;  %4552 = vmatprep.subr.bf16.mxu0 %v6750_v9  ;;  %8020 = vst [vmem:[#allocation16_spill] sm:$0xff] %v6806_v19  ;;  %v6816_v41 = vpack.c.bf16 %v509_v34, %v505_v28  ;;  %v508_v48 = vld [vmem:[#allocation5 + $0xe0] sm:$0xff]  ;;  %v6818_v51 = vpack.c.bf16 %v511_v43, %v507_v37  ;;  %v506_v59 = vld [vmem:[#allocation5 + $0xd0] sm:$0xff]  ;;  %v513_v3 = vld [vmem:[#allocation5 + $0x108] sm:$0xff] }
  0x71   :  { %4427 = vmatmul.mubr.msk.f32.gmra.mrb[14].mxu0 %vm133_vm0, %v94_v15  ;;  %4584 = vmatprep.subr.bf16.mxu1 %v6754_v13  ;;  %8022 = vst [vmem:[#allocation18_spill] sm:$0xff] %v6811_v26  ;;  %v6820_v52 = vpack.c.bf16 %v508_v48, %v504_v44  ;;  %v510_v61 = vld [vmem:[#allocation5 + $0xf0] sm:$0xff]  ;;  %v517_v6 = vld [vmem:[#allocation5 + $0x128] sm:$0xff]  ;;  %v515_v11 = vld [vmem:[#allocation5 + $0x118] sm:$0xff] }
  0x72   :  { %4435 = vmatmul.mubr.msk.f32.gmra.mrb[14].mxu1 %vm133_vm0, %v94_v15  ;;  %4554 = vmatpush1.bf16.msra.mxu0 %v6761_v16  ;;  %v500_v15 = vld [vmem:[#allocation5 + $0xa0] sm:$0xff]  ;;  %8023 = vst [vmem:[#allocation19_spill] sm:$0xff] %v6816_v41  ;;  %8024 = vst [vmem:[#allocation20_spill] sm:$0xff] %v6818_v51  ;;  %v6823_v2 = vpack.c.bf16 %v510_v61, %v506_v59  ;;  %v514_v37 = vld [vmem:[#allocation5 + $0x110] sm:$0xff] }
  0x73   :  { %4586 = vmatpush1.bf16.msra.mxu1 %v6765_v18  ;;  %698 = vmatprep.mubr.f32.mxu0 %v7876_v0  ;;  %v6808_v21 = vpack.c.bf16 %v500_v15, %v496_v12  ;;  %8025 = vst [vmem:[#allocation21_spill] sm:$0xff] %v6820_v52  ;;  %v6828_v12 = vpack.c.bf16 %v517_v6, %v513_v3  ;;  %v519_v15 = vld [vmem:[#allocation5 + $0x138] sm:$0xff]  ;;  %v512_v22 = vld [vmem:[#allocation5 + $0x100] sm:$0xff]  ;;  %v518_v43 = vld [vmem:[#allocation5 + $0x130] sm:$0xff] }
  0x74   :  { %769 = vmatprep.mubr.f32.mxu1 %v7876_v0  ;;  %4588 = vmatprep.subr.bf16.mxu0 %v6780_v24  ;;  %8026 = vst [vmem:[#allocation22_spill] sm:$0xff] %v6823_v2  ;;  %v516_v25 = vld [vmem:[#allocation5 + $0x120] sm:$0xff]  ;;  %v6830_v28 = vpack.c.bf16 %v519_v15, %v515_v11  ;;  %v6835_v44 = vpack.c.bf16 %v518_v43, %v514_v37  ;;  %v521_v48 = vld [vmem:[#allocation5 + $0x148] sm:$0xff]  ;;  %v523_v61 = vld [vmem:[#allocation5 + $0x158] sm:$0xff] }
  0x75   :  { %699 = vmatmul.mubr.f32.vlgmr.msra.gmra.mrb[0].mxu0 %v7876_v0  ;;  %4620 = vmatprep.subr.bf16.mxu1 %v6782_v31  ;;  %8021 = vst [vmem:[#allocation17_spill] sm:$0xff] %v6808_v21  ;;  %8027 = vst [vmem:[#allocation23_spill] sm:$0xff] %v6828_v12  ;;  %v6832_v34 = vpack.c.bf16 %v516_v25, %v512_v22  ;;  %v525_v59 = vld [vmem:[#allocation5 + $0x168] sm:$0xff]  ;;  %v527_v6 = vld [vmem:[#allocation5 + $0x178] sm:$0xff] }
  0x76   :  { %770 = vmatmul.mubr.f32.vlgmr.msra.gmra.mrb[0].mxu1 %v7876_v0  ;;  %859 = vmatprep.mubr.f32.mxu0 %v7876_v0  ;;  %8028 = vst [vmem:[#allocation24_spill] sm:$0xff] %v6830_v28  ;;  %8030 = vst [vmem:[#allocation26_spill] sm:$0xff] %v6835_v44  ;;  %v6840_v3 = vpack.c.bf16 %v525_v59, %v521_v48  ;;  %v520_v11 = vld [vmem:[#allocation5 + $0x140] sm:$0xff]  ;;  %v6842_v22 = vpack.c.bf16 %v527_v6, %v523_v61  ;;  %v522_v37 = vld [vmem:[#allocation5 + $0x150] sm:$0xff] }
  0x77   :  { %930 = vmatprep.mubr.f32.mxu1 %v7876_v0  ;;  %4590 = vmatpush1.bf16.msra.mxu0 %v6784_v33  ;;  %8029 = vst [vmem:[#allocation25_spill] sm:$0xff] %v6832_v34  ;;  %v524_v15 = vld [vmem:[#allocation5 + $0x160] sm:$0xff]  ;;  %v526_v43 = vld [vmem:[#allocation5 + $0x170] sm:$0xff]  ;;  %v533_v48 = vld [vmem:[#allocation5 + $0x1a8] sm:$0xff] }
  0x78   :  { %4622 = vmatpush1.bf16.msra.mxu1 %v6787_v39  ;;  %4592 = vmatprep.subr.bf16.mxu0 %v6792_v46  ;;  %8031 = vst [vmem:[#allocation27_spill] sm:$0xff] %v6840_v3  ;;  %8032 = vst [vmem:[#allocation28_spill] sm:$0xff] %v6842_v22  ;;  %v6844_v25 = vpack.c.bf16 %v524_v15, %v520_v11  ;;  %v6847_v0 = vpack.c.bf16 %v526_v43, %v522_v37  ;;  %v531_v59 = vld [vmem:[#allocation5 + $0x198] sm:$0xff]  ;;  %v528_v6 = vld [vmem:[#allocation5 + $0x180] sm:$0xff] }
  0x79   :  { %4624 = vmatprep.subr.bf16.mxu1 %v6794_v55  ;;  %v535_v61 = vld [vmem:[#allocation5 + $0x1b8] sm:$0xff]  ;;  %v532_v11 = vld [vmem:[#allocation5 + $0x1a0] sm:$0xff]  ;;  %v530_v37 = vld [vmem:[#allocation5 + $0x190] sm:$0xff] }
  0x7a   :  { %8033 = vst [vmem:[#allocation29_spill] sm:$0xff] %v6844_v25  ;;  %8034 = vst [vmem:[#allocation30_spill] sm:$0xff] %v6847_v0  ;;  %v6854_v15 = vpack.c.bf16 %v535_v61, %v531_v59  ;;  %v534_v43 = vld [vmem:[#allocation5 + $0x1b0] sm:$0xff]  ;;  %v543_v59 = vld [vmem:[#allocation5 + $0x1f8] sm:$0xff] }
  0x7b   :  { %4594 = vmatpush1.bf16.msra.mxu0 %v6796_v56  ;;  %v536_v61 = vld [vmem:[#allocation5 + $0x1c0] sm:$0xff] }
  0x7c   :  { %4626 = vmatpush1.bf16.msra.mxu1 %v6799_v62  ;;  %4596 = vmatprep.subr.bf16.mxu0 %v6804_v8  ;;  %8036 = vst [vmem:[#allocation32_spill] sm:$0xff] %v6854_v15 }
  0x7d   :  { %4628 = vmatprep.subr.bf16.mxu1 %v6806_v19 }
  0x7f   :  { %4598 = vmatpush1.bf16.msra.mxu0 %v6808_v21 }
  0x80   :  { %4630 = vmatpush1.bf16.msra.mxu1 %v6811_v26  ;;  %4600 = vmatprep.subr.bf16.mxu0 %v6816_v41 }
  0x81   :  { %4632 = vmatprep.subr.bf16.mxu1 %v6818_v51 }
  0x83   :  { %4602 = vmatpush1.bf16.msra.mxu0 %v6820_v52 }
  0x84   :  { %4634 = vmatpush1.bf16.msra.mxu1 %v6823_v2  ;;  %4604 = vmatprep.subr.bf16.mxu0 %v6828_v12 }
  0x85   :  { %4636 = vmatprep.subr.bf16.mxu1 %v6830_v28  ;;  %v6856_v28 = vpack.c.bf16 %v532_v11, %v528_v6  ;;  %v540_v6 = vld [vmem:[#allocation5 + $0x1e0] sm:$0xff] }
  0x87   :  { %4606 = vmatpush1.bf16.msra.mxu0 %v6832_v34  ;;  %8037 = vst [vmem:[#allocation33_spill] sm:$0xff] %v6856_v28 }
  0x88   :  { %4638 = vmatpush1.bf16.msra.mxu1 %v6835_v44  ;;  %4608 = vmatprep.subr.bf16.mxu0 %v6840_v3  ;;  %v529_v44 = vld [vmem:[#allocation5 + $0x188] sm:$0xff]  ;;  %v6868_v3 = vpack.c.bf16 %v540_v6, %v536_v61 }
  0x89   :  { %4640 = vmatprep.subr.bf16.mxu1 %v6842_v22  ;;  %v6852_v34 = vpack.c.bf16 %v533_v48, %v529_v44  ;;  %v6859_v22 = vpack.c.bf16 %v534_v43, %v530_v37  ;;  %v541_v44 = vld [vmem:[#allocation5 + $0x1e8] sm:$0xff]  ;;  %v539_v48 = vld [vmem:[#allocation5 + $0x1d8] sm:$0xff]  ;;  %v538_v37 = vld [vmem:[#allocation5 + $0x1d0] sm:$0xff] }
  0x8a   :  { %v6866_v11 = vpack.c.bf16 %v543_v59, %v539_v48  ;;  %8041 = vst [vmem:[#allocation37_spill] sm:$0xff] %v6868_v3  ;;  %v542_v43 = vld [vmem:[#allocation5 + $0x1f0] sm:$0xff]  ;;  %v111_v59 = vld [vmem:[%s7868_s2] sm:$0xf] }
  0x8b   :  { %4610 = vmatpush1.bf16.msra.mxu0 %v6844_v25  ;;  %8035 = vst [vmem:[#allocation31_spill] sm:$0xff] %v6852_v34  ;;  %8038 = vst [vmem:[#allocation34_spill] sm:$0xff] %v6859_v22 }
  0x8c   :  { %4642 = vmatpush1.bf16.msra.mxu1 %v6847_v0  ;;  %4612 = vmatprep.subr.bf16.mxu0 %v6852_v34  ;;  %v537_v0 = vld [vmem:[#allocation5 + $0x1c8] sm:$0xff]  ;;  %8040 = vst [vmem:[#allocation36_spill] sm:$0xff] %v6866_v11 }
  0x8d   :  { %4644 = vmatprep.subr.bf16.mxu1 %v6854_v15  ;;  %v6864_v25 = vpack.c.bf16 %v541_v44, %v537_v0  ;;  %v6871_v15 = vpack.c.bf16 %v542_v43, %v538_v37  ;;  %v113_v0 = vlaneseq }
  0x8f   :  { %4614 = vmatpush1.bf16.msra.mxu0 %v6856_v28  ;;  %8039 = vst [vmem:[#allocation35_spill] sm:$0xff] %v6864_v25  ;;  %8042 = vst [vmem:[#allocation38_spill] sm:$0xff] %v6871_v15  ;;  %v6876_v44 = vshrl.u32 %v113_v0, 7 }
  0x90   :  { %4646 = vmatpush1.bf16.msra.mxu1 %v6859_v22  ;;  %4616 = vmatprep.subr.bf16.mxu0 %v6864_v25 }
  0x91   :  { %4648 = vmatprep.subr.bf16.mxu1 %v6866_v11  ;;  %v7906_v48 = vsub.s32 0, %v6876_v44  ;;  %v7909_v61 = vsub.s32 1, %v6876_v44  ;;  %v7910_v6 = vsub.s32 2, %v6876_v44  ;;  %v7923_v34 = vsub.s32 3, %v6876_v44 }
  0x93   :  { %4618 = vmatpush1.bf16.msra.mxu0 %v6868_v3  ;;  %v6886_v37 = vrot.slane %v111_v59, %v7906_v48  ;;  %v6890_v43 = vrot.slane %v111_v59, %v7909_v61  ;;  %v6894_v0 = vrot.slane %v111_v59, %v7910_v6  ;;  %v6902_v61 = vrot.slane %v111_v59, %v7923_v34 }
  0x94   :  { %4650 = vmatpush1.bf16.msra.mxu1 %v6871_v15 }
  0x95   :  { %8043 = vst [vmem:[#allocation39_spill] sm:$0xff] %v6886_v37  ;;  %8044 = vst [vmem:[#allocation40_spill] sm:$0xff] %v6890_v43 }
  0x96   :  { %8045 = vst [vmem:[#allocation41_spill] sm:$0xff] %v6894_v0  ;;  %8046 = vst [vmem:[#allocation42_spill] sm:$0xff] %v6902_v61 }
 0x148   :  { %v700_v15 = vpop.f32.mrb[0].mxu0 }
 0x149   :  { %v6059_v3 = vadd.f32 %v700_v15, %v6886_v37  ;;  %v771_v11 = vpop.f32.mrb[0].mxu1  ;;  %v702_v25 = vpop.f32.mrb[1].mxu0 }
 0x14a   :  { %v6060_v22 = vadd.f32 %v702_v25, %v6890_v43  ;;  %v773_v28 = vpop.f32.mrb[1].mxu1  ;;  %v6075_v48 = vadd.f32 %v771_v11, %v6894_v0 }
 0x14b   :  { %6188 = vtanh.f32 %v6059_v3  ;;  %v6076_v6 = vadd.f32 %v773_v28, %v6902_v61  ;;  %v547_v28 = vld [vmem:[#allocation7 + $0x18] sm:$0xff] }
 0x14c   :  { %6190 = vtanh.f32 %v6060_v22 }
 0x14d   :  { %6192 = vtanh.f32 %v6075_v48 }
 0x14e   :  { %6194 = vtanh.f32 %v6076_v6 }
 0x155   :  { %v6189_v12 = vpop.eup %6188 }
 0x156   :  { %v781_v15 = vmul.f32 0.5, %v6189_v12  ;;  %v6191_v37 = vpop.eup %6190  ;;  %v8048_v12 = vmov 0.0  }
 0x157   :  { %v784_v52 = vmul.f32 0.5, %v6191_v37  ;;  %v6193_v25 = vpop.eup %6192  ;;  %v551_v37 = vld [vmem:[#allocation7 + $0x38] sm:$0xff] }
 0x158   :  { %v782_v2 = vadd.f32 0.5, %v781_v15  ;;  %v6195_v22 = vpop.eup %6194  ;;  %v548_v15 = vld [vmem:[#allocation7 + $0x20] sm:$0xff] }
 0x159   :  { %v785_v3 = vadd.f32 0.5, %v784_v52  ;;  %v788_v48 = vmul.f32 0.5, %v6195_v22  ;;  %v545_v52 = vld [vmem:[#allocation7 + $0x8] sm:$0xff] }
 0x15a   :  { %v791_v43 = vmul.f32 %v6193_v25, %v782_v2  ;;  %v549_v2 = vld [vmem:[#allocation7 + $0x28] sm:$0xff]  ;;  %v6916_v25 = vpack.c.bf16 %v551_v37, %v547_v28  ;;  %v559_v28 = vld [vmem:[#allocation7 + $0x78] sm:$0xff]  ;;  %v552_v37 = vld [vmem:[#allocation7 + $0x40] sm:$0xff] }
 0x15b   :  { %v790_v11 = vmul.f32 0.0, %v785_v3  ;;  %v789_v59 = vadd.f32 0.5, %v788_v48  ;;  %v6914_v6 = vpack.c.bf16 %v549_v2, %v545_v52  ;;  %v546_v3 = vld [vmem:[#allocation7 + $0x10] sm:$0xff]  ;;  %v553_v48 = vld [vmem:[#allocation7 + $0x48] sm:$0xff]  ;;  %v555_v52 = vld [vmem:[#allocation7 + $0x58] sm:$0xff] }
 0x15c   :  { %8050 = vst [vmem:[#allocation45_spill] sm:$0xff] %v6916_v25  ;;  %4684 = vmatprep.subr.bf16.mxu1 %v6916_v25 }
 0x15d   :  { %v6905_v0 = vadd.f32 %v791_v43, %v790_v11  ;;  %8049 = vst [vmem:[#allocation44_spill] sm:$0xff] %v6914_v6  ;;  %v544_v43 = vld [vmem:[#allocation7] sm:$0xff]  ;;  %v550_v11 = vld [vmem:[#allocation7 + $0x30] sm:$0xff]  ;;  %4652 = vmatprep.subr.bf16.mxu0 %v6914_v6 }
 0x15e   :  { %v6921_v22 = vpack.c.bf16 %v550_v11, %v546_v3  ;;  %v554_v3 = vld [vmem:[#allocation7 + $0x50] sm:$0xff] }
 0x15f   :  { %8047 = vst [vmem:[#allocation43_spill] sm:$0xff] %v6905_v0  ;;  %6196 = vtanh.f32 %v6905_v0  ;;  %v558_v11 = vld [vmem:[#allocation7 + $0x70] sm:$0xff] }
 0x160   :  { %8052 = vst [vmem:[#allocation47_spill] sm:$0xff] %v6921_v22  ;;  %v6933_v61 = vpack.c.bf16 %v558_v11, %v554_v3  ;;  %v562_v3 = vld [vmem:[#allocation7 + $0x90] sm:$0xff] }
 0x161   :  { %v566_v11 = vld [vmem:[#allocation7 + $0xb0] sm:$0xff] }
 0x162   :  { %8056 = vst [vmem:[#allocation51_spill] sm:$0xff] %v6933_v61 }
 0x169   :  { %v6197_v34 = vpop.eup %6196 }
 0x16a   :  { %v6908_v51 = vmul.f32 %v6197_v34, %v789_v59  ;;  %v6918_v34 = vpack.c.bf16 %v548_v15, %v544_v43  ;;  %v557_v59 = vld [vmem:[#allocation7 + $0x68] sm:$0xff]  ;;  %v556_v43 = vld [vmem:[#allocation7 + $0x60] sm:$0xff]  ;;  %v6928_v15 = vpack.c.bf16 %v559_v28, %v555_v52  ;;  %v567_v52 = vld [vmem:[#allocation7 + $0xb8] sm:$0xff] }
 0x16b   :  { %v6926_v2 = vpack.c.bf16 %v557_v59, %v553_v48  ;;  %v6930_v0 = vpack.c.bf16 %v556_v43, %v552_v37  ;;  %v565_v48 = vld [vmem:[#allocation7 + $0xa8] sm:$0xff]  ;;  %v563_v59 = vld [vmem:[#allocation7 + $0x98] sm:$0xff]  ;;  %v560_v28 = vld [vmem:[#allocation7 + $0x80] sm:$0xff] }
 0x16c   :  { %860 = vmatmul.mubr.f32.vlgmr.msra.gmra.mrb[16].mxu0 %v6908_v51  ;;  %931 = vmatmul.mubr.f32.vlgmr.msra.gmra.mrb[16].mxu1 %v6908_v51  ;;  %8051 = vst [vmem:[#allocation46_spill] sm:$0xff] %v6918_v34  ;;  %8054 = vst [vmem:[#allocation49_spill] sm:$0xff] %v6928_v15  ;;  %v564_v37 = vld [vmem:[#allocation7 + $0xa0] sm:$0xff]  ;;  %v6940_v43 = vpack.c.bf16 %v567_v52, %v563_v59  ;;  %v575_v59 = vld [vmem:[#allocation7 + $0xf8] sm:$0xff] }
 0x16d   :  { %1016 = vmatprep.mubr.f32.mxu0 %v8048_v12  ;;  %1087 = vmatprep.mubr.f32.mxu1 %v8048_v12  ;;  %8053 = vst [vmem:[#allocation48_spill] sm:$0xff] %v6926_v2  ;;  %8055 = vst [vmem:[#allocation50_spill] sm:$0xff] %v6930_v0  ;;  %v6942_v25 = vpack.c.bf16 %v564_v37, %v560_v28  ;;  %v568_v52 = vld [vmem:[#allocation7 + $0xc0] sm:$0xff] }
 0x16e   :  { %4654 = vmatpush1.bf16.msra.mxu0 %v6918_v34  ;;  %4686 = vmatpush1.bf16.msra.mxu1 %v6921_v22  ;;  %v561_v22 = vld [vmem:[#allocation7 + $0x88] sm:$0xff]  ;;  %8058 = vst [vmem:[#allocation53_spill] sm:$0xff] %v6940_v43  ;;  %v572_v28 = vld [vmem:[#allocation7 + $0xe0] sm:$0xff] }
 0x16f   :  { %4656 = vmatprep.subr.bf16.mxu0 %v6926_v2  ;;  %4688 = vmatprep.subr.bf16.mxu1 %v6928_v15  ;;  %v6938_v34 = vpack.c.bf16 %v565_v48, %v561_v22  ;;  %8059 = vst [vmem:[#allocation54_spill] sm:$0xff] %v6942_v25  ;;  %v6945_v15 = vpack.c.bf16 %v566_v11, %v562_v3  ;;  %v573_v22 = vld [vmem:[#allocation7 + $0xe8] sm:$0xff]  ;;  %v571_v48 = vld [vmem:[#allocation7 + $0xd8] sm:$0xff]  ;;  %v570_v3 = vld [vmem:[#allocation7 + $0xd0] sm:$0xff] }
 0x170   :  { %v6952_v37 = vpack.c.bf16 %v575_v59, %v571_v48  ;;  %v6954_v2 = vpack.c.bf16 %v572_v28, %v568_v52  ;;  %v574_v11 = vld [vmem:[#allocation7 + $0xf0] sm:$0xff]  ;;  %v583_v48 = vld [vmem:[#allocation7 + $0x138] sm:$0xff]  ;;  %v576_v59 = vld [vmem:[#allocation7 + $0x100] sm:$0xff] }
 0x171   :  { %8057 = vst [vmem:[#allocation52_spill] sm:$0xff] %v6938_v34  ;;  %8060 = vst [vmem:[#allocation55_spill] sm:$0xff] %v6945_v15  ;;  %v580_v52 = vld [vmem:[#allocation7 + $0x120] sm:$0xff] }
 0x172   :  { %4658 = vmatpush1.bf16.msra.mxu0 %v6930_v0  ;;  %4690 = vmatpush1.bf16.msra.mxu1 %v6933_v61  ;;  %v569_v61 = vld [vmem:[#allocation7 + $0xc8] sm:$0xff]  ;;  %8062 = vst [vmem:[#allocation57_spill] sm:$0xff] %v6952_v37  ;;  %8063 = vst [vmem:[#allocation58_spill] sm:$0xff] %v6954_v2 }
 0x173   :  { %4660 = vmatprep.subr.bf16.mxu0 %v6938_v34  ;;  %4692 = vmatprep.subr.bf16.mxu1 %v6940_v43  ;;  %v6950_v0 = vpack.c.bf16 %v573_v22, %v569_v61  ;;  %v6957_v43 = vpack.c.bf16 %v574_v11, %v570_v3  ;;  %v581_v61 = vld [vmem:[#allocation7 + $0x128] sm:$0xff]  ;;  %v579_v22 = vld [vmem:[#allocation7 + $0x118] sm:$0xff]  ;;  %v6966_v34 = vpack.c.bf16 %v580_v52, %v576_v59  ;;  %v578_v3 = vld [vmem:[#allocation7 + $0x110] sm:$0xff] }
 0x174   :  { %v6964_v28 = vpack.c.bf16 %v583_v48, %v579_v22  ;;  %v582_v11 = vld [vmem:[#allocation7 + $0x130] sm:$0xff]  ;;  %v591_v22 = vld [vmem:[#allocation7 + $0x178] sm:$0xff]  ;;  %v584_v48 = vld [vmem:[#allocation7 + $0x140] sm:$0xff] }
 0x175   :  { %8061 = vst [vmem:[#allocation56_spill] sm:$0xff] %v6950_v0  ;;  %8064 = vst [vmem:[#allocation59_spill] sm:$0xff] %v6957_v43  ;;  %v588_v59 = vld [vmem:[#allocation7 + $0x160] sm:$0xff] }
 0x176   :  { %4662 = vmatpush1.bf16.msra.mxu0 %v6942_v25  ;;  %4694 = vmatpush1.bf16.msra.mxu1 %v6945_v15  ;;  %v577_v15 = vld [vmem:[#allocation7 + $0x108] sm:$0xff]  ;;  %8066 = vst [vmem:[#allocation61_spill] sm:$0xff] %v6964_v28  ;;  %8067 = vst [vmem:[#allocation62_spill] sm:$0xff] %v6966_v34 }
 0x177   :  { %4664 = vmatprep.subr.bf16.mxu0 %v6950_v0  ;;  %4696 = vmatprep.subr.bf16.mxu1 %v6952_v37  ;;  %v6962_v25 = vpack.c.bf16 %v581_v61, %v577_v15  ;;  %v6969_v37 = vpack.c.bf16 %v582_v11, %v578_v3  ;;  %v589_v15 = vld [vmem:[#allocation7 + $0x168] sm:$0xff]  ;;  %v587_v61 = vld [vmem:[#allocation7 + $0x158] sm:$0xff]  ;;  %v6978_v0 = vpack.c.bf16 %v588_v59, %v584_v48  ;;  %v586_v3 = vld [vmem:[#allocation7 + $0x150] sm:$0xff] }
 0x178   :  { %v6976_v52 = vpack.c.bf16 %v591_v22, %v587_v61  ;;  %v590_v11 = vld [vmem:[#allocation7 + $0x170] sm:$0xff]  ;;  %v599_v61 = vld [vmem:[#allocation7 + $0x1b8] sm:$0xff]  ;;  %v592_v22 = vld [vmem:[#allocation7 + $0x180] sm:$0xff] }
 0x179   :  { %8065 = vst [vmem:[#allocation60_spill] sm:$0xff] %v6962_v25  ;;  %8068 = vst [vmem:[#allocation63_spill] sm:$0xff] %v6969_v37  ;;  %v596_v48 = vld [vmem:[#allocation7 + $0x1a0] sm:$0xff] }
 0x17a   :  { %4666 = vmatpush1.bf16.msra.mxu0 %v6954_v2  ;;  %4698 = vmatpush1.bf16.msra.mxu1 %v6957_v43  ;;  %v585_v43 = vld [vmem:[#allocation7 + $0x148] sm:$0xff]  ;;  %8070 = vst [vmem:[#allocation65_spill] sm:$0xff] %v6976_v52  ;;  %8071 = vst [vmem:[#allocation66_spill] sm:$0xff] %v6978_v0 }
 0x17b   :  { %4668 = vmatprep.subr.bf16.mxu0 %v6962_v25  ;;  %4700 = vmatprep.subr.bf16.mxu1 %v6964_v28  ;;  %v6974_v2 = vpack.c.bf16 %v589_v15, %v585_v43  ;;  %v6981_v28 = vpack.c.bf16 %v590_v11, %v586_v3  ;;  %v597_v43 = vld [vmem:[#allocation7 + $0x1a8] sm:$0xff]  ;;  %v595_v15 = vld [vmem:[#allocation7 + $0x198] sm:$0xff]  ;;  %v6990_v25 = vpack.c.bf16 %v596_v48, %v592_v22  ;;  %v594_v3 = vld [vmem:[#allocation7 + $0x190] sm:$0xff] }
 0x17c   :  { %v6988_v59 = vpack.c.bf16 %v599_v61, %v595_v15  ;;  %v598_v11 = vld [vmem:[#allocation7 + $0x1b0] sm:$0xff]  ;;  %v607_v15 = vld [vmem:[#allocation7 + $0x1f8] sm:$0xff]  ;;  %v600_v61 = vld [vmem:[#allocation7 + $0x1c0] sm:$0xff] }
 0x17d   :  { %8069 = vst [vmem:[#allocation64_spill] sm:$0xff] %v6974_v2  ;;  %8072 = vst [vmem:[#allocation67_spill] sm:$0xff] %v6981_v28  ;;  %v604_v22 = vld [vmem:[#allocation7 + $0x1e0] sm:$0xff] }
 0x17e   :  { %4670 = vmatpush1.bf16.msra.mxu0 %v6966_v34  ;;  %4702 = vmatpush1.bf16.msra.mxu1 %v6969_v37  ;;  %v593_v37 = vld [vmem:[#allocation7 + $0x188] sm:$0xff]  ;;  %8074 = vst [vmem:[#allocation69_spill] sm:$0xff] %v6988_v59  ;;  %8075 = vst [vmem:[#allocation70_spill] sm:$0xff] %v6990_v25 }
 0x17f   :  { %4672 = vmatprep.subr.bf16.mxu0 %v6974_v2  ;;  %4704 = vmatprep.subr.bf16.mxu1 %v6976_v52  ;;  %v6986_v34 = vpack.c.bf16 %v597_v43, %v593_v37  ;;  %v6993_v52 = vpack.c.bf16 %v598_v11, %v594_v3  ;;  %v605_v37 = vld [vmem:[#allocation7 + $0x1e8] sm:$0xff]  ;;  %v603_v43 = vld [vmem:[#allocation7 + $0x1d8] sm:$0xff]  ;;  %v7002_v2 = vpack.c.bf16 %v604_v22, %v600_v61  ;;  %v602_v3 = vld [vmem:[#allocation7 + $0x1d0] sm:$0xff]  ;;  %v8085_v22 = vsub.s32 2, %v6876_v44 }
 0x180   :  { %v7000_v48 = vpack.c.bf16 %v607_v15, %v603_v43  ;;  %v606_v11 = vld [vmem:[#allocation7 + $0x1f0] sm:$0xff]  ;;  %v8083_v15 = vsub.s32 1, %v6876_v44 }
 0x181   :  { %8073 = vst [vmem:[#allocation68_spill] sm:$0xff] %v6986_v34  ;;  %8076 = vst [vmem:[#allocation71_spill] sm:$0xff] %v6993_v52 }
 0x182   :  { %4674 = vmatpush1.bf16.msra.mxu0 %v6978_v0  ;;  %4706 = vmatpush1.bf16.msra.mxu1 %v6981_v28  ;;  %v601_v28 = vld [vmem:[#allocation7 + $0x1c8] sm:$0xff]  ;;  %8078 = vst [vmem:[#allocation73_spill] sm:$0xff] %v7000_v48  ;;  %8079 = vst [vmem:[#allocation74_spill] sm:$0xff] %v7002_v2 }
 0x183   :  { %4676 = vmatprep.subr.bf16.mxu0 %v6986_v34  ;;  %4708 = vmatprep.subr.bf16.mxu1 %v6988_v59  ;;  %v6998_v0 = vpack.c.bf16 %v605_v37, %v601_v28  ;;  %v7005_v59 = vpack.c.bf16 %v606_v11, %v602_v3  ;;  %v608_v28 = vld [vmem:[%s7872_s6] sm:$0xf]  ;;  %v8081_v37 = vsub.s32 0, %v6876_v44 }
 0x184   :  { %v7021_v61 = vrot.slane %v608_v28, %v8083_v15  ;;  %v7025_v3 = vrot.slane %v608_v28, %v8085_v22  ;;  %v8086_v15 = vsub.s32 3, %v6876_v44 }
 0x185   :  { %8077 = vst [vmem:[#allocation72_spill] sm:$0xff] %v6998_v0  ;;  %8080 = vst [vmem:[#allocation75_spill] sm:$0xff] %v7005_v59  ;;  %v7017_v43 = vrot.slane %v608_v28, %v8081_v37 }
 0x186   :  { %4678 = vmatpush1.bf16.msra.mxu0 %v6990_v25  ;;  %4710 = vmatpush1.bf16.msra.mxu1 %v6993_v52  ;;  %8084 = vst [vmem:[#allocation77_spill] sm:$0xff] %v7021_v61 }
 0x187   :  { %4680 = vmatprep.subr.bf16.mxu0 %v6998_v0  ;;  %4712 = vmatprep.subr.bf16.mxu1 %v7000_v48  ;;  %8082 = vst [vmem:[#allocation76_spill] sm:$0xff] %v7017_v43  ;;  %v7032_v0 = vrot.slane %v608_v28, %v8086_v15  ;;  %v8095_v15 = vld [vmem:[#allocation27_spill] sm:$0xff] }
 0x18a   :  { %4682 = vmatpush1.bf16.msra.mxu0 %v7002_v2  ;;  %4714 = vmatpush1.bf16.msra.mxu1 %v7005_v59 }
 0x18b   :  { %4716 = vmatprep.subr.bf16.mxu0 %v6624_v29  ;;  %4748 = vmatprep.subr.bf16.mxu1 %v6626_v30 }
 0x23f   :  { %v861_v11 = vpop.f32.mrb[16].mxu0  ;;  %v932_v29 = vpop.f32.mrb[16].mxu1 }
 0x240   :  { %v862_v30 = vadd.f32 %v861_v11, %v7017_v43  ;;  %v863_v59 = vpop.f32.mrb[17].mxu0  ;;  %v934_v2 = vpop.f32.mrb[17].mxu1  ;;  %v933_v37 = vadd.f32 %v932_v29, %v7025_v3 }
 0x241   :  { %v864_v48 = vadd.f32 %v863_v59, %v7021_v61  ;;  %v935_v22 = vadd.f32 %v934_v2, %v7032_v0  ;;  %v8092_v2 = vld [vmem:[#allocation24_spill] sm:$0xff] }
 0x242   :  { %6198 = vtanh.f32 %v862_v30 }
 0x243   :  { %6200 = vtanh.f32 %v864_v48 }
 0x244   :  { %6202 = vtanh.f32 %v933_v37 }
 0x245   :  { %6204 = vtanh.f32 %v935_v22  ;;  %v8096_v22 = vld [vmem:[#allocation28_spill] sm:$0xff] }
 0x24c   :  { %v6199_v52 = vpop.eup %6198 }
 0x24d   :  { %v938_v25 = vmul.f32 0.5, %v6199_v52  ;;  %v6201_v34 = vpop.eup %6200  ;;  %v8093_v52 = vld [vmem:[#allocation25_spill] sm:$0xff] }
 0x24e   :  { %v941_v11 = vmul.f32 0.5, %v6201_v34  ;;  %v6203_v43 = vpop.eup %6202  ;;  %v8091_v34 = vld [vmem:[#allocation23_spill] sm:$0xff] }
 0x24f   :  { %v939_v6 = vadd.f32 0.5, %v938_v25  ;;  %v6205_v29 = vpop.eup %6204  ;;  %v8090_v25 = vld [vmem:[#allocation22_spill] sm:$0xff] }
 0x250   :  { %v942_v41 = vadd.f32 0.5, %v941_v11  ;;  %v945_v44 = vmul.f32 0.5, %v6205_v29  ;;  %v8097_v11 = vld [vmem:[#allocation29_spill] sm:$0xff]  ;;  %v8100_v29 = vld [vmem:[#allocation32_spill] sm:$0xff] }
 0x251   :  { %v948_v59 = vmul.f32 %v6203_v43, %v939_v6  ;;  %v8089_v6 = vld [vmem:[#allocation21_spill] sm:$0xff]  ;;  %v8094_v43 = vld [vmem:[#allocation26_spill] sm:$0xff] }
 0x252   :  { %v947_v30 = vmul.f32 0.0, %v942_v41  ;;  %v946_v48 = vadd.f32 0.5, %v945_v44  ;;  %v8087_v41 = vld [vmem:[#allocation19_spill] sm:$0xff]  ;;  %v8101_v44 = vld [vmem:[#allocation33_spill] sm:$0xff] }
 0x254   :  { %v7035_v61 = vadd.f32 %v948_v59, %v947_v30  ;;  %v8098_v59 = vld [vmem:[#allocation30_spill] sm:$0xff]  ;;  %v8099_v30 = vld [vmem:[#allocation31_spill] sm:$0xff] }
 0x256   :  { %6206 = vtanh.f32 %v7035_v61 }
 0x260   :  { %v6207_v28 = vpop.eup %6206 }
 0x261   :  { %v951_v37 = vmul.f32 %v6207_v28, %v946_v48  ;;  %v8102_v48 = vld [vmem:[#allocation34_spill] sm:$0xff]  ;;  %v8103_v28 = vld [vmem:[#allocation35_spill] sm:$0xff] }
 0x263   :  { %1017 = vmatmul.mubr.f32.vlgmr.msra.gmra.mrb[18].mxu0 %v951_v37  ;;  %1088 = vmatmul.mubr.f32.vlgmr.msra.gmra.mrb[18].mxu1 %v951_v37  ;;  %v8104_v37 = vld [vmem:[#allocation36_spill] sm:$0xff] }
 0x264   :  { %4718 = vmatpush1.bf16.msra.mxu0 %v6631_v35  ;;  %4750 = vmatpush1.bf16.msra.mxu1 %v6634_v38 }
 0x265   :  { %4720 = vmatprep.subr.bf16.mxu0 %v6637_v42  ;;  %4752 = vmatprep.subr.bf16.mxu1 %v6643_v47 }
 0x266   :  { %1162 = vmatprep.mubr.f32.mxu0 %v8048_v12  ;;  %1233 = vmatprep.mubr.f32.mxu1 %v8048_v12 }
 0x268   :  { %4722 = vmatpush1.bf16.msra.mxu0 %v6647_v50  ;;  %4754 = vmatpush1.bf16.msra.mxu1 %v6651_v54 }
 0x269   :  { %4724 = vmatprep.subr.bf16.mxu0 %v6655_v57  ;;  %4756 = vmatprep.subr.bf16.mxu1 %v6659_v60 }
 0x26c   :  { %4726 = vmatpush1.bf16.msra.mxu0 %v6666_v1  ;;  %4758 = vmatpush1.bf16.msra.mxu1 %v6670_v4 }
 0x26d   :  { %4728 = vmatprep.subr.bf16.mxu0 %v6674_v7  ;;  %4760 = vmatprep.subr.bf16.mxu1 %v6678_v10 }
 0x270   :  { %4730 = vmatpush1.bf16.msra.mxu0 %v6685_v14  ;;  %4762 = vmatpush1.bf16.msra.mxu1 %v6689_v17 }
 0x271   :  { %4732 = vmatprep.subr.bf16.mxu0 %v6693_v20  ;;  %4764 = vmatprep.subr.bf16.mxu1 %v6697_v23 }
 0x274   :  { %4734 = vmatpush1.bf16.msra.mxu0 %v6704_v27  ;;  %4766 = vmatpush1.bf16.msra.mxu1 %v6708_v32 }
 0x275   :  { %4736 = vmatprep.subr.bf16.mxu0 %v6712_v36  ;;  %4768 = vmatprep.subr.bf16.mxu1 %v6716_v40 }
 0x278   :  { %4738 = vmatpush1.bf16.msra.mxu0 %v6723_v45  ;;  %4770 = vmatpush1.bf16.msra.mxu1 %v6727_v49 }
 0x279   :  { %4740 = vmatprep.subr.bf16.mxu0 %v6731_v53  ;;  %4772 = vmatprep.subr.bf16.mxu1 %v6735_v58 }
 0x27c   :  { %4742 = vmatpush1.bf16.msra.mxu0 %v6742_v63  ;;  %4774 = vmatpush1.bf16.msra.mxu1 %v6746_v5 }
 0x27d   :  { %4744 = vmatprep.subr.bf16.mxu0 %v6750_v9  ;;  %4776 = vmatprep.subr.bf16.mxu1 %v6754_v13 }
 0x280   :  { %4746 = vmatpush1.bf16.msra.mxu0 %v6761_v16  ;;  %4778 = vmatpush1.bf16.msra.mxu1 %v6765_v18 }
 0x281   :  { %4780 = vmatprep.subr.bf16.mxu0 %v6780_v24  ;;  %4812 = vmatprep.subr.bf16.mxu1 %v6782_v31 }
 0x283   :  { %1163 = vmatmul.mubr.f32.vlgmr.msra.gmra.mrb[2].mxu0 %v6908_v51  ;;  %1234 = vmatmul.mubr.f32.vlgmr.msra.gmra.mrb[2].mxu1 %v6908_v51  ;;  %v8088_v51 = vld [vmem:[#allocation20_spill] sm:$0xff] }
 0x284   :  { %4782 = vmatpush1.bf16.msra.mxu0 %v6784_v33  ;;  %4814 = vmatpush1.bf16.msra.mxu1 %v6787_v39 }
 0x285   :  { %4784 = vmatprep.subr.bf16.mxu0 %v6792_v46  ;;  %4816 = vmatprep.subr.bf16.mxu1 %v6794_v55 }
 0x286   :  { %1323 = vmatprep.mubr.f32.mxu0 %v8048_v12  ;;  %1394 = vmatprep.mubr.f32.mxu1 %v8048_v12 }
 0x288   :  { %4786 = vmatpush1.bf16.msra.mxu0 %v6796_v56  ;;  %4818 = vmatpush1.bf16.msra.mxu1 %v6799_v62 }
 0x289   :  { %4788 = vmatprep.subr.bf16.mxu0 %v6804_v8  ;;  %4820 = vmatprep.subr.bf16.mxu1 %v6806_v19 }
 0x28c   :  { %4790 = vmatpush1.bf16.msra.mxu0 %v6808_v21  ;;  %4822 = vmatpush1.bf16.msra.mxu1 %v6811_v26 }
 0x28d   :  { %4792 = vmatprep.subr.bf16.mxu0 %v8087_v41  ;;  %4824 = vmatprep.subr.bf16.mxu1 %v8088_v51 }
 0x290   :  { %4794 = vmatpush1.bf16.msra.mxu0 %v8089_v6  ;;  %4826 = vmatpush1.bf16.msra.mxu1 %v8090_v25 }
 0x291   :  { %4796 = vmatprep.subr.bf16.mxu0 %v8091_v34  ;;  %4828 = vmatprep.subr.bf16.mxu1 %v8092_v2  ;;  %v8110_v34 = vld [vmem:[#allocation40_spill] sm:$0xff] }
 0x294   :  { %4798 = vmatpush1.bf16.msra.mxu0 %v8093_v52  ;;  %4830 = vmatpush1.bf16.msra.mxu1 %v8094_v43  ;;  %v8105_v43 = vld [vmem:[#allocation37_spill] sm:$0xff]  ;;  %v8109_v52 = vld [vmem:[#allocation39_spill] sm:$0xff] }
 0x295   :  { %4800 = vmatprep.subr.bf16.mxu0 %v8095_v15  ;;  %4832 = vmatprep.subr.bf16.mxu1 %v8096_v22  ;;  %v8106_v15 = vld [vmem:[#allocation38_spill] sm:$0xff]  ;;  %v8107_v22 = vld [vmem:[#allocation44_spill] sm:$0xff] }
 0x298   :  { %4802 = vmatpush1.bf16.msra.mxu0 %v8097_v11  ;;  %4834 = vmatpush1.bf16.msra.mxu1 %v8098_v59  ;;  %v8108_v11 = vld [vmem:[#allocation45_spill] sm:$0xff] }
 0x299   :  { %4804 = vmatprep.subr.bf16.mxu0 %v8099_v30  ;;  %4836 = vmatprep.subr.bf16.mxu1 %v8100_v29 }
 0x29c   :  { %4806 = vmatpush1.bf16.msra.mxu0 %v8101_v44  ;;  %4838 = vmatpush1.bf16.msra.mxu1 %v8102_v48 }
 0x29d   :  { %4808 = vmatprep.subr.bf16.mxu0 %v8103_v28  ;;  %4840 = vmatprep.subr.bf16.mxu1 %v8104_v37  ;;  %v8111_v28 = vld [vmem:[#allocation41_spill] sm:$0xff] }
 0x2a0   :  { %4810 = vmatpush1.bf16.msra.mxu0 %v8105_v43  ;;  %4842 = vmatpush1.bf16.msra.mxu1 %v8106_v15  ;;  %v8112_v43 = vld [vmem:[#allocation42_spill] sm:$0xff] }
 0x2a1   :  { %4844 = vmatprep.subr.bf16.mxu0 %v8107_v22  ;;  %4876 = vmatprep.subr.bf16.mxu1 %v8108_v11 }
 0x356   :  { %v1164_v59 = vpop.f32.mrb[2].mxu0  ;;  %v1235_v30 = vpop.f32.mrb[2].mxu1 }
 0x357   :  { %v6061_v29 = vadd.f32 %v1164_v59, %v8109_v52  ;;  %v1166_v2 = vpop.f32.mrb[3].mxu0  ;;  %v1237_v44 = vpop.f32.mrb[3].mxu1  ;;  %v6077_v25 = vadd.f32 %v1235_v30, %v8111_v28  ;;  %v8113_v52 = vld [vmem:[#allocation43_spill] sm:$0xff] }
 0x358   :  { %v6062_v48 = vadd.f32 %v1166_v2, %v8110_v34  ;;  %v6078_v37 = vadd.f32 %v1237_v44, %v8112_v43 }
 0x359   :  { %6208 = vtanh.f32 %v6061_v29 }
 0x35a   :  { %6210 = vtanh.f32 %v6062_v48  ;;  %v8124_v48 = vld [vmem:[#allocation55_spill] sm:$0xff] }
 0x35b   :  { %6212 = vtanh.f32 %v6077_v25 }
 0x35c   :  { %6214 = vtanh.f32 %v6078_v37  ;;  %v8125_v37 = vld [vmem:[#allocation56_spill] sm:$0xff] }
 0x363   :  { %v6209_v15 = vpop.eup %6208 }
 0x364   :  { %v1245_v6 = vmul.f32 0.5, %v6209_v15  ;;  %v6211_v22 = vpop.eup %6210  ;;  %v8116_v15 = vld [vmem:[#allocation47_spill] sm:$0xff] }
 0x365   :  { %v1248_v11 = vmul.f32 0.5, %v6211_v22  ;;  %v6213_v41 = vpop.eup %6212  ;;  %v8122_v22 = vld [vmem:[#allocation53_spill] sm:$0xff] }
 0x366   :  { %v1246_v51 = vadd.f32 0.5, %v1245_v6  ;;  %v6215_v2 = vpop.eup %6214  ;;  %v8115_v6 = vld [vmem:[#allocation46_spill] sm:$0xff] }
 0x367   :  { %v1249_v26 = vadd.f32 0.5, %v1248_v11  ;;  %v1252_v30 = vmul.f32 0.5, %v6215_v2  ;;  %v8123_v11 = vld [vmem:[#allocation54_spill] sm:$0xff] }
 0x368   :  { %v1255_v59 = vmul.f32 %v6213_v41, %v1246_v51  ;;  %v8117_v41 = vld [vmem:[#allocation48_spill] sm:$0xff]  ;;  %v8120_v51 = vld [vmem:[#allocation51_spill] sm:$0xff]  ;;  %v8127_v2 = vld [vmem:[#allocation58_spill] sm:$0xff] }
 0x369   :  { %v1254_v21 = vmul.f32 %v1249_v26, %v8113_v52  ;;  %v1253_v25 = vadd.f32 0.5, %v1252_v30  ;;  %v8119_v26 = vld [vmem:[#allocation50_spill] sm:$0xff]  ;;  %v8121_v52 = vld [vmem:[#allocation52_spill] sm:$0xff]  ;;  %v8128_v30 = vld [vmem:[#allocation59_spill] sm:$0xff] }
 0x36b   :  { %v7113_v19 = vadd.f32 %v1255_v59, %v1254_v21  ;;  %v8118_v21 = vld [vmem:[#allocation49_spill] sm:$0xff] }
 0x36c   :  { %v8126_v59 = vld [vmem:[#allocation57_spill] sm:$0xff] }
 0x36d   :  { %8114 = vst [vmem:[#allocation40_spill] sm:$0xff] %v7113_v19  ;;  %6216 = vtanh.f32 %v7113_v19 }
 0x377   :  { %v6217_v29 = vpop.eup %6216 }
 0x378   :  { %v7116_v44 = vmul.f32 %v6217_v29, %v1253_v25  ;;  %v8129_v25 = vld [vmem:[#allocation60_spill] sm:$0xff]  ;;  %v8130_v29 = vld [vmem:[#allocation61_spill] sm:$0xff] }
 0x37a   :  { %1324 = vmatmul.mubr.f32.vlgmr.msra.gmra.mrb[18].mxu0 %v7116_v44  ;;  %1395 = vmatmul.mubr.f32.vlgmr.msra.gmra.mrb[18].mxu1 %v7116_v44 }
 0x37b   :  { %4846 = vmatpush1.bf16.msra.mxu0 %v8115_v6  ;;  %4878 = vmatpush1.bf16.msra.mxu1 %v8116_v15 }
 0x37c   :  { %4848 = vmatprep.subr.bf16.mxu0 %v8117_v41  ;;  %4880 = vmatprep.subr.bf16.mxu1 %v8118_v21  ;;  %v8148_v41 = vld [vmem:[#allocation77_spill] sm:$0xff] }
 0x37d   :  { %1480 = vmatprep.mubr.f32.mxu0 %v8048_v12  ;;  %1551 = vmatprep.mubr.f32.mxu1 %v8048_v12 }
 0x37f   :  { %4850 = vmatpush1.bf16.msra.mxu0 %v8119_v26  ;;  %4882 = vmatpush1.bf16.msra.mxu1 %v8120_v51  ;;  %v8131_v51 = vld [vmem:[#allocation62_spill] sm:$0xff]  ;;  %v8147_v26 = vld [vmem:[#allocation76_spill] sm:$0xff] }
 0x380   :  { %4852 = vmatprep.subr.bf16.mxu0 %v8121_v52  ;;  %4884 = vmatprep.subr.bf16.mxu1 %v8122_v22  ;;  %v8132_v52 = vld [vmem:[#allocation63_spill] sm:$0xff]  ;;  %v8133_v22 = vld [vmem:[#allocation64_spill] sm:$0xff] }
 0x383   :  { %4854 = vmatpush1.bf16.msra.mxu0 %v8123_v11  ;;  %4886 = vmatpush1.bf16.msra.mxu1 %v8124_v48  ;;  %v8134_v11 = vld [vmem:[#allocation65_spill] sm:$0xff]  ;;  %v8135_v48 = vld [vmem:[#allocation66_spill] sm:$0xff] }
 0x384   :  { %4856 = vmatprep.subr.bf16.mxu0 %v8125_v37  ;;  %4888 = vmatprep.subr.bf16.mxu1 %v8126_v59  ;;  %v8136_v37 = vld [vmem:[#allocation67_spill] sm:$0xff]  ;;  %v8137_v59 = vld [vmem:[#allocation68_spill] sm:$0xff] }
 0x387   :  { %4858 = vmatpush1.bf16.msra.mxu0 %v8127_v2  ;;  %4890 = vmatpush1.bf16.msra.mxu1 %v8128_v30  ;;  %v8138_v2 = vld [vmem:[#allocation69_spill] sm:$0xff]  ;;  %v8139_v30 = vld [vmem:[#allocation70_spill] sm:$0xff] }
 0x388   :  { %4860 = vmatprep.subr.bf16.mxu0 %v8129_v25  ;;  %4892 = vmatprep.subr.bf16.mxu1 %v8130_v29  ;;  %v8140_v25 = vld [vmem:[#allocation71_spill] sm:$0xff]  ;;  %v8141_v29 = vld [vmem:[#allocation72_spill] sm:$0xff] }
 0x38b   :  { %4862 = vmatpush1.bf16.msra.mxu0 %v8131_v51  ;;  %4894 = vmatpush1.bf16.msra.mxu1 %v8132_v52  ;;  %v8142_v51 = vld [vmem:[#allocation73_spill] sm:$0xff]  ;;  %v8143_v52 = vld [vmem:[#allocation74_spill] sm:$0xff] }
 0x38c   :  { %4864 = vmatprep.subr.bf16.mxu0 %v8133_v22  ;;  %4896 = vmatprep.subr.bf16.mxu1 %v8134_v11  ;;  %v8144_v22 = vld [vmem:[#allocation75_spill] sm:$0xff]  ;;  %v8145_v11 = vld [vmem:[#allocation13_spill] sm:$0xff] }
 0x38f   :  { %4866 = vmatpush1.bf16.msra.mxu0 %v8135_v48  ;;  %4898 = vmatpush1.bf16.msra.mxu1 %v8136_v37  ;;  %v8146_v48 = vld [vmem:[#allocation14_spill] sm:$0xff] }
 0x390   :  { %4868 = vmatprep.subr.bf16.mxu0 %v8137_v59  ;;  %4900 = vmatprep.subr.bf16.mxu1 %v8138_v2 }
 0x393   :  { %4870 = vmatpush1.bf16.msra.mxu0 %v8139_v30  ;;  %4902 = vmatpush1.bf16.msra.mxu1 %v8140_v25 }
 0x394   :  { %4872 = vmatprep.subr.bf16.mxu0 %v8141_v29  ;;  %4904 = vmatprep.subr.bf16.mxu1 %v8142_v51 }
 0x397   :  { %4874 = vmatpush1.bf16.msra.mxu0 %v8143_v52  ;;  %4906 = vmatpush1.bf16.msra.mxu1 %v8144_v22 }
 0x398   :  { %4908 = vmatprep.subr.bf16.mxu0 %v8145_v11  ;;  %4940 = vmatprep.subr.bf16.mxu1 %v8146_v48 }
 0x44d   :  { %v1325_v37 = vpop.f32.mrb[18].mxu0  ;;  %v1396_v59 = vpop.f32.mrb[18].mxu1 }
 0x44e   :  { %v6091_v2 = vadd.f32 %v1325_v37, %v8147_v26  ;;  %v1327_v21 = vpop.f32.mrb[19].mxu0  ;;  %v1398_v30 = vpop.f32.mrb[19].mxu1  ;;  %v6093_v29 = vadd.f32 %v1396_v59, %v7025_v3 }
 0x44f   :  { %v6092_v25 = vadd.f32 %v1327_v21, %v8148_v41  ;;  %v6094_v52 = vadd.f32 %v1398_v30, %v7032_v0 }
 0x450   :  { %6218 = vtanh.f32 %v6091_v2 }
 0x451   :  { %6220 = vtanh.f32 %v6092_v25 }
 0x452   :  { %6222 = vtanh.f32 %v6093_v29  ;;  %v8160_v29 = vld [vmem:[#allocation27_spill] sm:$0xff] }
 0x453   :  { %6224 = vtanh.f32 %v6094_v52  ;;  %v8156_v52 = vld [vmem:[#allocation23_spill] sm:$0xff] }
 0x45a   :  { %v6219_v22 = vpop.eup %6218 }
 0x45b   :  { %v1402_v51 = vmul.f32 0.5, %v6219_v22  ;;  %v6221_v11 = vpop.eup %6220  ;;  %v8157_v22 = vld [vmem:[#allocation24_spill] sm:$0xff] }
 0x45c   :  { %v1405_v48 = vmul.f32 0.5, %v6221_v11  ;;  %v6223_v6 = vpop.eup %6222  ;;  %v8158_v11 = vld [vmem:[#allocation25_spill] sm:$0xff] }
 0x45d   :  { %v1403_v15 = vadd.f32 0.5, %v1402_v51  ;;  %v6225_v21 = vpop.eup %6224  ;;  %v8155_v51 = vld [vmem:[#allocation22_spill] sm:$0xff] }
 0x45e   :  { %v1406_v19 = vadd.f32 0.5, %v1405_v48  ;;  %v1409_v59 = vmul.f32 0.5, %v6225_v21  ;;  %v8159_v48 = vld [vmem:[#allocation26_spill] sm:$0xff]  ;;  %v8162_v21 = vld [vmem:[#allocation29_spill] sm:$0xff] }
 0x45f   :  { %v1412_v37 = vmul.f32 %v6223_v6, %v1403_v15  ;;  %v8152_v6 = vld [vmem:[#allocation19_spill] sm:$0xff]  ;;  %v8153_v15 = vld [vmem:[#allocation20_spill] sm:$0xff] }
 0x460   :  { %v1411_v26 = vmul.f32 %v1406_v19, %v7035_v61  ;;  %v1410_v2 = vadd.f32 0.5, %v1409_v59  ;;  %v8149_v19 = vld [vmem:[#allocation16_spill] sm:$0xff]  ;;  %v8150_v61 = vld [vmem:[#allocation17_spill] sm:$0xff]  ;;  %v8163_v59 = vld [vmem:[#allocation30_spill] sm:$0xff] }
 0x462   :  { %v7159_v43 = vadd.f32 %v1412_v37, %v1411_v26  ;;  %v8154_v26 = vld [vmem:[#allocation21_spill] sm:$0xff]  ;;  %v8161_v37 = vld [vmem:[#allocation28_spill] sm:$0xff] }
 0x464   :  { %6226 = vtanh.f32 %v7159_v43 }
 0x46e   :  { %v6227_v25 = vpop.eup %6226 }
 0x46f   :  { %v1415_v30 = vmul.f32 %v6227_v25, %v1410_v2  ;;  %v8164_v2 = vld [vmem:[#allocation31_spill] sm:$0xff]  ;;  %v8165_v25 = vld [vmem:[#allocation32_spill] sm:$0xff] }
 0x471   :  { %1481 = vmatmul.mubr.f32.vlgmr.msra.gmra.mrb[20].mxu0 %v1415_v30  ;;  %1552 = vmatmul.mubr.f32.vlgmr.msra.gmra.mrb[20].mxu1 %v1415_v30  ;;  %v8166_v30 = vld [vmem:[#allocation33_spill] sm:$0xff] }
 0x472   :  { %4910 = vmatpush1.bf16.msra.mxu0 %v6631_v35  ;;  %4942 = vmatpush1.bf16.msra.mxu1 %v6634_v38 }
 0x473   :  { %4912 = vmatprep.subr.bf16.mxu0 %v6637_v42  ;;  %4944 = vmatprep.subr.bf16.mxu1 %v6643_v47 }
 0x474   :  { %1626 = vmatprep.mubr.f32.mxu0 %v8048_v12  ;;  %1697 = vmatprep.mubr.f32.mxu1 %v8048_v12 }
 0x476   :  { %4914 = vmatpush1.bf16.msra.mxu0 %v6647_v50  ;;  %4946 = vmatpush1.bf16.msra.mxu1 %v6651_v54 }
 0x477   :  { %4916 = vmatprep.subr.bf16.mxu0 %v6655_v57  ;;  %4948 = vmatprep.subr.bf16.mxu1 %v6659_v60 }
 0x47a   :  { %4918 = vmatpush1.bf16.msra.mxu0 %v6666_v1  ;;  %4950 = vmatpush1.bf16.msra.mxu1 %v6670_v4 }
 0x47b   :  { %4920 = vmatprep.subr.bf16.mxu0 %v6674_v7  ;;  %4952 = vmatprep.subr.bf16.mxu1 %v6678_v10 }
 0x47e   :  { %4922 = vmatpush1.bf16.msra.mxu0 %v6685_v14  ;;  %4954 = vmatpush1.bf16.msra.mxu1 %v6689_v17 }
 0x47f   :  { %4924 = vmatprep.subr.bf16.mxu0 %v6693_v20  ;;  %4956 = vmatprep.subr.bf16.mxu1 %v6697_v23 }
 0x482   :  { %4926 = vmatpush1.bf16.msra.mxu0 %v6704_v27  ;;  %4958 = vmatpush1.bf16.msra.mxu1 %v6708_v32 }
 0x483   :  { %4928 = vmatprep.subr.bf16.mxu0 %v6712_v36  ;;  %4960 = vmatprep.subr.bf16.mxu1 %v6716_v40 }
 0x486   :  { %4930 = vmatpush1.bf16.msra.mxu0 %v6723_v45  ;;  %4962 = vmatpush1.bf16.msra.mxu1 %v6727_v49 }
 0x487   :  { %4932 = vmatprep.subr.bf16.mxu0 %v6731_v53  ;;  %4964 = vmatprep.subr.bf16.mxu1 %v6735_v58 }
 0x48a   :  { %4934 = vmatpush1.bf16.msra.mxu0 %v6742_v63  ;;  %4966 = vmatpush1.bf16.msra.mxu1 %v6746_v5 }
 0x48b   :  { %4936 = vmatprep.subr.bf16.mxu0 %v6750_v9  ;;  %4968 = vmatprep.subr.bf16.mxu1 %v6754_v13 }
 0x48e   :  { %4938 = vmatpush1.bf16.msra.mxu0 %v6761_v16  ;;  %4970 = vmatpush1.bf16.msra.mxu1 %v6765_v18 }
 0x48f   :  { %4972 = vmatprep.subr.bf16.mxu0 %v6780_v24  ;;  %5004 = vmatprep.subr.bf16.mxu1 %v6782_v31 }
 0x491   :  { %1627 = vmatmul.mubr.f32.vlgmr.msra.gmra.mrb[4].mxu0 %v7116_v44  ;;  %1698 = vmatmul.mubr.f32.vlgmr.msra.gmra.mrb[4].mxu1 %v7116_v44  ;;  %v8151_v44 = vld [vmem:[#allocation18_spill] sm:$0xff] }
 0x492   :  { %4974 = vmatpush1.bf16.msra.mxu0 %v6784_v33  ;;  %5006 = vmatpush1.bf16.msra.mxu1 %v6787_v39 }
 0x493   :  { %4976 = vmatprep.subr.bf16.mxu0 %v6792_v46  ;;  %5008 = vmatprep.subr.bf16.mxu1 %v6794_v55 }
 0x494   :  { %1787 = vmatprep.mubr.f32.mxu0 %v8048_v12  ;;  %1858 = vmatprep.mubr.f32.mxu1 %v8048_v12 }
 0x496   :  { %4978 = vmatpush1.bf16.msra.mxu0 %v6796_v56  ;;  %5010 = vmatpush1.bf16.msra.mxu1 %v6799_v62 }
 0x497   :  { %4980 = vmatprep.subr.bf16.mxu0 %v6804_v8  ;;  %5012 = vmatprep.subr.bf16.mxu1 %v8149_v19 }
 0x49a   :  { %4982 = vmatpush1.bf16.msra.mxu0 %v8150_v61  ;;  %5014 = vmatpush1.bf16.msra.mxu1 %v8151_v44 }
 0x49b   :  { %4984 = vmatprep.subr.bf16.mxu0 %v8152_v6  ;;  %5016 = vmatprep.subr.bf16.mxu1 %v8153_v15 }
 0x49e   :  { %4986 = vmatpush1.bf16.msra.mxu0 %v8154_v26  ;;  %5018 = vmatpush1.bf16.msra.mxu1 %v8155_v51  ;;  %v8174_v51 = vld [vmem:[#allocation39_spill] sm:$0xff] }
 0x49f   :  { %4988 = vmatprep.subr.bf16.mxu0 %v8156_v52  ;;  %5020 = vmatprep.subr.bf16.mxu1 %v8157_v22  ;;  %v8167_v52 = vld [vmem:[#allocation34_spill] sm:$0xff]  ;;  %v8168_v22 = vld [vmem:[#allocation35_spill] sm:$0xff] }
 0x4a2   :  { %4990 = vmatpush1.bf16.msra.mxu0 %v8158_v11  ;;  %5022 = vmatpush1.bf16.msra.mxu1 %v8159_v48  ;;  %v8169_v11 = vld [vmem:[#allocation36_spill] sm:$0xff]  ;;  %v8170_v48 = vld [vmem:[#allocation37_spill] sm:$0xff] }
 0x4a3   :  { %4992 = vmatprep.subr.bf16.mxu0 %v8160_v29  ;;  %5024 = vmatprep.subr.bf16.mxu1 %v8161_v37  ;;  %v8171_v29 = vld [vmem:[#allocation38_spill] sm:$0xff]  ;;  %v8172_v37 = vld [vmem:[#allocation44_spill] sm:$0xff] }
 0x4a6   :  { %4994 = vmatpush1.bf16.msra.mxu0 %v8162_v21  ;;  %5026 = vmatpush1.bf16.msra.mxu1 %v8163_v59  ;;  %v8173_v21 = vld [vmem:[#allocation45_spill] sm:$0xff] }
 0x4a7   :  { %4996 = vmatprep.subr.bf16.mxu0 %v8164_v2  ;;  %5028 = vmatprep.subr.bf16.mxu1 %v8165_v25 }
 0x4aa   :  { %4998 = vmatpush1.bf16.msra.mxu0 %v8166_v30  ;;  %5030 = vmatpush1.bf16.msra.mxu1 %v8167_v52 }
 0x4ab   :  { %5000 = vmatprep.subr.bf16.mxu0 %v8168_v22  ;;  %5032 = vmatprep.subr.bf16.mxu1 %v8169_v11 }
 0x4ae   :  { %5002 = vmatpush1.bf16.msra.mxu0 %v8170_v48  ;;  %5034 = vmatpush1.bf16.msra.mxu1 %v8171_v29  ;;  %v8175_v48 = vld [vmem:[#allocation42_spill] sm:$0xff] }
 0x4af   :  { %5036 = vmatprep.subr.bf16.mxu0 %v8172_v37  ;;  %5068 = vmatprep.subr.bf16.mxu1 %v8173_v21 }
 0x564   :  { %v1628_v59 = vpop.f32.mrb[4].mxu0  ;;  %v1699_v2 = vpop.f32.mrb[4].mxu1 }
 0x565   :  { %v6063_v25 = vadd.f32 %v1628_v59, %v8174_v51  ;;  %v1630_v26 = vpop.f32.mrb[5].mxu0  ;;  %v1701_v30 = vpop.f32.mrb[5].mxu1  ;;  %v6079_v22 = vadd.f32 %v1699_v2, %v8111_v28  ;;  %v8176_v51 = vld [vmem:[#allocation40_spill] sm:$0xff] }
 0x566   :  { %v6064_v52 = vadd.f32 %v1630_v26, %v8110_v34  ;;  %v6080_v11 = vadd.f32 %v1701_v30, %v8175_v48  ;;  %v8188_v30 = vld [vmem:[#allocation56_spill] sm:$0xff] }
 0x567   :  { %6228 = vtanh.f32 %v6063_v25 }
 0x568   :  { %6230 = vtanh.f32 %v6064_v52 }
 0x569   :  { %6232 = vtanh.f32 %v6079_v22 }
 0x56a   :  { %6234 = vtanh.f32 %v6080_v11  ;;  %v8179_v11 = vld [vmem:[#allocation47_spill] sm:$0xff] }
 0x571   :  { %v6229_v29 = vpop.eup %6228 }
 0x572   :  { %v1709_v15 = vmul.f32 0.5, %v6229_v29  ;;  %v6231_v37 = vpop.eup %6230  ;;  %v8185_v29 = vld [vmem:[#allocation53_spill] sm:$0xff] }
 0x573   :  { %v1712_v21 = vmul.f32 0.5, %v6231_v37  ;;  %v6233_v44 = vpop.eup %6232  ;;  %v8186_v37 = vld [vmem:[#allocation54_spill] sm:$0xff] }
 0x574   :  { %v1710_v6 = vadd.f32 0.5, %v1709_v15  ;;  %v6235_v26 = vpop.eup %6234  ;;  %v8178_v15 = vld [vmem:[#allocation46_spill] sm:$0xff] }
 0x575   :  { %v1713_v61 = vadd.f32 0.5, %v1712_v21  ;;  %v1716_v52 = vmul.f32 0.5, %v6235_v26  ;;  %v8187_v21 = vld [vmem:[#allocation55_spill] sm:$0xff]  ;;  %v8190_v26 = vld [vmem:[#allocation58_spill] sm:$0xff] }
 0x576   :  { %v1719_v59 = vmul.f32 %v6233_v44, %v1710_v6  ;;  %v8180_v44 = vld [vmem:[#allocation48_spill] sm:$0xff]  ;;  %v8183_v6 = vld [vmem:[#allocation51_spill] sm:$0xff] }
 0x577   :  { %v1718_v19 = vmul.f32 %v1713_v61, %v8176_v51  ;;  %v1717_v22 = vadd.f32 0.5, %v1716_v52  ;;  %v8182_v61 = vld [vmem:[#allocation50_spill] sm:$0xff]  ;;  %v8184_v51 = vld [vmem:[#allocation52_spill] sm:$0xff]  ;;  %v8191_v52 = vld [vmem:[#allocation59_spill] sm:$0xff] }
 0x579   :  { %v7237_v8 = vadd.f32 %v1719_v59, %v1718_v19  ;;  %v8181_v19 = vld [vmem:[#allocation49_spill] sm:$0xff] }
 0x57a   :  { %v8189_v59 = vld [vmem:[#allocation57_spill] sm:$0xff] }
 0x57b   :  { %8177 = vst [vmem:[#allocation41_spill] sm:$0xff] %v7237_v8  ;;  %6236 = vtanh.f32 %v7237_v8 }
 0x585   :  { %v6237_v2 = vpop.eup %6236 }
 0x586   :  { %v7240_v25 = vmul.f32 %v6237_v2, %v1717_v22  ;;  %v8192_v22 = vld [vmem:[#allocation60_spill] sm:$0xff]  ;;  %v8193_v2 = vld [vmem:[#allocation61_spill] sm:$0xff] }
 0x588   :  { %1788 = vmatmul.mubr.f32.vlgmr.msra.gmra.mrb[20].mxu0 %v7240_v25  ;;  %1859 = vmatmul.mubr.f32.vlgmr.msra.gmra.mrb[20].mxu1 %v7240_v25 }
 0x589   :  { %5038 = vmatpush1.bf16.msra.mxu0 %v8178_v15  ;;  %5070 = vmatpush1.bf16.msra.mxu1 %v8179_v11 }
 0x58a   :  { %5040 = vmatprep.subr.bf16.mxu0 %v8180_v44  ;;  %5072 = vmatprep.subr.bf16.mxu1 %v8181_v19 }
 0x58b   :  { %1944 = vmatprep.mubr.f32.mxu0 %v8048_v12  ;;  %2015 = vmatprep.mubr.f32.mxu1 %v8048_v12 }
 0x58d   :  { %5042 = vmatpush1.bf16.msra.mxu0 %v8182_v61  ;;  %5074 = vmatpush1.bf16.msra.mxu1 %v8183_v6  ;;  %v8194_v6 = vld [vmem:[#allocation62_spill] sm:$0xff]  ;;  %v8210_v61 = vld [vmem:[#allocation76_spill] sm:$0xff] }
 0x58e   :  { %5044 = vmatprep.subr.bf16.mxu0 %v8184_v51  ;;  %5076 = vmatprep.subr.bf16.mxu1 %v8185_v29  ;;  %v8195_v51 = vld [vmem:[#allocation63_spill] sm:$0xff]  ;;  %v8196_v29 = vld [vmem:[#allocation64_spill] sm:$0xff] }
 0x591   :  { %5046 = vmatpush1.bf16.msra.mxu0 %v8186_v37  ;;  %5078 = vmatpush1.bf16.msra.mxu1 %v8187_v21  ;;  %v8197_v37 = vld [vmem:[#allocation65_spill] sm:$0xff]  ;;  %v8198_v21 = vld [vmem:[#allocation66_spill] sm:$0xff] }
 0x592   :  { %5048 = vmatprep.subr.bf16.mxu0 %v8188_v30  ;;  %5080 = vmatprep.subr.bf16.mxu1 %v8189_v59  ;;  %v8199_v30 = vld [vmem:[#allocation67_spill] sm:$0xff]  ;;  %v8200_v59 = vld [vmem:[#allocation68_spill] sm:$0xff] }
 0x595   :  { %5050 = vmatpush1.bf16.msra.mxu0 %v8190_v26  ;;  %5082 = vmatpush1.bf16.msra.mxu1 %v8191_v52  ;;  %v8201_v26 = vld [vmem:[#allocation69_spill] sm:$0xff]  ;;  %v8202_v52 = vld [vmem:[#allocation70_spill] sm:$0xff] }
 0x596   :  { %5052 = vmatprep.subr.bf16.mxu0 %v8192_v22  ;;  %5084 = vmatprep.subr.bf16.mxu1 %v8193_v2  ;;  %v8203_v22 = vld [vmem:[#allocation71_spill] sm:$0xff]  ;;  %v8204_v2 = vld [vmem:[#allocation72_spill] sm:$0xff] }
 0x599   :  { %5054 = vmatpush1.bf16.msra.mxu0 %v8194_v6  ;;  %5086 = vmatpush1.bf16.msra.mxu1 %v8195_v51  ;;  %v8205_v6 = vld [vmem:[#allocation73_spill] sm:$0xff]  ;;  %v8206_v51 = vld [vmem:[#allocation74_spill] sm:$0xff] }
 0x59a   :  { %5056 = vmatprep.subr.bf16.mxu0 %v8196_v29  ;;  %5088 = vmatprep.subr.bf16.mxu1 %v8197_v37  ;;  %v8207_v29 = vld [vmem:[#allocation75_spill] sm:$0xff]  ;;  %v8208_v37 = vld [vmem:[#allocation13_spill] sm:$0xff] }
 0x59d   :  { %5058 = vmatpush1.bf16.msra.mxu0 %v8198_v21  ;;  %5090 = vmatpush1.bf16.msra.mxu1 %v8199_v30  ;;  %v8209_v21 = vld [vmem:[#allocation14_spill] sm:$0xff] }
 0x59e   :  { %5060 = vmatprep.subr.bf16.mxu0 %v8200_v59  ;;  %5092 = vmatprep.subr.bf16.mxu1 %v8201_v26 }
 0x5a1   :  { %5062 = vmatpush1.bf16.msra.mxu0 %v8202_v52  ;;  %5094 = vmatpush1.bf16.msra.mxu1 %v8203_v22 }
 0x5a2   :  { %5064 = vmatprep.subr.bf16.mxu0 %v8204_v2  ;;  %5096 = vmatprep.subr.bf16.mxu1 %v8205_v6 }
 0x5a5   :  { %5066 = vmatpush1.bf16.msra.mxu0 %v8206_v51  ;;  %5098 = vmatpush1.bf16.msra.mxu1 %v8207_v29 }
 0x5a6   :  { %5100 = vmatprep.subr.bf16.mxu0 %v8208_v37  ;;  %5132 = vmatprep.subr.bf16.mxu1 %v8209_v21 }
 0x65b   :  { %v1789_v30 = vpop.f32.mrb[20].mxu0  ;;  %v1860_v59 = vpop.f32.mrb[20].mxu1 }
 0x65c   :  { %v6095_v26 = vadd.f32 %v1789_v30, %v8210_v61  ;;  %v1791_v19 = vpop.f32.mrb[21].mxu0  ;;  %v1862_v52 = vpop.f32.mrb[21].mxu1  ;;  %v6097_v2 = vadd.f32 %v1860_v59, %v7025_v3 }
 0x65d   :  { %v6096_v22 = vadd.f32 %v1791_v19, %v8148_v41  ;;  %v6098_v51 = vadd.f32 %v1862_v52, %v7032_v0 }
 0x65e   :  { %6238 = vtanh.f32 %v6095_v26 }
 0x65f   :  { %6240 = vtanh.f32 %v6096_v22 }
 0x660   :  { %6242 = vtanh.f32 %v6097_v2  ;;  %v8222_v2 = vld [vmem:[#allocation26_spill] sm:$0xff] }
 0x661   :  { %6244 = vtanh.f32 %v6098_v51  ;;  %v8218_v51 = vld [vmem:[#allocation22_spill] sm:$0xff] }
 0x668   :  { %v6239_v29 = vpop.eup %6238 }
 0x669   :  { %v1866_v6 = vmul.f32 0.5, %v6239_v29  ;;  %v6241_v37 = vpop.eup %6240  ;;  %v8219_v29 = vld [vmem:[#allocation23_spill] sm:$0xff] }
 0x66a   :  { %v1869_v21 = vmul.f32 0.5, %v6241_v37  ;;  %v6243_v11 = vpop.eup %6242  ;;  %v8220_v37 = vld [vmem:[#allocation24_spill] sm:$0xff] }
 0x66b   :  { %v1867_v44 = vadd.f32 0.5, %v1866_v6  ;;  %v6245_v19 = vpop.eup %6244  ;;  %v8217_v6 = vld [vmem:[#allocation21_spill] sm:$0xff] }
 0x66c   :  { %v1870_v15 = vadd.f32 0.5, %v1869_v21  ;;  %v1873_v59 = vmul.f32 0.5, %v6245_v19  ;;  %v8221_v21 = vld [vmem:[#allocation25_spill] sm:$0xff]  ;;  %v8224_v19 = vld [vmem:[#allocation28_spill] sm:$0xff] }
 0x66d   :  { %v1876_v30 = vmul.f32 %v6243_v11, %v1867_v44  ;;  %v8214_v11 = vld [vmem:[#allocation18_spill] sm:$0xff]  ;;  %v8215_v44 = vld [vmem:[#allocation19_spill] sm:$0xff] }
 0x66e   :  { %v1875_v61 = vmul.f32 %v1870_v15, %v7159_v43  ;;  %v1874_v26 = vadd.f32 0.5, %v1873_v59  ;;  %v8211_v43 = vld [vmem:[#allocation15_spill] sm:$0xff]  ;;  %v8212_v15 = vld [vmem:[#allocation16_spill] sm:$0xff]  ;;  %v8225_v59 = vld [vmem:[#allocation29_spill] sm:$0xff] }
 0x670   :  { %v7283_v8 = vadd.f32 %v1876_v30, %v1875_v61  ;;  %v8216_v61 = vld [vmem:[#allocation20_spill] sm:$0xff]  ;;  %v8223_v30 = vld [vmem:[#allocation27_spill] sm:$0xff] }
 0x672   :  { %6246 = vtanh.f32 %v7283_v8 }
 0x67c   :  { %v6247_v22 = vpop.eup %6246 }
 0x67d   :  { %v1879_v52 = vmul.f32 %v6247_v22, %v1874_v26  ;;  %v8226_v26 = vld [vmem:[#allocation30_spill] sm:$0xff]  ;;  %v8227_v22 = vld [vmem:[#allocation31_spill] sm:$0xff] }
 0x67f   :  { %1945 = vmatmul.mubr.f32.vlgmr.msra.gmra.mrb[22].mxu0 %v1879_v52  ;;  %2016 = vmatmul.mubr.f32.vlgmr.msra.gmra.mrb[22].mxu1 %v1879_v52  ;;  %v8228_v52 = vld [vmem:[#allocation32_spill] sm:$0xff] }
 0x680   :  { %5102 = vmatpush1.bf16.msra.mxu0 %v6631_v35  ;;  %5134 = vmatpush1.bf16.msra.mxu1 %v6634_v38 }
 0x681   :  { %5104 = vmatprep.subr.bf16.mxu0 %v6637_v42  ;;  %5136 = vmatprep.subr.bf16.mxu1 %v6643_v47 }
 0x682   :  { %2090 = vmatprep.mubr.f32.mxu0 %v8048_v12  ;;  %2161 = vmatprep.mubr.f32.mxu1 %v8048_v12 }
 0x684   :  { %5106 = vmatpush1.bf16.msra.mxu0 %v6647_v50  ;;  %5138 = vmatpush1.bf16.msra.mxu1 %v6651_v54 }
 0x685   :  { %5108 = vmatprep.subr.bf16.mxu0 %v6655_v57  ;;  %5140 = vmatprep.subr.bf16.mxu1 %v6659_v60 }
 0x688   :  { %5110 = vmatpush1.bf16.msra.mxu0 %v6666_v1  ;;  %5142 = vmatpush1.bf16.msra.mxu1 %v6670_v4 }
 0x689   :  { %5112 = vmatprep.subr.bf16.mxu0 %v6674_v7  ;;  %5144 = vmatprep.subr.bf16.mxu1 %v6678_v10 }
 0x68c   :  { %5114 = vmatpush1.bf16.msra.mxu0 %v6685_v14  ;;  %5146 = vmatpush1.bf16.msra.mxu1 %v6689_v17 }
 0x68d   :  { %5116 = vmatprep.subr.bf16.mxu0 %v6693_v20  ;;  %5148 = vmatprep.subr.bf16.mxu1 %v6697_v23 }
 0x690   :  { %5118 = vmatpush1.bf16.msra.mxu0 %v6704_v27  ;;  %5150 = vmatpush1.bf16.msra.mxu1 %v6708_v32 }
 0x691   :  { %5120 = vmatprep.subr.bf16.mxu0 %v6712_v36  ;;  %5152 = vmatprep.subr.bf16.mxu1 %v6716_v40 }
 0x694   :  { %5122 = vmatpush1.bf16.msra.mxu0 %v6723_v45  ;;  %5154 = vmatpush1.bf16.msra.mxu1 %v6727_v49 }
 0x695   :  { %5124 = vmatprep.subr.bf16.mxu0 %v6731_v53  ;;  %5156 = vmatprep.subr.bf16.mxu1 %v6735_v58 }
 0x698   :  { %5126 = vmatpush1.bf16.msra.mxu0 %v6742_v63  ;;  %5158 = vmatpush1.bf16.msra.mxu1 %v6746_v5 }
 0x699   :  { %5128 = vmatprep.subr.bf16.mxu0 %v6750_v9  ;;  %5160 = vmatprep.subr.bf16.mxu1 %v6754_v13 }
 0x69c   :  { %5130 = vmatpush1.bf16.msra.mxu0 %v6761_v16  ;;  %5162 = vmatpush1.bf16.msra.mxu1 %v6765_v18 }
 0x69d   :  { %5164 = vmatprep.subr.bf16.mxu0 %v6780_v24  ;;  %5196 = vmatprep.subr.bf16.mxu1 %v6782_v31 }
 0x69f   :  { %2091 = vmatmul.mubr.f32.vlgmr.msra.gmra.mrb[6].mxu0 %v7240_v25  ;;  %2162 = vmatmul.mubr.f32.vlgmr.msra.gmra.mrb[6].mxu1 %v7240_v25  ;;  %v8213_v25 = vld [vmem:[#allocation17_spill] sm:$0xff] }
 0x6a0   :  { %5166 = vmatpush1.bf16.msra.mxu0 %v6784_v33  ;;  %5198 = vmatpush1.bf16.msra.mxu1 %v6787_v39 }
 0x6a1   :  { %5168 = vmatprep.subr.bf16.mxu0 %v6792_v46  ;;  %5200 = vmatprep.subr.bf16.mxu1 %v6794_v55 }
 0x6a2   :  { %2251 = vmatprep.mubr.f32.mxu0 %v8048_v12  ;;  %2322 = vmatprep.mubr.f32.mxu1 %v8048_v12 }
 0x6a4   :  { %5170 = vmatpush1.bf16.msra.mxu0 %v6796_v56  ;;  %5202 = vmatpush1.bf16.msra.mxu1 %v6799_v62 }
 0x6a5   :  { %5172 = vmatprep.subr.bf16.mxu0 %v8211_v43  ;;  %5204 = vmatprep.subr.bf16.mxu1 %v8212_v15 }
 0x6a8   :  { %5174 = vmatpush1.bf16.msra.mxu0 %v8213_v25  ;;  %5206 = vmatpush1.bf16.msra.mxu1 %v8214_v11 }
 0x6a9   :  { %5176 = vmatprep.subr.bf16.mxu0 %v8215_v44  ;;  %5208 = vmatprep.subr.bf16.mxu1 %v8216_v61 }
 0x6ac   :  { %5178 = vmatpush1.bf16.msra.mxu0 %v8217_v6  ;;  %5210 = vmatpush1.bf16.msra.mxu1 %v8218_v51  ;;  %v8229_v51 = vld [vmem:[#allocation33_spill] sm:$0xff]  ;;  %v8237_v6 = vld [vmem:[#allocation39_spill] sm:$0xff] }
 0x6ad   :  { %5180 = vmatprep.subr.bf16.mxu0 %v8219_v29  ;;  %5212 = vmatprep.subr.bf16.mxu1 %v8220_v37  ;;  %v8230_v29 = vld [vmem:[#allocation34_spill] sm:$0xff]  ;;  %v8231_v37 = vld [vmem:[#allocation35_spill] sm:$0xff] }
 0x6b0   :  { %5182 = vmatpush1.bf16.msra.mxu0 %v8221_v21  ;;  %5214 = vmatpush1.bf16.msra.mxu1 %v8222_v2  ;;  %v8232_v21 = vld [vmem:[#allocation36_spill] sm:$0xff]  ;;  %v8233_v2 = vld [vmem:[#allocation37_spill] sm:$0xff] }
 0x6b1   :  { %5184 = vmatprep.subr.bf16.mxu0 %v8223_v30  ;;  %5216 = vmatprep.subr.bf16.mxu1 %v8224_v19  ;;  %v8234_v30 = vld [vmem:[#allocation38_spill] sm:$0xff]  ;;  %v8235_v19 = vld [vmem:[#allocation44_spill] sm:$0xff] }
 0x6b4   :  { %5186 = vmatpush1.bf16.msra.mxu0 %v8225_v59  ;;  %5218 = vmatpush1.bf16.msra.mxu1 %v8226_v26  ;;  %v8236_v59 = vld [vmem:[#allocation45_spill] sm:$0xff] }
 0x6b5   :  { %5188 = vmatprep.subr.bf16.mxu0 %v8227_v22  ;;  %5220 = vmatprep.subr.bf16.mxu1 %v8228_v52 }
 0x6b8   :  { %5190 = vmatpush1.bf16.msra.mxu0 %v8229_v51  ;;  %5222 = vmatpush1.bf16.msra.mxu1 %v8230_v29 }
 0x6b9   :  { %5192 = vmatprep.subr.bf16.mxu0 %v8231_v37  ;;  %5224 = vmatprep.subr.bf16.mxu1 %v8232_v21 }
 0x6bc   :  { %5194 = vmatpush1.bf16.msra.mxu0 %v8233_v2  ;;  %5226 = vmatpush1.bf16.msra.mxu1 %v8234_v30 }
 0x6bd   :  { %5228 = vmatprep.subr.bf16.mxu0 %v8235_v19  ;;  %5260 = vmatprep.subr.bf16.mxu1 %v8236_v59 }
 0x772   :  { %v2092_v26 = vpop.f32.mrb[6].mxu0  ;;  %v2163_v22 = vpop.f32.mrb[6].mxu1 }
 0x773   :  { %v6065_v52 = vadd.f32 %v2092_v26, %v8237_v6  ;;  %v2094_v61 = vpop.f32.mrb[7].mxu0  ;;  %v2165_v51 = vpop.f32.mrb[7].mxu1  ;;  %v6081_v37 = vadd.f32 %v2163_v22, %v8111_v28  ;;  %v8238_v6 = vld [vmem:[#allocation41_spill] sm:$0xff] }
 0x774   :  { %v6066_v29 = vadd.f32 %v2094_v61, %v8110_v34  ;;  %v6082_v2 = vadd.f32 %v2165_v51, %v8175_v48 }
 0x775   :  { %6248 = vtanh.f32 %v6065_v52  ;;  %v8250_v52 = vld [vmem:[#allocation56_spill] sm:$0xff] }
 0x776   :  { %6250 = vtanh.f32 %v6066_v29 }
 0x777   :  { %6252 = vtanh.f32 %v6081_v37 }
 0x778   :  { %6254 = vtanh.f32 %v6082_v2  ;;  %v8241_v2 = vld [vmem:[#allocation47_spill] sm:$0xff] }
 0x77f   :  { %v6249_v30 = vpop.eup %6248 }
 0x780   :  { %v2173_v21 = vmul.f32 0.5, %v6249_v30  ;;  %v6251_v19 = vpop.eup %6250  ;;  %v8247_v30 = vld [vmem:[#allocation53_spill] sm:$0xff] }
 0x781   :  { %v2176_v59 = vmul.f32 0.5, %v6251_v19  ;;  %v6253_v11 = vpop.eup %6252  ;;  %v8248_v19 = vld [vmem:[#allocation54_spill] sm:$0xff] }
 0x782   :  { %v2174_v44 = vadd.f32 0.5, %v2173_v21  ;;  %v6255_v61 = vpop.eup %6254  ;;  %v8240_v21 = vld [vmem:[#allocation46_spill] sm:$0xff] }
 0x783   :  { %v2177_v25 = vadd.f32 0.5, %v2176_v59  ;;  %v2180_v29 = vmul.f32 0.5, %v6255_v61  ;;  %v8249_v59 = vld [vmem:[#allocation55_spill] sm:$0xff]  ;;  %v8252_v61 = vld [vmem:[#allocation58_spill] sm:$0xff] }
 0x784   :  { %v2183_v26 = vmul.f32 %v6253_v11, %v2174_v44  ;;  %v8242_v11 = vld [vmem:[#allocation48_spill] sm:$0xff]  ;;  %v8245_v44 = vld [vmem:[#allocation51_spill] sm:$0xff] }
 0x785   :  { %v2182_v15 = vmul.f32 %v2177_v25, %v8238_v6  ;;  %v2181_v37 = vadd.f32 0.5, %v2180_v29  ;;  %v8244_v25 = vld [vmem:[#allocation50_spill] sm:$0xff]  ;;  %v8246_v6 = vld [vmem:[#allocation52_spill] sm:$0xff]  ;;  %v8253_v29 = vld [vmem:[#allocation59_spill] sm:$0xff] }
 0x787   :  { %v7361_v43 = vadd.f32 %v2183_v26, %v2182_v15  ;;  %v8243_v15 = vld [vmem:[#allocation49_spill] sm:$0xff] }
 0x788   :  { %v8251_v26 = vld [vmem:[#allocation57_spill] sm:$0xff] }
 0x789   :  { %8239 = vst [vmem:[#allocation43_spill] sm:$0xff] %v7361_v43  ;;  %6256 = vtanh.f32 %v7361_v43 }
 0x793   :  { %v6257_v22 = vpop.eup %6256 }
 0x794   :  { %v7364_v51 = vmul.f32 %v6257_v22, %v2181_v37  ;;  %v8254_v37 = vld [vmem:[#allocation60_spill] sm:$0xff]  ;;  %v8255_v22 = vld [vmem:[#allocation61_spill] sm:$0xff] }
 0x796   :  { %2252 = vmatmul.mubr.f32.vlgmr.msra.gmra.mrb[22].mxu0 %v7364_v51  ;;  %2323 = vmatmul.mubr.f32.vlgmr.msra.gmra.mrb[22].mxu1 %v7364_v51 }
 0x797   :  { %5230 = vmatpush1.bf16.msra.mxu0 %v8240_v21  ;;  %5262 = vmatpush1.bf16.msra.mxu1 %v8241_v2 }
 0x798   :  { %5232 = vmatprep.subr.bf16.mxu0 %v8242_v11  ;;  %5264 = vmatprep.subr.bf16.mxu1 %v8243_v15 }
 0x799   :  { %2408 = vmatprep.mubr.f32.mxu0 %v8048_v12  ;;  %2479 = vmatprep.mubr.f32.mxu1 %v8048_v12 }
 0x79b   :  { %5234 = vmatpush1.bf16.msra.mxu0 %v8244_v25  ;;  %5266 = vmatpush1.bf16.msra.mxu1 %v8245_v44  ;;  %v8256_v44 = vld [vmem:[#allocation62_spill] sm:$0xff]  ;;  %v8272_v25 = vld [vmem:[#allocation76_spill] sm:$0xff] }
 0x79c   :  { %5236 = vmatprep.subr.bf16.mxu0 %v8246_v6  ;;  %5268 = vmatprep.subr.bf16.mxu1 %v8247_v30  ;;  %v8257_v6 = vld [vmem:[#allocation63_spill] sm:$0xff]  ;;  %v8258_v30 = vld [vmem:[#allocation64_spill] sm:$0xff] }
 0x79f   :  { %5238 = vmatpush1.bf16.msra.mxu0 %v8248_v19  ;;  %5270 = vmatpush1.bf16.msra.mxu1 %v8249_v59  ;;  %v8259_v19 = vld [vmem:[#allocation65_spill] sm:$0xff]  ;;  %v8260_v59 = vld [vmem:[#allocation66_spill] sm:$0xff] }
 0x7a0   :  { %5240 = vmatprep.subr.bf16.mxu0 %v8250_v52  ;;  %5272 = vmatprep.subr.bf16.mxu1 %v8251_v26  ;;  %v8261_v52 = vld [vmem:[#allocation67_spill] sm:$0xff]  ;;  %v8262_v26 = vld [vmem:[#allocation68_spill] sm:$0xff] }
 0x7a3   :  { %5242 = vmatpush1.bf16.msra.mxu0 %v8252_v61  ;;  %5274 = vmatpush1.bf16.msra.mxu1 %v8253_v29  ;;  %v8263_v61 = vld [vmem:[#allocation69_spill] sm:$0xff]  ;;  %v8264_v29 = vld [vmem:[#allocation70_spill] sm:$0xff] }
 0x7a4   :  { %5244 = vmatprep.subr.bf16.mxu0 %v8254_v37  ;;  %5276 = vmatprep.subr.bf16.mxu1 %v8255_v22  ;;  %v8265_v37 = vld [vmem:[#allocation71_spill] sm:$0xff]  ;;  %v8266_v22 = vld [vmem:[#allocation72_spill] sm:$0xff] }
 0x7a7   :  { %5246 = vmatpush1.bf16.msra.mxu0 %v8256_v44  ;;  %5278 = vmatpush1.bf16.msra.mxu1 %v8257_v6  ;;  %v8267_v44 = vld [vmem:[#allocation73_spill] sm:$0xff]  ;;  %v8268_v6 = vld [vmem:[#allocation74_spill] sm:$0xff] }
 0x7a8   :  { %5248 = vmatprep.subr.bf16.mxu0 %v8258_v30  ;;  %5280 = vmatprep.subr.bf16.mxu1 %v8259_v19  ;;  %v8269_v30 = vld [vmem:[#allocation75_spill] sm:$0xff]  ;;  %v8270_v19 = vld [vmem:[#allocation13_spill] sm:$0xff] }
 0x7ab   :  { %5250 = vmatpush1.bf16.msra.mxu0 %v8260_v59  ;;  %5282 = vmatpush1.bf16.msra.mxu1 %v8261_v52  ;;  %v8271_v59 = vld [vmem:[#allocation14_spill] sm:$0xff] }
 0x7ac   :  { %5252 = vmatprep.subr.bf16.mxu0 %v8262_v26  ;;  %5284 = vmatprep.subr.bf16.mxu1 %v8263_v61 }
 0x7af   :  { %5254 = vmatpush1.bf16.msra.mxu0 %v8264_v29  ;;  %5286 = vmatpush1.bf16.msra.mxu1 %v8265_v37 }
 0x7b0   :  { %5256 = vmatprep.subr.bf16.mxu0 %v8266_v22  ;;  %5288 = vmatprep.subr.bf16.mxu1 %v8267_v44 }
 0x7b3   :  { %5258 = vmatpush1.bf16.msra.mxu0 %v8268_v6  ;;  %5290 = vmatpush1.bf16.msra.mxu1 %v8269_v30 }
 0x7b4   :  { %5292 = vmatprep.subr.bf16.mxu0 %v8270_v19  ;;  %5324 = vmatprep.subr.bf16.mxu1 %v8271_v59 }
 0x869   :  { %v2253_v52 = vpop.f32.mrb[22].mxu0  ;;  %v2324_v26 = vpop.f32.mrb[22].mxu1 }
 0x86a   :  { %v6099_v61 = vadd.f32 %v2253_v52, %v8272_v25  ;;  %v2255_v15 = vpop.f32.mrb[23].mxu0  ;;  %v2326_v29 = vpop.f32.mrb[23].mxu1  ;;  %v6101_v22 = vadd.f32 %v2324_v26, %v7025_v3 }
 0x86b   :  { %v6100_v37 = vadd.f32 %v2255_v15, %v8148_v41  ;;  %v6102_v6 = vadd.f32 %v2326_v29, %v7032_v0 }
 0x86c   :  { %6258 = vtanh.f32 %v6099_v61 }
 0x86d   :  { %6260 = vtanh.f32 %v6100_v37 }
 0x86e   :  { %6262 = vtanh.f32 %v6101_v22  ;;  %v8284_v22 = vld [vmem:[#allocation26_spill] sm:$0xff] }
 0x86f   :  { %6264 = vtanh.f32 %v6102_v6  ;;  %v8280_v6 = vld [vmem:[#allocation22_spill] sm:$0xff] }
 0x876   :  { %v6259_v30 = vpop.eup %6258 }
 0x877   :  { %v2330_v44 = vmul.f32 0.5, %v6259_v30  ;;  %v6261_v19 = vpop.eup %6260  ;;  %v8281_v30 = vld [vmem:[#allocation23_spill] sm:$0xff] }
 0x878   :  { %v2333_v59 = vmul.f32 0.5, %v6261_v19  ;;  %v6263_v2 = vpop.eup %6262  ;;  %v8282_v19 = vld [vmem:[#allocation24_spill] sm:$0xff] }
 0x879   :  { %v2331_v11 = vadd.f32 0.5, %v2330_v44  ;;  %v6265_v15 = vpop.eup %6264  ;;  %v8279_v44 = vld [vmem:[#allocation21_spill] sm:$0xff] }
 0x87a   :  { %v2334_v21 = vadd.f32 0.5, %v2333_v59  ;;  %v2337_v26 = vmul.f32 0.5, %v6265_v15  ;;  %v8283_v59 = vld [vmem:[#allocation25_spill] sm:$0xff]  ;;  %v8286_v15 = vld [vmem:[#allocation28_spill] sm:$0xff] }
 0x87b   :  { %v2340_v52 = vmul.f32 %v6263_v2, %v2331_v11  ;;  %v8276_v2 = vld [vmem:[#allocation18_spill] sm:$0xff]  ;;  %v8277_v11 = vld [vmem:[#allocation19_spill] sm:$0xff] }
 0x87c   :  { %v2339_v25 = vmul.f32 %v2334_v21, %v7283_v8  ;;  %v2338_v61 = vadd.f32 0.5, %v2337_v26  ;;  %v8273_v8 = vld [vmem:[#allocation15_spill] sm:$0xff]  ;;  %v8274_v21 = vld [vmem:[#allocation16_spill] sm:$0xff]  ;;  %v8287_v26 = vld [vmem:[#allocation29_spill] sm:$0xff] }
 0x87e   :  { %v7407_v43 = vadd.f32 %v2340_v52, %v2339_v25  ;;  %v8278_v25 = vld [vmem:[#allocation20_spill] sm:$0xff]  ;;  %v8285_v52 = vld [vmem:[#allocation27_spill] sm:$0xff] }
 0x880   :  { %6266 = vtanh.f32 %v7407_v43 }
 0x88a   :  { %v6267_v37 = vpop.eup %6266 }
 0x88b   :  { %v2343_v29 = vmul.f32 %v6267_v37, %v2338_v61  ;;  %v8288_v61 = vld [vmem:[#allocation30_spill] sm:$0xff]  ;;  %v8289_v37 = vld [vmem:[#allocation31_spill] sm:$0xff] }
 0x88d   :  { %2409 = vmatmul.mubr.f32.vlgmr.msra.gmra.mrb[24].mxu0 %v2343_v29  ;;  %2480 = vmatmul.mubr.f32.vlgmr.msra.gmra.mrb[24].mxu1 %v2343_v29  ;;  %v8290_v29 = vld [vmem:[#allocation32_spill] sm:$0xff] }
 0x88e   :  { %5294 = vmatpush1.bf16.msra.mxu0 %v6631_v35  ;;  %5326 = vmatpush1.bf16.msra.mxu1 %v6634_v38 }
 0x88f   :  { %5296 = vmatprep.subr.bf16.mxu0 %v6637_v42  ;;  %5328 = vmatprep.subr.bf16.mxu1 %v6643_v47 }
 0x890   :  { %2554 = vmatprep.mubr.f32.mxu0 %v8048_v12  ;;  %2625 = vmatprep.mubr.f32.mxu1 %v8048_v12 }
 0x892   :  { %5298 = vmatpush1.bf16.msra.mxu0 %v6647_v50  ;;  %5330 = vmatpush1.bf16.msra.mxu1 %v6651_v54 }
 0x893   :  { %5300 = vmatprep.subr.bf16.mxu0 %v6655_v57  ;;  %5332 = vmatprep.subr.bf16.mxu1 %v6659_v60 }
 0x896   :  { %5302 = vmatpush1.bf16.msra.mxu0 %v6666_v1  ;;  %5334 = vmatpush1.bf16.msra.mxu1 %v6670_v4 }
 0x897   :  { %5304 = vmatprep.subr.bf16.mxu0 %v6674_v7  ;;  %5336 = vmatprep.subr.bf16.mxu1 %v6678_v10 }
 0x89a   :  { %5306 = vmatpush1.bf16.msra.mxu0 %v6685_v14  ;;  %5338 = vmatpush1.bf16.msra.mxu1 %v6689_v17 }
 0x89b   :  { %5308 = vmatprep.subr.bf16.mxu0 %v6693_v20  ;;  %5340 = vmatprep.subr.bf16.mxu1 %v6697_v23 }
 0x89e   :  { %5310 = vmatpush1.bf16.msra.mxu0 %v6704_v27  ;;  %5342 = vmatpush1.bf16.msra.mxu1 %v6708_v32 }
 0x89f   :  { %5312 = vmatprep.subr.bf16.mxu0 %v6712_v36  ;;  %5344 = vmatprep.subr.bf16.mxu1 %v6716_v40 }
 0x8a2   :  { %5314 = vmatpush1.bf16.msra.mxu0 %v6723_v45  ;;  %5346 = vmatpush1.bf16.msra.mxu1 %v6727_v49 }
 0x8a3   :  { %5316 = vmatprep.subr.bf16.mxu0 %v6731_v53  ;;  %5348 = vmatprep.subr.bf16.mxu1 %v6735_v58 }
 0x8a6   :  { %5318 = vmatpush1.bf16.msra.mxu0 %v6742_v63  ;;  %5350 = vmatpush1.bf16.msra.mxu1 %v6746_v5 }
 0x8a7   :  { %5320 = vmatprep.subr.bf16.mxu0 %v6750_v9  ;;  %5352 = vmatprep.subr.bf16.mxu1 %v6754_v13 }
 0x8aa   :  { %5322 = vmatpush1.bf16.msra.mxu0 %v6761_v16  ;;  %5354 = vmatpush1.bf16.msra.mxu1 %v6765_v18 }
 0x8ab   :  { %5356 = vmatprep.subr.bf16.mxu0 %v6780_v24  ;;  %5388 = vmatprep.subr.bf16.mxu1 %v6782_v31 }
 0x8ad   :  { %2555 = vmatmul.mubr.f32.vlgmr.msra.gmra.mrb[8].mxu0 %v7364_v51  ;;  %2626 = vmatmul.mubr.f32.vlgmr.msra.gmra.mrb[8].mxu1 %v7364_v51  ;;  %v8275_v51 = vld [vmem:[#allocation17_spill] sm:$0xff] }
 0x8ae   :  { %5358 = vmatpush1.bf16.msra.mxu0 %v6784_v33  ;;  %5390 = vmatpush1.bf16.msra.mxu1 %v6787_v39 }
 0x8af   :  { %5360 = vmatprep.subr.bf16.mxu0 %v6792_v46  ;;  %5392 = vmatprep.subr.bf16.mxu1 %v6794_v55 }
 0x8b0   :  { %2715 = vmatprep.mubr.f32.mxu0 %v8048_v12  ;;  %2786 = vmatprep.mubr.f32.mxu1 %v8048_v12 }
 0x8b2   :  { %5362 = vmatpush1.bf16.msra.mxu0 %v6796_v56  ;;  %5394 = vmatpush1.bf16.msra.mxu1 %v6799_v62 }
 0x8b3   :  { %5364 = vmatprep.subr.bf16.mxu0 %v8273_v8  ;;  %5396 = vmatprep.subr.bf16.mxu1 %v8274_v21 }
 0x8b6   :  { %5366 = vmatpush1.bf16.msra.mxu0 %v8275_v51  ;;  %5398 = vmatpush1.bf16.msra.mxu1 %v8276_v2 }
 0x8b7   :  { %5368 = vmatprep.subr.bf16.mxu0 %v8277_v11  ;;  %5400 = vmatprep.subr.bf16.mxu1 %v8278_v25 }
 0x8ba   :  { %5370 = vmatpush1.bf16.msra.mxu0 %v8279_v44  ;;  %5402 = vmatpush1.bf16.msra.mxu1 %v8280_v6  ;;  %v8291_v6 = vld [vmem:[#allocation33_spill] sm:$0xff]  ;;  %v8299_v44 = vld [vmem:[#allocation39_spill] sm:$0xff] }
 0x8bb   :  { %5372 = vmatprep.subr.bf16.mxu0 %v8281_v30  ;;  %5404 = vmatprep.subr.bf16.mxu1 %v8282_v19  ;;  %v8292_v30 = vld [vmem:[#allocation34_spill] sm:$0xff]  ;;  %v8293_v19 = vld [vmem:[#allocation35_spill] sm:$0xff] }
 0x8be   :  { %5374 = vmatpush1.bf16.msra.mxu0 %v8283_v59  ;;  %5406 = vmatpush1.bf16.msra.mxu1 %v8284_v22  ;;  %v8294_v59 = vld [vmem:[#allocation36_spill] sm:$0xff]  ;;  %v8295_v22 = vld [vmem:[#allocation37_spill] sm:$0xff] }
 0x8bf   :  { %5376 = vmatprep.subr.bf16.mxu0 %v8285_v52  ;;  %5408 = vmatprep.subr.bf16.mxu1 %v8286_v15  ;;  %v8296_v52 = vld [vmem:[#allocation38_spill] sm:$0xff]  ;;  %v8297_v15 = vld [vmem:[#allocation44_spill] sm:$0xff] }
 0x8c2   :  { %5378 = vmatpush1.bf16.msra.mxu0 %v8287_v26  ;;  %5410 = vmatpush1.bf16.msra.mxu1 %v8288_v61  ;;  %v8298_v26 = vld [vmem:[#allocation45_spill] sm:$0xff] }
 0x8c3   :  { %5380 = vmatprep.subr.bf16.mxu0 %v8289_v37  ;;  %5412 = vmatprep.subr.bf16.mxu1 %v8290_v29 }
 0x8c6   :  { %5382 = vmatpush1.bf16.msra.mxu0 %v8291_v6  ;;  %5414 = vmatpush1.bf16.msra.mxu1 %v8292_v30 }
 0x8c7   :  { %5384 = vmatprep.subr.bf16.mxu0 %v8293_v19  ;;  %5416 = vmatprep.subr.bf16.mxu1 %v8294_v59 }
 0x8ca   :  { %5386 = vmatpush1.bf16.msra.mxu0 %v8295_v22  ;;  %5418 = vmatpush1.bf16.msra.mxu1 %v8296_v52 }
 0x8cb   :  { %5420 = vmatprep.subr.bf16.mxu0 %v8297_v15  ;;  %5452 = vmatprep.subr.bf16.mxu1 %v8298_v26 }
 0x980   :  { %v2556_v61 = vpop.f32.mrb[8].mxu0  ;;  %v2627_v37 = vpop.f32.mrb[8].mxu1 }
 0x981   :  { %v6067_v29 = vadd.f32 %v2556_v61, %v8299_v44  ;;  %v2558_v25 = vpop.f32.mrb[9].mxu0  ;;  %v2629_v6 = vpop.f32.mrb[9].mxu1  ;;  %v6083_v19 = vadd.f32 %v2627_v37, %v8111_v28  ;;  %v8300_v44 = vld [vmem:[#allocation43_spill] sm:$0xff] }
 0x982   :  { %v6068_v30 = vadd.f32 %v2558_v25, %v8110_v34  ;;  %v6084_v22 = vadd.f32 %v2629_v6, %v8175_v48 }
 0x983   :  { %6268 = vtanh.f32 %v6067_v29  ;;  %v8312_v29 = vld [vmem:[#allocation56_spill] sm:$0xff] }
 0x984   :  { %6270 = vtanh.f32 %v6068_v30 }
 0x985   :  { %6272 = vtanh.f32 %v6083_v19 }
 0x986   :  { %6274 = vtanh.f32 %v6084_v22  ;;  %v8303_v22 = vld [vmem:[#allocation47_spill] sm:$0xff] }
 0x98d   :  { %v6269_v52 = vpop.eup %6268 }
 0x98e   :  { %v2637_v59 = vmul.f32 0.5, %v6269_v52  ;;  %v6271_v15 = vpop.eup %6270  ;;  %v8309_v52 = vld [vmem:[#allocation53_spill] sm:$0xff] }
 0x98f   :  { %v2640_v26 = vmul.f32 0.5, %v6271_v15  ;;  %v6273_v2 = vpop.eup %6272  ;;  %v8310_v15 = vld [vmem:[#allocation54_spill] sm:$0xff] }
 0x990   :  { %v2638_v11 = vadd.f32 0.5, %v2637_v59  ;;  %v6275_v25 = vpop.eup %6274  ;;  %v8302_v59 = vld [vmem:[#allocation46_spill] sm:$0xff] }
 0x991   :  { %v2641_v51 = vadd.f32 0.5, %v2640_v26  ;;  %v2644_v30 = vmul.f32 0.5, %v6275_v25  ;;  %v8311_v26 = vld [vmem:[#allocation55_spill] sm:$0xff]  ;;  %v8314_v25 = vld [vmem:[#allocation58_spill] sm:$0xff] }
 0x992   :  { %v2647_v61 = vmul.f32 %v6273_v2, %v2638_v11  ;;  %v8304_v2 = vld [vmem:[#allocation48_spill] sm:$0xff]  ;;  %v8307_v11 = vld [vmem:[#allocation51_spill] sm:$0xff] }
 0x993   :  { %v2646_v21 = vmul.f32 %v2641_v51, %v8300_v44  ;;  %v2645_v19 = vadd.f32 0.5, %v2644_v30  ;;  %v8306_v51 = vld [vmem:[#allocation50_spill] sm:$0xff]  ;;  %v8308_v44 = vld [vmem:[#allocation52_spill] sm:$0xff]  ;;  %v8315_v30 = vld [vmem:[#allocation59_spill] sm:$0xff] }
 0x995   :  { %v7485_v8 = vadd.f32 %v2647_v61, %v2646_v21  ;;  %v8305_v21 = vld [vmem:[#allocation49_spill] sm:$0xff] }
 0x996   :  { %v8313_v61 = vld [vmem:[#allocation57_spill] sm:$0xff] }
 0x997   :  { %8301 = vst [vmem:[#allocation77_spill] sm:$0xff] %v7485_v8  ;;  %6276 = vtanh.f32 %v7485_v8 }
 0x9a1   :  { %v6277_v37 = vpop.eup %6276 }
 0x9a2   :  { %v7488_v6 = vmul.f32 %v6277_v37, %v2645_v19  ;;  %v8316_v19 = vld [vmem:[#allocation60_spill] sm:$0xff]  ;;  %v8317_v37 = vld [vmem:[#allocation61_spill] sm:$0xff] }
 0x9a4   :  { %2716 = vmatmul.mubr.f32.vlgmr.msra.gmra.mrb[24].mxu0 %v7488_v6  ;;  %2787 = vmatmul.mubr.f32.vlgmr.msra.gmra.mrb[24].mxu1 %v7488_v6 }
 0x9a5   :  { %5422 = vmatpush1.bf16.msra.mxu0 %v8302_v59  ;;  %5454 = vmatpush1.bf16.msra.mxu1 %v8303_v22 }
 0x9a6   :  { %5424 = vmatprep.subr.bf16.mxu0 %v8304_v2  ;;  %5456 = vmatprep.subr.bf16.mxu1 %v8305_v21 }
 0x9a7   :  { %2872 = vmatprep.mubr.f32.mxu0 %v8048_v12  ;;  %2943 = vmatprep.mubr.f32.mxu1 %v8048_v12 }
 0x9a9   :  { %5426 = vmatpush1.bf16.msra.mxu0 %v8306_v51  ;;  %5458 = vmatpush1.bf16.msra.mxu1 %v8307_v11  ;;  %v8318_v11 = vld [vmem:[#allocation62_spill] sm:$0xff]  ;;  %v8334_v51 = vld [vmem:[#allocation76_spill] sm:$0xff] }
 0x9aa   :  { %5428 = vmatprep.subr.bf16.mxu0 %v8308_v44  ;;  %5460 = vmatprep.subr.bf16.mxu1 %v8309_v52  ;;  %v8319_v44 = vld [vmem:[#allocation63_spill] sm:$0xff]  ;;  %v8320_v52 = vld [vmem:[#allocation64_spill] sm:$0xff] }
 0x9ad   :  { %5430 = vmatpush1.bf16.msra.mxu0 %v8310_v15  ;;  %5462 = vmatpush1.bf16.msra.mxu1 %v8311_v26  ;;  %v8321_v15 = vld [vmem:[#allocation65_spill] sm:$0xff]  ;;  %v8322_v26 = vld [vmem:[#allocation66_spill] sm:$0xff] }
 0x9ae   :  { %5432 = vmatprep.subr.bf16.mxu0 %v8312_v29  ;;  %5464 = vmatprep.subr.bf16.mxu1 %v8313_v61  ;;  %v8323_v29 = vld [vmem:[#allocation67_spill] sm:$0xff]  ;;  %v8324_v61 = vld [vmem:[#allocation68_spill] sm:$0xff] }
 0x9b1   :  { %5434 = vmatpush1.bf16.msra.mxu0 %v8314_v25  ;;  %5466 = vmatpush1.bf16.msra.mxu1 %v8315_v30  ;;  %v8325_v25 = vld [vmem:[#allocation69_spill] sm:$0xff]  ;;  %v8326_v30 = vld [vmem:[#allocation70_spill] sm:$0xff] }
 0x9b2   :  { %5436 = vmatprep.subr.bf16.mxu0 %v8316_v19  ;;  %5468 = vmatprep.subr.bf16.mxu1 %v8317_v37  ;;  %v8327_v19 = vld [vmem:[#allocation71_spill] sm:$0xff]  ;;  %v8328_v37 = vld [vmem:[#allocation72_spill] sm:$0xff] }
 0x9b5   :  { %5438 = vmatpush1.bf16.msra.mxu0 %v8318_v11  ;;  %5470 = vmatpush1.bf16.msra.mxu1 %v8319_v44  ;;  %v8329_v11 = vld [vmem:[#allocation73_spill] sm:$0xff]  ;;  %v8330_v44 = vld [vmem:[#allocation74_spill] sm:$0xff] }
 0x9b6   :  { %5440 = vmatprep.subr.bf16.mxu0 %v8320_v52  ;;  %5472 = vmatprep.subr.bf16.mxu1 %v8321_v15  ;;  %v8331_v52 = vld [vmem:[#allocation75_spill] sm:$0xff]  ;;  %v8332_v15 = vld [vmem:[#allocation13_spill] sm:$0xff] }
 0x9b9   :  { %5442 = vmatpush1.bf16.msra.mxu0 %v8322_v26  ;;  %5474 = vmatpush1.bf16.msra.mxu1 %v8323_v29  ;;  %v8333_v26 = vld [vmem:[#allocation14_spill] sm:$0xff] }
 0x9ba   :  { %5444 = vmatprep.subr.bf16.mxu0 %v8324_v61  ;;  %5476 = vmatprep.subr.bf16.mxu1 %v8325_v25 }
 0x9bd   :  { %5446 = vmatpush1.bf16.msra.mxu0 %v8326_v30  ;;  %5478 = vmatpush1.bf16.msra.mxu1 %v8327_v19 }
 0x9be   :  { %5448 = vmatprep.subr.bf16.mxu0 %v8328_v37  ;;  %5480 = vmatprep.subr.bf16.mxu1 %v8329_v11 }
 0x9c1   :  { %5450 = vmatpush1.bf16.msra.mxu0 %v8330_v44  ;;  %5482 = vmatpush1.bf16.msra.mxu1 %v8331_v52 }
 0x9c2   :  { %5484 = vmatprep.subr.bf16.mxu0 %v8332_v15  ;;  %5516 = vmatprep.subr.bf16.mxu1 %v8333_v26 }
 0xa77   :  { %v2717_v29 = vpop.f32.mrb[24].mxu0  ;;  %v2788_v61 = vpop.f32.mrb[24].mxu1 }
 0xa78   :  { %v6103_v25 = vadd.f32 %v2717_v29, %v8334_v51  ;;  %v2719_v21 = vpop.f32.mrb[25].mxu0  ;;  %v2790_v30 = vpop.f32.mrb[25].mxu1  ;;  %v6105_v37 = vadd.f32 %v2788_v61, %v7025_v3 }
 0xa79   :  { %v6104_v19 = vadd.f32 %v2719_v21, %v8148_v41  ;;  %v6106_v44 = vadd.f32 %v2790_v30, %v7032_v0 }
 0xa7a   :  { %6278 = vtanh.f32 %v6103_v25 }
 0xa7b   :  { %6280 = vtanh.f32 %v6104_v19 }
 0xa7c   :  { %6282 = vtanh.f32 %v6105_v37  ;;  %v8346_v37 = vld [vmem:[#allocation26_spill] sm:$0xff] }
 0xa7d   :  { %6284 = vtanh.f32 %v6106_v44  ;;  %v8342_v44 = vld [vmem:[#allocation22_spill] sm:$0xff] }
 0xa84   :  { %v6279_v52 = vpop.eup %6278 }
 0xa85   :  { %v2794_v11 = vmul.f32 0.5, %v6279_v52  ;;  %v6281_v15 = vpop.eup %6280  ;;  %v8343_v52 = vld [vmem:[#allocation23_spill] sm:$0xff] }
 0xa86   :  { %v2797_v26 = vmul.f32 0.5, %v6281_v15  ;;  %v6283_v22 = vpop.eup %6282  ;;  %v8344_v15 = vld [vmem:[#allocation24_spill] sm:$0xff] }
 0xa87   :  { %v2795_v2 = vadd.f32 0.5, %v2794_v11  ;;  %v6285_v21 = vpop.eup %6284  ;;  %v8341_v11 = vld [vmem:[#allocation21_spill] sm:$0xff] }
 0xa88   :  { %v2798_v59 = vadd.f32 0.5, %v2797_v26  ;;  %v2801_v61 = vmul.f32 0.5, %v6285_v21  ;;  %v8345_v26 = vld [vmem:[#allocation25_spill] sm:$0xff]  ;;  %v8348_v21 = vld [vmem:[#allocation28_spill] sm:$0xff] }
 0xa89   :  { %v2804_v29 = vmul.f32 %v6283_v22, %v2795_v2  ;;  %v8338_v22 = vld [vmem:[#allocation18_spill] sm:$0xff]  ;;  %v8339_v2 = vld [vmem:[#allocation19_spill] sm:$0xff] }
 0xa8a   :  { %v2803_v51 = vmul.f32 %v2798_v59, %v7407_v43  ;;  %v2802_v25 = vadd.f32 0.5, %v2801_v61  ;;  %v8335_v43 = vld [vmem:[#allocation15_spill] sm:$0xff]  ;;  %v8336_v59 = vld [vmem:[#allocation16_spill] sm:$0xff]  ;;  %v8349_v61 = vld [vmem:[#allocation29_spill] sm:$0xff] }
 0xa8c   :  { %v7531_v8 = vadd.f32 %v2804_v29, %v2803_v51  ;;  %v8340_v51 = vld [vmem:[#allocation20_spill] sm:$0xff]  ;;  %v8347_v29 = vld [vmem:[#allocation27_spill] sm:$0xff] }
 0xa8e   :  { %6286 = vtanh.f32 %v7531_v8 }
 0xa98   :  { %v6287_v19 = vpop.eup %6286 }
 0xa99   :  { %v2807_v30 = vmul.f32 %v6287_v19, %v2802_v25  ;;  %v8350_v25 = vld [vmem:[#allocation30_spill] sm:$0xff]  ;;  %v8351_v19 = vld [vmem:[#allocation31_spill] sm:$0xff] }
 0xa9b   :  { %2873 = vmatmul.mubr.f32.vlgmr.msra.gmra.mrb[26].mxu0 %v2807_v30  ;;  %2944 = vmatmul.mubr.f32.vlgmr.msra.gmra.mrb[26].mxu1 %v2807_v30  ;;  %v8352_v30 = vld [vmem:[#allocation32_spill] sm:$0xff] }
 0xa9c   :  { %5486 = vmatpush1.bf16.msra.mxu0 %v6631_v35  ;;  %5518 = vmatpush1.bf16.msra.mxu1 %v6634_v38 }
 0xa9d   :  { %5488 = vmatprep.subr.bf16.mxu0 %v6637_v42  ;;  %5520 = vmatprep.subr.bf16.mxu1 %v6643_v47 }
 0xa9e   :  { %3018 = vmatprep.mubr.f32.mxu0 %v8048_v12  ;;  %3089 = vmatprep.mubr.f32.mxu1 %v8048_v12 }
 0xaa0   :  { %5490 = vmatpush1.bf16.msra.mxu0 %v6647_v50  ;;  %5522 = vmatpush1.bf16.msra.mxu1 %v6651_v54 }
 0xaa1   :  { %5492 = vmatprep.subr.bf16.mxu0 %v6655_v57  ;;  %5524 = vmatprep.subr.bf16.mxu1 %v6659_v60 }
 0xaa4   :  { %5494 = vmatpush1.bf16.msra.mxu0 %v6666_v1  ;;  %5526 = vmatpush1.bf16.msra.mxu1 %v6670_v4 }
 0xaa5   :  { %5496 = vmatprep.subr.bf16.mxu0 %v6674_v7  ;;  %5528 = vmatprep.subr.bf16.mxu1 %v6678_v10 }
 0xaa8   :  { %5498 = vmatpush1.bf16.msra.mxu0 %v6685_v14  ;;  %5530 = vmatpush1.bf16.msra.mxu1 %v6689_v17 }
 0xaa9   :  { %5500 = vmatprep.subr.bf16.mxu0 %v6693_v20  ;;  %5532 = vmatprep.subr.bf16.mxu1 %v6697_v23 }
 0xaac   :  { %5502 = vmatpush1.bf16.msra.mxu0 %v6704_v27  ;;  %5534 = vmatpush1.bf16.msra.mxu1 %v6708_v32 }
 0xaad   :  { %5504 = vmatprep.subr.bf16.mxu0 %v6712_v36  ;;  %5536 = vmatprep.subr.bf16.mxu1 %v6716_v40 }
 0xab0   :  { %5506 = vmatpush1.bf16.msra.mxu0 %v6723_v45  ;;  %5538 = vmatpush1.bf16.msra.mxu1 %v6727_v49 }
 0xab1   :  { %5508 = vmatprep.subr.bf16.mxu0 %v6731_v53  ;;  %5540 = vmatprep.subr.bf16.mxu1 %v6735_v58 }
 0xab4   :  { %5510 = vmatpush1.bf16.msra.mxu0 %v6742_v63  ;;  %5542 = vmatpush1.bf16.msra.mxu1 %v6746_v5 }
 0xab5   :  { %5512 = vmatprep.subr.bf16.mxu0 %v6750_v9  ;;  %5544 = vmatprep.subr.bf16.mxu1 %v6754_v13 }
 0xab8   :  { %5514 = vmatpush1.bf16.msra.mxu0 %v6761_v16  ;;  %5546 = vmatpush1.bf16.msra.mxu1 %v6765_v18 }
 0xab9   :  { %5548 = vmatprep.subr.bf16.mxu0 %v6780_v24  ;;  %5580 = vmatprep.subr.bf16.mxu1 %v6782_v31 }
 0xabb   :  { %3019 = vmatmul.mubr.f32.vlgmr.msra.gmra.mrb[10].mxu0 %v7488_v6  ;;  %3090 = vmatmul.mubr.f32.vlgmr.msra.gmra.mrb[10].mxu1 %v7488_v6  ;;  %v8337_v6 = vld [vmem:[#allocation17_spill] sm:$0xff] }
 0xabc   :  { %5550 = vmatpush1.bf16.msra.mxu0 %v6784_v33  ;;  %5582 = vmatpush1.bf16.msra.mxu1 %v6787_v39 }
 0xabd   :  { %5552 = vmatprep.subr.bf16.mxu0 %v6792_v46  ;;  %5584 = vmatprep.subr.bf16.mxu1 %v6794_v55 }
 0xabe   :  { %3179 = vmatprep.mubr.f32.mxu0 %v8048_v12  ;;  %3250 = vmatprep.mubr.f32.mxu1 %v8048_v12 }
 0xac0   :  { %5554 = vmatpush1.bf16.msra.mxu0 %v6796_v56  ;;  %5586 = vmatpush1.bf16.msra.mxu1 %v6799_v62 }
 0xac1   :  { %5556 = vmatprep.subr.bf16.mxu0 %v8335_v43  ;;  %5588 = vmatprep.subr.bf16.mxu1 %v8336_v59 }
 0xac4   :  { %5558 = vmatpush1.bf16.msra.mxu0 %v8337_v6  ;;  %5590 = vmatpush1.bf16.msra.mxu1 %v8338_v22 }
 0xac5   :  { %5560 = vmatprep.subr.bf16.mxu0 %v8339_v2  ;;  %5592 = vmatprep.subr.bf16.mxu1 %v8340_v51 }
 0xac8   :  { %5562 = vmatpush1.bf16.msra.mxu0 %v8341_v11  ;;  %5594 = vmatpush1.bf16.msra.mxu1 %v8342_v44  ;;  %v8353_v44 = vld [vmem:[#allocation33_spill] sm:$0xff]  ;;  %v8361_v11 = vld [vmem:[#allocation39_spill] sm:$0xff] }
 0xac9   :  { %5564 = vmatprep.subr.bf16.mxu0 %v8343_v52  ;;  %5596 = vmatprep.subr.bf16.mxu1 %v8344_v15  ;;  %v8354_v52 = vld [vmem:[#allocation34_spill] sm:$0xff]  ;;  %v8355_v15 = vld [vmem:[#allocation35_spill] sm:$0xff] }
 0xacc   :  { %5566 = vmatpush1.bf16.msra.mxu0 %v8345_v26  ;;  %5598 = vmatpush1.bf16.msra.mxu1 %v8346_v37  ;;  %v8356_v26 = vld [vmem:[#allocation36_spill] sm:$0xff]  ;;  %v8357_v37 = vld [vmem:[#allocation37_spill] sm:$0xff] }
 0xacd   :  { %5568 = vmatprep.subr.bf16.mxu0 %v8347_v29  ;;  %5600 = vmatprep.subr.bf16.mxu1 %v8348_v21  ;;  %v8358_v29 = vld [vmem:[#allocation38_spill] sm:$0xff]  ;;  %v8359_v21 = vld [vmem:[#allocation44_spill] sm:$0xff] }
 0xad0   :  { %5570 = vmatpush1.bf16.msra.mxu0 %v8349_v61  ;;  %5602 = vmatpush1.bf16.msra.mxu1 %v8350_v25  ;;  %v8360_v61 = vld [vmem:[#allocation45_spill] sm:$0xff] }
 0xad1   :  { %5572 = vmatprep.subr.bf16.mxu0 %v8351_v19  ;;  %5604 = vmatprep.subr.bf16.mxu1 %v8352_v30 }
 0xad4   :  { %5574 = vmatpush1.bf16.msra.mxu0 %v8353_v44  ;;  %5606 = vmatpush1.bf16.msra.mxu1 %v8354_v52 }
 0xad5   :  { %5576 = vmatprep.subr.bf16.mxu0 %v8355_v15  ;;  %5608 = vmatprep.subr.bf16.mxu1 %v8356_v26 }
 0xad8   :  { %5578 = vmatpush1.bf16.msra.mxu0 %v8357_v37  ;;  %5610 = vmatpush1.bf16.msra.mxu1 %v8358_v29 }
 0xad9   :  { %5612 = vmatprep.subr.bf16.mxu0 %v8359_v21  ;;  %5644 = vmatprep.subr.bf16.mxu1 %v8360_v61 }
 0xb8e   :  { %v3020_v25 = vpop.f32.mrb[10].mxu0  ;;  %v3091_v19 = vpop.f32.mrb[10].mxu1 }
 0xb8f   :  { %v6069_v30 = vadd.f32 %v3020_v25, %v8361_v11  ;;  %v3022_v51 = vpop.f32.mrb[11].mxu0  ;;  %v3093_v44 = vpop.f32.mrb[11].mxu1  ;;  %v6085_v15 = vadd.f32 %v3091_v19, %v8111_v28  ;;  %v8362_v11 = vld [vmem:[#allocation77_spill] sm:$0xff] }
 0xb90   :  { %v6070_v52 = vadd.f32 %v3022_v51, %v8110_v34  ;;  %v6086_v37 = vadd.f32 %v3093_v44, %v8175_v48 }
 0xb91   :  { %6288 = vtanh.f32 %v6069_v30  ;;  %v8374_v30 = vld [vmem:[#allocation56_spill] sm:$0xff] }
 0xb92   :  { %6290 = vtanh.f32 %v6070_v52 }
 0xb93   :  { %6292 = vtanh.f32 %v6085_v15 }
 0xb94   :  { %6294 = vtanh.f32 %v6086_v37  ;;  %v8365_v37 = vld [vmem:[#allocation47_spill] sm:$0xff] }
 0xb9b   :  { %v6289_v29 = vpop.eup %6288 }
 0xb9c   :  { %v3101_v26 = vmul.f32 0.5, %v6289_v29  ;;  %v6291_v21 = vpop.eup %6290  ;;  %v8371_v29 = vld [vmem:[#allocation53_spill] sm:$0xff] }
 0xb9d   :  { %v3104_v61 = vmul.f32 0.5, %v6291_v21  ;;  %v6293_v22 = vpop.eup %6292  ;;  %v8372_v21 = vld [vmem:[#allocation54_spill] sm:$0xff] }
 0xb9e   :  { %v3102_v2 = vadd.f32 0.5, %v3101_v26  ;;  %v6295_v51 = vpop.eup %6294  ;;  %v8364_v26 = vld [vmem:[#allocation46_spill] sm:$0xff] }
 0xb9f   :  { %v3105_v6 = vadd.f32 0.5, %v3104_v61  ;;  %v3108_v52 = vmul.f32 0.5, %v6295_v51  ;;  %v8373_v61 = vld [vmem:[#allocation55_spill] sm:$0xff]  ;;  %v8376_v51 = vld [vmem:[#allocation58_spill] sm:$0xff] }
 0xba0   :  { %v3111_v25 = vmul.f32 %v6293_v22, %v3102_v2  ;;  %v8366_v22 = vld [vmem:[#allocation48_spill] sm:$0xff]  ;;  %v8369_v2 = vld [vmem:[#allocation51_spill] sm:$0xff] }
 0xba1   :  { %v3110_v59 = vmul.f32 %v3105_v6, %v8362_v11  ;;  %v3109_v15 = vadd.f32 0.5, %v3108_v52  ;;  %v8368_v6 = vld [vmem:[#allocation50_spill] sm:$0xff]  ;;  %v8370_v11 = vld [vmem:[#allocation52_spill] sm:$0xff]  ;;  %v8377_v52 = vld [vmem:[#allocation59_spill] sm:$0xff] }
 0xba3   :  { %v7609_v43 = vadd.f32 %v3111_v25, %v3110_v59  ;;  %v8367_v59 = vld [vmem:[#allocation49_spill] sm:$0xff] }
 0xba4   :  { %v8375_v25 = vld [vmem:[#allocation57_spill] sm:$0xff] }
 0xba5   :  { %8363 = vst [vmem:[#allocation42_spill] sm:$0xff] %v7609_v43  ;;  %6296 = vtanh.f32 %v7609_v43 }
 0xbaf   :  { %v6297_v19 = vpop.eup %6296 }
 0xbb0   :  { %v7612_v44 = vmul.f32 %v6297_v19, %v3109_v15  ;;  %v8378_v15 = vld [vmem:[#allocation60_spill] sm:$0xff]  ;;  %v8379_v19 = vld [vmem:[#allocation61_spill] sm:$0xff] }
 0xbb2   :  { %3180 = vmatmul.mubr.f32.vlgmr.msra.gmra.mrb[26].mxu0 %v7612_v44  ;;  %3251 = vmatmul.mubr.f32.vlgmr.msra.gmra.mrb[26].mxu1 %v7612_v44 }
 0xbb3   :  { %5614 = vmatpush1.bf16.msra.mxu0 %v8364_v26  ;;  %5646 = vmatpush1.bf16.msra.mxu1 %v8365_v37 }
 0xbb4   :  { %5616 = vmatprep.subr.bf16.mxu0 %v8366_v22  ;;  %5648 = vmatprep.subr.bf16.mxu1 %v8367_v59 }
 0xbb5   :  { %3336 = vmatprep.mubr.f32.mxu0 %v8048_v12  ;;  %3407 = vmatprep.mubr.f32.mxu1 %v8048_v12 }
 0xbb7   :  { %5618 = vmatpush1.bf16.msra.mxu0 %v8368_v6  ;;  %5650 = vmatpush1.bf16.msra.mxu1 %v8369_v2  ;;  %v8380_v2 = vld [vmem:[#allocation62_spill] sm:$0xff]  ;;  %v8396_v6 = vld [vmem:[#allocation76_spill] sm:$0xff] }
 0xbb8   :  { %5620 = vmatprep.subr.bf16.mxu0 %v8370_v11  ;;  %5652 = vmatprep.subr.bf16.mxu1 %v8371_v29  ;;  %v8381_v11 = vld [vmem:[#allocation63_spill] sm:$0xff]  ;;  %v8382_v29 = vld [vmem:[#allocation64_spill] sm:$0xff] }
 0xbbb   :  { %5622 = vmatpush1.bf16.msra.mxu0 %v8372_v21  ;;  %5654 = vmatpush1.bf16.msra.mxu1 %v8373_v61  ;;  %v8383_v21 = vld [vmem:[#allocation65_spill] sm:$0xff]  ;;  %v8384_v61 = vld [vmem:[#allocation66_spill] sm:$0xff] }
 0xbbc   :  { %5624 = vmatprep.subr.bf16.mxu0 %v8374_v30  ;;  %5656 = vmatprep.subr.bf16.mxu1 %v8375_v25  ;;  %v8385_v30 = vld [vmem:[#allocation67_spill] sm:$0xff]  ;;  %v8386_v25 = vld [vmem:[#allocation68_spill] sm:$0xff] }
 0xbbf   :  { %5626 = vmatpush1.bf16.msra.mxu0 %v8376_v51  ;;  %5658 = vmatpush1.bf16.msra.mxu1 %v8377_v52  ;;  %v8387_v51 = vld [vmem:[#allocation69_spill] sm:$0xff]  ;;  %v8388_v52 = vld [vmem:[#allocation70_spill] sm:$0xff] }
 0xbc0   :  { %5628 = vmatprep.subr.bf16.mxu0 %v8378_v15  ;;  %5660 = vmatprep.subr.bf16.mxu1 %v8379_v19  ;;  %v8389_v15 = vld [vmem:[#allocation71_spill] sm:$0xff]  ;;  %v8390_v19 = vld [vmem:[#allocation72_spill] sm:$0xff] }
 0xbc3   :  { %5630 = vmatpush1.bf16.msra.mxu0 %v8380_v2  ;;  %5662 = vmatpush1.bf16.msra.mxu1 %v8381_v11  ;;  %v8391_v2 = vld [vmem:[#allocation73_spill] sm:$0xff]  ;;  %v8392_v11 = vld [vmem:[#allocation74_spill] sm:$0xff] }
 0xbc4   :  { %5632 = vmatprep.subr.bf16.mxu0 %v8382_v29  ;;  %5664 = vmatprep.subr.bf16.mxu1 %v8383_v21  ;;  %v8393_v29 = vld [vmem:[#allocation75_spill] sm:$0xff]  ;;  %v8394_v21 = vld [vmem:[#allocation13_spill] sm:$0xff] }
 0xbc7   :  { %5634 = vmatpush1.bf16.msra.mxu0 %v8384_v61  ;;  %5666 = vmatpush1.bf16.msra.mxu1 %v8385_v30  ;;  %v8395_v61 = vld [vmem:[#allocation14_spill] sm:$0xff] }
 0xbc8   :  { %5636 = vmatprep.subr.bf16.mxu0 %v8386_v25  ;;  %5668 = vmatprep.subr.bf16.mxu1 %v8387_v51 }
 0xbcb   :  { %5638 = vmatpush1.bf16.msra.mxu0 %v8388_v52  ;;  %5670 = vmatpush1.bf16.msra.mxu1 %v8389_v15 }
 0xbcc   :  { %5640 = vmatprep.subr.bf16.mxu0 %v8390_v19  ;;  %5672 = vmatprep.subr.bf16.mxu1 %v8391_v2 }
 0xbcf   :  { %5642 = vmatpush1.bf16.msra.mxu0 %v8392_v11  ;;  %5674 = vmatpush1.bf16.msra.mxu1 %v8393_v29 }
 0xbd0   :  { %5676 = vmatprep.subr.bf16.mxu0 %v8394_v21  ;;  %5708 = vmatprep.subr.bf16.mxu1 %v8395_v61 }
 0xc85   :  { %v3181_v30 = vpop.f32.mrb[26].mxu0  ;;  %v3252_v25 = vpop.f32.mrb[26].mxu1 }
 0xc86   :  { %v6107_v51 = vadd.f32 %v3181_v30, %v8396_v6  ;;  %v3183_v59 = vpop.f32.mrb[27].mxu0  ;;  %v3254_v52 = vpop.f32.mrb[27].mxu1  ;;  %v6109_v19 = vadd.f32 %v3252_v25, %v7025_v3 }
 0xc87   :  { %v6108_v15 = vadd.f32 %v3183_v59, %v8148_v41  ;;  %v6110_v11 = vadd.f32 %v3254_v52, %v7032_v0 }
 0xc88   :  { %6298 = vtanh.f32 %v6107_v51 }
 0xc89   :  { %6300 = vtanh.f32 %v6108_v15 }
 0xc8a   :  { %6302 = vtanh.f32 %v6109_v19  ;;  %v8408_v19 = vld [vmem:[#allocation26_spill] sm:$0xff] }
 0xc8b   :  { %6304 = vtanh.f32 %v6110_v11  ;;  %v8404_v11 = vld [vmem:[#allocation22_spill] sm:$0xff] }
 0xc92   :  { %v6299_v29 = vpop.eup %6298 }
 0xc93   :  { %v3258_v2 = vmul.f32 0.5, %v6299_v29  ;;  %v6301_v21 = vpop.eup %6300  ;;  %v8405_v29 = vld [vmem:[#allocation23_spill] sm:$0xff] }
 0xc94   :  { %v3261_v61 = vmul.f32 0.5, %v6301_v21  ;;  %v6303_v37 = vpop.eup %6302  ;;  %v8406_v21 = vld [vmem:[#allocation24_spill] sm:$0xff] }
 0xc95   :  { %v3259_v22 = vadd.f32 0.5, %v3258_v2  ;;  %v6305_v59 = vpop.eup %6304  ;;  %v8403_v2 = vld [vmem:[#allocation21_spill] sm:$0xff] }
 0xc96   :  { %v3262_v26 = vadd.f32 0.5, %v3261_v61  ;;  %v3265_v25 = vmul.f32 0.5, %v6305_v59  ;;  %v8407_v61 = vld [vmem:[#allocation25_spill] sm:$0xff]  ;;  %v8410_v59 = vld [vmem:[#allocation28_spill] sm:$0xff] }
 0xc97   :  { %v3268_v30 = vmul.f32 %v6303_v37, %v3259_v22  ;;  %v8400_v37 = vld [vmem:[#allocation18_spill] sm:$0xff]  ;;  %v8401_v22 = vld [vmem:[#allocation19_spill] sm:$0xff] }
 0xc98   :  { %v3267_v6 = vmul.f32 %v3262_v26, %v7531_v8  ;;  %v3266_v51 = vadd.f32 0.5, %v3265_v25  ;;  %v8397_v8 = vld [vmem:[#allocation15_spill] sm:$0xff]  ;;  %v8398_v26 = vld [vmem:[#allocation16_spill] sm:$0xff]  ;;  %v8411_v25 = vld [vmem:[#allocation29_spill] sm:$0xff] }
 0xc9a   :  { %v7655_v43 = vadd.f32 %v3268_v30, %v3267_v6  ;;  %v8402_v6 = vld [vmem:[#allocation20_spill] sm:$0xff]  ;;  %v8409_v30 = vld [vmem:[#allocation27_spill] sm:$0xff] }
 0xc9c   :  { %6306 = vtanh.f32 %v7655_v43 }
 0xca6   :  { %v6307_v15 = vpop.eup %6306 }
 0xca7   :  { %v3271_v52 = vmul.f32 %v6307_v15, %v3266_v51  ;;  %v8412_v51 = vld [vmem:[#allocation30_spill] sm:$0xff]  ;;  %v8413_v15 = vld [vmem:[#allocation31_spill] sm:$0xff] }
 0xca9   :  { %3337 = vmatmul.mubr.f32.vlgmr.msra.gmra.mrb[28].mxu0 %v3271_v52  ;;  %3408 = vmatmul.mubr.f32.vlgmr.msra.gmra.mrb[28].mxu1 %v3271_v52  ;;  %v8414_v52 = vld [vmem:[#allocation32_spill] sm:$0xff] }
 0xcaa   :  { %5678 = vmatpush1.bf16.msra.mxu0 %v6631_v35  ;;  %5710 = vmatpush1.bf16.msra.mxu1 %v6634_v38 }
 0xcab   :  { %5680 = vmatprep.subr.bf16.mxu0 %v6637_v42  ;;  %5712 = vmatprep.subr.bf16.mxu1 %v6643_v47 }
 0xcac   :  { %3482 = vmatprep.mubr.f32.mxu0 %v8048_v12  ;;  %3553 = vmatprep.mubr.f32.mxu1 %v8048_v12 }
 0xcae   :  { %5682 = vmatpush1.bf16.msra.mxu0 %v6647_v50  ;;  %5714 = vmatpush1.bf16.msra.mxu1 %v6651_v54 }
 0xcaf   :  { %5684 = vmatprep.subr.bf16.mxu0 %v6655_v57  ;;  %5716 = vmatprep.subr.bf16.mxu1 %v6659_v60 }
 0xcb2   :  { %5686 = vmatpush1.bf16.msra.mxu0 %v6666_v1  ;;  %5718 = vmatpush1.bf16.msra.mxu1 %v6670_v4 }
 0xcb3   :  { %5688 = vmatprep.subr.bf16.mxu0 %v6674_v7  ;;  %5720 = vmatprep.subr.bf16.mxu1 %v6678_v10 }
 0xcb6   :  { %5690 = vmatpush1.bf16.msra.mxu0 %v6685_v14  ;;  %5722 = vmatpush1.bf16.msra.mxu1 %v6689_v17 }
 0xcb7   :  { %5692 = vmatprep.subr.bf16.mxu0 %v6693_v20  ;;  %5724 = vmatprep.subr.bf16.mxu1 %v6697_v23 }
 0xcba   :  { %5694 = vmatpush1.bf16.msra.mxu0 %v6704_v27  ;;  %5726 = vmatpush1.bf16.msra.mxu1 %v6708_v32 }
 0xcbb   :  { %5696 = vmatprep.subr.bf16.mxu0 %v6712_v36  ;;  %5728 = vmatprep.subr.bf16.mxu1 %v6716_v40 }
 0xcbe   :  { %5698 = vmatpush1.bf16.msra.mxu0 %v6723_v45  ;;  %5730 = vmatpush1.bf16.msra.mxu1 %v6727_v49 }
 0xcbf   :  { %5700 = vmatprep.subr.bf16.mxu0 %v6731_v53  ;;  %5732 = vmatprep.subr.bf16.mxu1 %v6735_v58 }
 0xcc2   :  { %5702 = vmatpush1.bf16.msra.mxu0 %v6742_v63  ;;  %5734 = vmatpush1.bf16.msra.mxu1 %v6746_v5 }
 0xcc3   :  { %5704 = vmatprep.subr.bf16.mxu0 %v6750_v9  ;;  %5736 = vmatprep.subr.bf16.mxu1 %v6754_v13 }
 0xcc6   :  { %5706 = vmatpush1.bf16.msra.mxu0 %v6761_v16  ;;  %5738 = vmatpush1.bf16.msra.mxu1 %v6765_v18 }
 0xcc7   :  { %5740 = vmatprep.subr.bf16.mxu0 %v6780_v24  ;;  %5772 = vmatprep.subr.bf16.mxu1 %v6782_v31 }
 0xcc9   :  { %3483 = vmatmul.mubr.f32.vlgmr.msra.gmra.mrb[12].mxu0 %v7612_v44  ;;  %3554 = vmatmul.mubr.f32.vlgmr.msra.gmra.mrb[12].mxu1 %v7612_v44  ;;  %v8399_v44 = vld [vmem:[#allocation17_spill] sm:$0xff] }
 0xcca   :  { %5742 = vmatpush1.bf16.msra.mxu0 %v6784_v33  ;;  %5774 = vmatpush1.bf16.msra.mxu1 %v6787_v39 }
 0xccb   :  { %5744 = vmatprep.subr.bf16.mxu0 %v6792_v46  ;;  %5776 = vmatprep.subr.bf16.mxu1 %v6794_v55 }
 0xccc   :  { %3643 = vmatprep.mubr.f32.mxu0 %v8048_v12  ;;  %3714 = vmatprep.mubr.f32.mxu1 %v8048_v12 }
 0xcce   :  { %5746 = vmatpush1.bf16.msra.mxu0 %v6796_v56  ;;  %5778 = vmatpush1.bf16.msra.mxu1 %v6799_v62 }
 0xccf   :  { %5748 = vmatprep.subr.bf16.mxu0 %v8397_v8  ;;  %5780 = vmatprep.subr.bf16.mxu1 %v8398_v26 }
 0xcd2   :  { %5750 = vmatpush1.bf16.msra.mxu0 %v8399_v44  ;;  %5782 = vmatpush1.bf16.msra.mxu1 %v8400_v37 }
 0xcd3   :  { %5752 = vmatprep.subr.bf16.mxu0 %v8401_v22  ;;  %5784 = vmatprep.subr.bf16.mxu1 %v8402_v6 }
 0xcd6   :  { %5754 = vmatpush1.bf16.msra.mxu0 %v8403_v2  ;;  %5786 = vmatpush1.bf16.msra.mxu1 %v8404_v11  ;;  %v8415_v11 = vld [vmem:[#allocation33_spill] sm:$0xff]  ;;  %v8423_v2 = vld [vmem:[#allocation39_spill] sm:$0xff] }
 0xcd7   :  { %5756 = vmatprep.subr.bf16.mxu0 %v8405_v29  ;;  %5788 = vmatprep.subr.bf16.mxu1 %v8406_v21  ;;  %v8416_v29 = vld [vmem:[#allocation34_spill] sm:$0xff]  ;;  %v8417_v21 = vld [vmem:[#allocation35_spill] sm:$0xff] }
 0xcda   :  { %5758 = vmatpush1.bf16.msra.mxu0 %v8407_v61  ;;  %5790 = vmatpush1.bf16.msra.mxu1 %v8408_v19  ;;  %v8418_v61 = vld [vmem:[#allocation36_spill] sm:$0xff]  ;;  %v8419_v19 = vld [vmem:[#allocation37_spill] sm:$0xff] }
 0xcdb   :  { %5760 = vmatprep.subr.bf16.mxu0 %v8409_v30  ;;  %5792 = vmatprep.subr.bf16.mxu1 %v8410_v59  ;;  %v8420_v30 = vld [vmem:[#allocation38_spill] sm:$0xff]  ;;  %v8421_v59 = vld [vmem:[#allocation44_spill] sm:$0xff] }
 0xcde   :  { %5762 = vmatpush1.bf16.msra.mxu0 %v8411_v25  ;;  %5794 = vmatpush1.bf16.msra.mxu1 %v8412_v51  ;;  %v8422_v25 = vld [vmem:[#allocation45_spill] sm:$0xff] }
 0xcdf   :  { %5764 = vmatprep.subr.bf16.mxu0 %v8413_v15  ;;  %5796 = vmatprep.subr.bf16.mxu1 %v8414_v52 }
 0xce2   :  { %5766 = vmatpush1.bf16.msra.mxu0 %v8415_v11  ;;  %5798 = vmatpush1.bf16.msra.mxu1 %v8416_v29 }
 0xce3   :  { %5768 = vmatprep.subr.bf16.mxu0 %v8417_v21  ;;  %5800 = vmatprep.subr.bf16.mxu1 %v8418_v61 }
 0xce6   :  { %5770 = vmatpush1.bf16.msra.mxu0 %v8419_v19  ;;  %5802 = vmatpush1.bf16.msra.mxu1 %v8420_v30 }
 0xce7   :  { %5804 = vmatprep.subr.bf16.mxu0 %v8421_v59  ;;  %5836 = vmatprep.subr.bf16.mxu1 %v8422_v25 }
 0xd9c   :  { %v3484_v51 = vpop.f32.mrb[12].mxu0  ;;  %v3555_v15 = vpop.f32.mrb[12].mxu1 }
 0xd9d   :  { %v6071_v52 = vadd.f32 %v3484_v51, %v8423_v2  ;;  %v3486_v6 = vpop.f32.mrb[13].mxu0  ;;  %v3557_v11 = vpop.f32.mrb[13].mxu1  ;;  %v6087_v21 = vadd.f32 %v3555_v15, %v8111_v28  ;;  %v8424_v2 = vld [vmem:[#allocation42_spill] sm:$0xff] }
 0xd9e   :  { %v6072_v29 = vadd.f32 %v3486_v6, %v8110_v34  ;;  %v6088_v19 = vadd.f32 %v3557_v11, %v8175_v48 }
 0xd9f   :  { %6308 = vtanh.f32 %v6071_v52  ;;  %v8434_v52 = vld [vmem:[#allocation54_spill] sm:$0xff] }
 0xda0   :  { %6310 = vtanh.f32 %v6072_v29 }
 0xda1   :  { %6312 = vtanh.f32 %v6087_v21 }
 0xda2   :  { %6314 = vtanh.f32 %v6088_v19  ;;  %v8427_v19 = vld [vmem:[#allocation47_spill] sm:$0xff] }
 0xda9   :  { %v6309_v30 = vpop.eup %6308 }
 0xdaa   :  { %v3565_v61 = vmul.f32 0.5, %v6309_v30  ;;  %v6311_v59 = vpop.eup %6310  ;;  %v8433_v30 = vld [vmem:[#allocation53_spill] sm:$0xff] }
 0xdab   :  { %v3568_v25 = vmul.f32 0.5, %v6311_v59  ;;  %v6313_v37 = vpop.eup %6312  ;;  %v8435_v59 = vld [vmem:[#allocation55_spill] sm:$0xff] }
 0xdac   :  { %v3566_v22 = vadd.f32 0.5, %v3565_v61  ;;  %v6315_v6 = vpop.eup %6314  ;;  %v8426_v61 = vld [vmem:[#allocation46_spill] sm:$0xff] }
 0xdad   :  { %v3569_v44 = vadd.f32 0.5, %v3568_v25  ;;  %v3572_v29 = vmul.f32 0.5, %v6315_v6  ;;  %v8436_v25 = vld [vmem:[#allocation56_spill] sm:$0xff]  ;;  %v8438_v6 = vld [vmem:[#allocation58_spill] sm:$0xff] }
 0xdae   :  { %v3575_v51 = vmul.f32 %v6313_v37, %v3566_v22  ;;  %v8428_v37 = vld [vmem:[#allocation48_spill] sm:$0xff]  ;;  %v8431_v22 = vld [vmem:[#allocation51_spill] sm:$0xff] }
 0xdaf   :  { %v3574_v26 = vmul.f32 %v3569_v44, %v8424_v2  ;;  %v3573_v21 = vadd.f32 0.5, %v3572_v29  ;;  %v8430_v44 = vld [vmem:[#allocation50_spill] sm:$0xff]  ;;  %v8432_v2 = vld [vmem:[#allocation52_spill] sm:$0xff]  ;;  %v8439_v29 = vld [vmem:[#allocation59_spill] sm:$0xff] }
 0xdb1   :  { %v7733_v8 = vadd.f32 %v3575_v51, %v3574_v26  ;;  %v8429_v26 = vld [vmem:[#allocation49_spill] sm:$0xff] }
 0xdb2   :  { %v8437_v51 = vld [vmem:[#allocation57_spill] sm:$0xff] }
 0xdb3   :  { %8425 = vst [vmem:[#allocation40_spill] sm:$0xff] %v7733_v8  ;;  %6316 = vtanh.f32 %v7733_v8 }
 0xdbd   :  { %v6317_v15 = vpop.eup %6316 }
 0xdbe   :  { %v7736_v11 = vmul.f32 %v6317_v15, %v3573_v21  ;;  %v8440_v21 = vld [vmem:[#allocation60_spill] sm:$0xff]  ;;  %v8441_v15 = vld [vmem:[#allocation61_spill] sm:$0xff] }
 0xdc0   :  { %3644 = vmatmul.mubr.f32.vlgmr.msra.gmra.mrb[28].mxu0 %v7736_v11  ;;  %3715 = vmatmul.mubr.f32.vlgmr.msra.gmra.mrb[28].mxu1 %v7736_v11 }
 0xdc1   :  { %5806 = vmatpush1.bf16.msra.mxu0 %v8426_v61  ;;  %5838 = vmatpush1.bf16.msra.mxu1 %v8427_v19  ;;  %v8442_v61 = vld [vmem:[#allocation62_spill] sm:$0xff]  ;;  %v8443_v19 = vld [vmem:[#allocation63_spill] sm:$0xff] }
 0xdc2   :  { %5808 = vmatprep.subr.bf16.mxu0 %v8428_v37  ;;  %5840 = vmatprep.subr.bf16.mxu1 %v8429_v26  ;;  %v8444_v37 = vld [vmem:[#allocation64_spill] sm:$0xff]  ;;  %v8445_v26 = vld [vmem:[#allocation65_spill] sm:$0xff] }
 0xdc3   :  { %3800 = vmatprep.mubr.f32.mxu0 %v8048_v12  ;;  %3871 = vmatprep.mubr.f32.mxu1 %v8048_v12 }
 0xdc5   :  { %5810 = vmatpush1.bf16.msra.mxu0 %v8430_v44  ;;  %5842 = vmatpush1.bf16.msra.mxu1 %v8431_v22  ;;  %v8446_v44 = vld [vmem:[#allocation66_spill] sm:$0xff]  ;;  %v8447_v22 = vld [vmem:[#allocation67_spill] sm:$0xff] }
 0xdc6   :  { %5812 = vmatprep.subr.bf16.mxu0 %v8432_v2  ;;  %5844 = vmatprep.subr.bf16.mxu1 %v8433_v30  ;;  %v8448_v2 = vld [vmem:[#allocation68_spill] sm:$0xff]  ;;  %v8449_v30 = vld [vmem:[#allocation69_spill] sm:$0xff] }
 0xdc9   :  { %5814 = vmatpush1.bf16.msra.mxu0 %v8434_v52  ;;  %5846 = vmatpush1.bf16.msra.mxu1 %v8435_v59  ;;  %v8450_v52 = vld [vmem:[#allocation70_spill] sm:$0xff]  ;;  %v8451_v59 = vld [vmem:[#allocation71_spill] sm:$0xff] }
 0xdca   :  { %5816 = vmatprep.subr.bf16.mxu0 %v8436_v25  ;;  %5848 = vmatprep.subr.bf16.mxu1 %v8437_v51  ;;  %v8452_v25 = vld [vmem:[#allocation72_spill] sm:$0xff]  ;;  %v8453_v51 = vld [vmem:[#allocation73_spill] sm:$0xff] }
 0xdcd   :  { %5818 = vmatpush1.bf16.msra.mxu0 %v8438_v6  ;;  %5850 = vmatpush1.bf16.msra.mxu1 %v8439_v29  ;;  %v8454_v6 = vld [vmem:[#allocation74_spill] sm:$0xff]  ;;  %v8455_v29 = vld [vmem:[#allocation75_spill] sm:$0xff] }
 0xdce   :  { %5820 = vmatprep.subr.bf16.mxu0 %v8440_v21  ;;  %5852 = vmatprep.subr.bf16.mxu1 %v8441_v15  ;;  %v8456_v21 = vld [vmem:[#allocation13_spill] sm:$0xff]  ;;  %v8457_v15 = vld [vmem:[#allocation14_spill] sm:$0xff] }
 0xdd1   :  { %5822 = vmatpush1.bf16.msra.mxu0 %v8442_v61  ;;  %5854 = vmatpush1.bf16.msra.mxu1 %v8443_v19 }
 0xdd2   :  { %5824 = vmatprep.subr.bf16.mxu0 %v8444_v37  ;;  %5856 = vmatprep.subr.bf16.mxu1 %v8445_v26  ;;  %v8458_v37 = vld [vmem:[#allocation76_spill] sm:$0xff] }
 0xdd5   :  { %5826 = vmatpush1.bf16.msra.mxu0 %v8446_v44  ;;  %5858 = vmatpush1.bf16.msra.mxu1 %v8447_v22 }
 0xdd6   :  { %5828 = vmatprep.subr.bf16.mxu0 %v8448_v2  ;;  %5860 = vmatprep.subr.bf16.mxu1 %v8449_v30 }
 0xdd9   :  { %5830 = vmatpush1.bf16.msra.mxu0 %v8450_v52  ;;  %5862 = vmatpush1.bf16.msra.mxu1 %v8451_v59 }
 0xdda   :  { %5832 = vmatprep.subr.bf16.mxu0 %v8452_v25  ;;  %5864 = vmatprep.subr.bf16.mxu1 %v8453_v51 }
 0xddd   :  { %5834 = vmatpush1.bf16.msra.mxu0 %v8454_v6  ;;  %5866 = vmatpush1.bf16.msra.mxu1 %v8455_v29 }
 0xdde   :  { %5868 = vmatprep.subr.bf16.mxu0 %v8456_v21  ;;  %5900 = vmatprep.subr.bf16.mxu1 %v8457_v15 }
 0xe93   :  { %v3645_v61 = vpop.f32.mrb[28].mxu0  ;;  %v3716_v19 = vpop.f32.mrb[28].mxu1 }
 0xe94   :  { %v6111_v26 = vadd.f32 %v3645_v61, %v8458_v37  ;;  %v3647_v44 = vpop.f32.mrb[29].mxu0  ;;  %v3718_v22 = vpop.f32.mrb[29].mxu1  ;;  %v6113_v30 = vadd.f32 %v3716_v19, %v7025_v3 }
 0xe95   :  { %v6112_v2 = vadd.f32 %v3647_v44, %v8148_v41  ;;  %v6114_v52 = vadd.f32 %v3718_v22, %v7032_v0 }
 0xe96   :  { %6318 = vtanh.f32 %v6111_v26 }
 0xe97   :  { %6320 = vtanh.f32 %v6112_v2 }
 0xe98   :  { %6322 = vtanh.f32 %v6113_v30 }
 0xe99   :  { %6324 = vtanh.f32 %v6114_v52 }
 0xea0   :  { %v6319_v59 = vpop.eup %6318 }
 0xea1   :  { %v3722_v25 = vmul.f32 0.5, %v6319_v59  ;;  %v6321_v51 = vpop.eup %6320  ;;  %v8484_v59 = vld [vmem:[#allocation40_spill] sm:$0xff] }
 0xea2   :  { %v3725_v29 = vmul.f32 0.5, %v6321_v51  ;;  %v6323_v21 = vpop.eup %6322 }
 0xea3   :  { %v3723_v6 = vadd.f32 0.5, %v3722_v25  ;;  %v6325_v19 = vpop.eup %6324 }
 0xea4   :  { %v3726_v15 = vadd.f32 0.5, %v3725_v29  ;;  %v3729_v26 = vmul.f32 0.5, %v6325_v19  ;;  %v4201_v29 = vld [vmem:[#allocation8 + $0x8] sm:$0xff] }
 0xea5   :  { %v3732_v61 = vmul.f32 %v6323_v21, %v3723_v6  ;;  %v4218_v21 = vld [vmem:[#allocation8 + $0x90] sm:$0xff] }
 0xea6   :  { %v3731_v37 = vmul.f32 %v3726_v15, %v7655_v43  ;;  %v3730_v44 = vadd.f32 0.5, %v3729_v26  ;;  %v4219_v15 = vld [vmem:[#allocation8 + $0x98] sm:$0xff] }
 0xea8   :  { %v7779_v8 = vadd.f32 %v3732_v61, %v3731_v37 }
 0xeaa   :  { %6326 = vtanh.f32 %v7779_v8 }
 0xeb4   :  { %v6327_v2 = vpop.eup %6326 }
 0xeb5   :  { %v3735_v22 = vmul.f32 %v6327_v2, %v3730_v44  ;;  %v5999_v44 = vpack.c.bf16 %v4219_v15, %v4218_v21  ;;  %v4202_v2 = vld [vmem:[#allocation8 + $0x10] sm:$0xff]  ;;  %v4236_v15 = vld [vmem:[#allocation8 + $0x120] sm:$0xff] }
 0xeb7   :  { %3801 = vmatmul.mubr.f32.vlgmr.msra.gmra.mrb[30].mxu0 %v3735_v22  ;;  %3872 = vmatmul.mubr.f32.vlgmr.msra.gmra.mrb[30].mxu1 %v3735_v22  ;;  %v4203_v22 = vld [vmem:[#allocation8 + $0x18] sm:$0xff] }
 0xeb8   :  { %5870 = vmatpush1.bf16.msra.mxu0 %v6631_v35  ;;  %5902 = vmatpush1.bf16.msra.mxu1 %v6634_v38  ;;  %v8459_v35 = vld [vmem:[#allocation15_spill] sm:$0xff]  ;;  %v8460_v38 = vld [vmem:[#allocation16_spill] sm:$0xff] }
 0xeb9   :  { %5872 = vmatprep.subr.bf16.mxu0 %v6637_v42  ;;  %5904 = vmatprep.subr.bf16.mxu1 %v6643_v47  ;;  %v8461_v42 = vld [vmem:[#allocation17_spill] sm:$0xff]  ;;  %v8462_v47 = vld [vmem:[#allocation18_spill] sm:$0xff] }
 0xeba   :  { %3946 = vmatprep.mubr.f32.mxu0 %v8048_v12  ;;  %4017 = vmatprep.mubr.f32.mxu1 %v8048_v12 }
 0xebc   :  { %5874 = vmatpush1.bf16.msra.mxu0 %v6647_v50  ;;  %5906 = vmatpush1.bf16.msra.mxu1 %v6651_v54  ;;  %v8463_v50 = vld [vmem:[#allocation19_spill] sm:$0xff]  ;;  %v8464_v54 = vld [vmem:[#allocation20_spill] sm:$0xff] }
 0xebd   :  { %5876 = vmatprep.subr.bf16.mxu0 %v6655_v57  ;;  %5908 = vmatprep.subr.bf16.mxu1 %v6659_v60  ;;  %v8465_v57 = vld [vmem:[#allocation21_spill] sm:$0xff]  ;;  %v8466_v60 = vld [vmem:[#allocation22_spill] sm:$0xff] }
 0xec0   :  { %5878 = vmatpush1.bf16.msra.mxu0 %v6666_v1  ;;  %5910 = vmatpush1.bf16.msra.mxu1 %v6670_v4  ;;  %v8467_v1 = vld [vmem:[#allocation23_spill] sm:$0xff]  ;;  %v8468_v4 = vld [vmem:[#allocation24_spill] sm:$0xff] }
 0xec1   :  { %5880 = vmatprep.subr.bf16.mxu0 %v6674_v7  ;;  %5912 = vmatprep.subr.bf16.mxu1 %v6678_v10  ;;  %v8469_v7 = vld [vmem:[#allocation25_spill] sm:$0xff]  ;;  %v8470_v10 = vld [vmem:[#allocation26_spill] sm:$0xff] }
 0xec4   :  { %5882 = vmatpush1.bf16.msra.mxu0 %v6685_v14  ;;  %5914 = vmatpush1.bf16.msra.mxu1 %v6689_v17  ;;  %v8471_v14 = vld [vmem:[#allocation27_spill] sm:$0xff]  ;;  %v8472_v17 = vld [vmem:[#allocation28_spill] sm:$0xff] }
 0xec5   :  { %5884 = vmatprep.subr.bf16.mxu0 %v6693_v20  ;;  %5916 = vmatprep.subr.bf16.mxu1 %v6697_v23  ;;  %v8473_v20 = vld [vmem:[#allocation29_spill] sm:$0xff]  ;;  %v8474_v23 = vld [vmem:[#allocation30_spill] sm:$0xff] }
 0xec8   :  { %5886 = vmatpush1.bf16.msra.mxu0 %v6704_v27  ;;  %5918 = vmatpush1.bf16.msra.mxu1 %v6708_v32  ;;  %v8475_v27 = vld [vmem:[#allocation31_spill] sm:$0xff]  ;;  %v8476_v32 = vld [vmem:[#allocation32_spill] sm:$0xff] }
 0xec9   :  { %5888 = vmatprep.subr.bf16.mxu0 %v6712_v36  ;;  %5920 = vmatprep.subr.bf16.mxu1 %v6716_v40  ;;  %v8477_v36 = vld [vmem:[#allocation33_spill] sm:$0xff]  ;;  %v8478_v40 = vld [vmem:[#allocation34_spill] sm:$0xff] }
 0xecc   :  { %5890 = vmatpush1.bf16.msra.mxu0 %v6723_v45  ;;  %5922 = vmatpush1.bf16.msra.mxu1 %v6727_v49  ;;  %v8479_v45 = vld [vmem:[#allocation35_spill] sm:$0xff]  ;;  %v8480_v49 = vld [vmem:[#allocation36_spill] sm:$0xff] }
 0xecd   :  { %5892 = vmatprep.subr.bf16.mxu0 %v6731_v53  ;;  %5924 = vmatprep.subr.bf16.mxu1 %v6735_v58  ;;  %v8481_v53 = vld [vmem:[#allocation37_spill] sm:$0xff]  ;;  %v8482_v58 = vld [vmem:[#allocation38_spill] sm:$0xff] }
 0xed0   :  { %5894 = vmatpush1.bf16.msra.mxu0 %v6742_v63  ;;  %5926 = vmatpush1.bf16.msra.mxu1 %v6746_v5  ;;  %v4216_v63 = vld [vmem:[#allocation8 + $0x80] sm:$0xff]  ;;  %v4217_v5 = vld [vmem:[#allocation8 + $0x88] sm:$0xff] }
 0xed1   :  { %5896 = vmatprep.subr.bf16.mxu0 %v6750_v9  ;;  %5928 = vmatprep.subr.bf16.mxu1 %v6754_v13  ;;  %v5995_v9 = vpack.c.bf16 %v4217_v5, %v4216_v63  ;;  %v4228_v63 = vld [vmem:[#allocation8 + $0xe0] sm:$0xff]  ;;  %v4229_v5 = vld [vmem:[#allocation8 + $0xe8] sm:$0xff] }
 0xed4   :  { %5898 = vmatpush1.bf16.msra.mxu0 %v6761_v16  ;;  %5930 = vmatpush1.bf16.msra.mxu1 %v6765_v18  ;;  %v8483_v18 = vld [vmem:[#allocation39_spill] sm:$0xff] }
 0xed5   :  { %5932 = vmatprep.subr.bf16.mxu0 %v6780_v24  ;;  %5964 = vmatprep.subr.bf16.mxu1 %v6782_v31 }
 0xed7   :  { %3947 = vmatmul.mubr.f32.vlgmr.msra.gmra.mrb[14].mxu0 %v7736_v11  ;;  %4018 = vmatmul.mubr.f32.vlgmr.msra.gmra.mrb[14].mxu1 %v7736_v11 }
 0xed8   :  { %5934 = vmatpush1.bf16.msra.mxu0 %v6784_v33  ;;  %5966 = vmatpush1.bf16.msra.mxu1 %v6787_v39 }
 0xed9   :  { %5936 = vmatprep.subr.bf16.mxu0 %v6792_v46  ;;  %5968 = vmatprep.subr.bf16.mxu1 %v6794_v55 }
 0xeda   :  { %4107 = vmatprep.mubr.f32.mxu0 %v8048_v12  ;;  %4178 = vmatprep.mubr.f32.mxu1 %v8048_v12 }
 0xedc   :  { %5938 = vmatpush1.bf16.msra.mxu0 %v6796_v56  ;;  %5970 = vmatpush1.bf16.msra.mxu1 %v6799_v62 }
 0xedd   :  { %5940 = vmatprep.subr.bf16.mxu0 %v8459_v35  ;;  %5972 = vmatprep.subr.bf16.mxu1 %v8460_v38  ;;  %v4220_v35 = vld [vmem:[#allocation8 + $0xa0] sm:$0xff]  ;;  %v4221_v38 = vld [vmem:[#allocation8 + $0xa8] sm:$0xff] }
 0xee0   :  { %5942 = vmatpush1.bf16.msra.mxu0 %v8461_v42  ;;  %5974 = vmatpush1.bf16.msra.mxu1 %v8462_v47  ;;  %v6001_v42 = vpack.c.bf16 %v4203_v22, %v4202_v2  ;;  %v6003_v47 = vpack.c.bf16 %v4221_v38, %v4220_v35  ;;  %v4238_v2 = vld [vmem:[#allocation8 + $0x130] sm:$0xff]  ;;  %v4239_v22 = vld [vmem:[#allocation8 + $0x138] sm:$0xff]  ;;  %v4256_v38 = vld [vmem:[#allocation8 + $0x1c0] sm:$0xff] }
 0xee1   :  { %5944 = vmatprep.subr.bf16.mxu0 %v8463_v50  ;;  %5976 = vmatprep.subr.bf16.mxu1 %v8464_v54  ;;  %v4204_v50 = vld [vmem:[#allocation8 + $0x20] sm:$0xff]  ;;  %v4205_v54 = vld [vmem:[#allocation8 + $0x28] sm:$0xff]  ;;  %v6041_v35 = vpack.c.bf16 %v4239_v22, %v4238_v2 }
 0xee4   :  { %5946 = vmatpush1.bf16.msra.mxu0 %v8465_v57  ;;  %5978 = vmatpush1.bf16.msra.mxu1 %v8466_v60  ;;  %v4222_v57 = vld [vmem:[#allocation8 + $0xb0] sm:$0xff]  ;;  %v4223_v60 = vld [vmem:[#allocation8 + $0xb8] sm:$0xff] }
 0xee5   :  { %5948 = vmatprep.subr.bf16.mxu0 %v8467_v1  ;;  %5980 = vmatprep.subr.bf16.mxu1 %v8468_v4  ;;  %v6005_v1 = vpack.c.bf16 %v4205_v54, %v4204_v50  ;;  %v6007_v4 = vpack.c.bf16 %v4223_v60, %v4222_v57  ;;  %v4241_v54 = vld [vmem:[#allocation8 + $0x148] sm:$0xff]  ;;  %v4258_v60 = vld [vmem:[#allocation8 + $0x1d0] sm:$0xff] }
 0xee8   :  { %5950 = vmatpush1.bf16.msra.mxu0 %v8469_v7  ;;  %5982 = vmatpush1.bf16.msra.mxu1 %v8470_v10  ;;  %v4206_v7 = vld [vmem:[#allocation8 + $0x30] sm:$0xff]  ;;  %v4207_v10 = vld [vmem:[#allocation8 + $0x38] sm:$0xff] }
 0xee9   :  { %5952 = vmatprep.subr.bf16.mxu0 %v8471_v14  ;;  %5984 = vmatprep.subr.bf16.mxu1 %v8472_v17  ;;  %v4224_v14 = vld [vmem:[#allocation8 + $0xc0] sm:$0xff]  ;;  %v4225_v17 = vld [vmem:[#allocation8 + $0xc8] sm:$0xff] }
 0xeec   :  { %5954 = vmatpush1.bf16.msra.mxu0 %v8473_v20  ;;  %5986 = vmatpush1.bf16.msra.mxu1 %v8474_v23  ;;  %v6009_v20 = vpack.c.bf16 %v4207_v10, %v4206_v7  ;;  %v6011_v23 = vpack.c.bf16 %v4225_v17, %v4224_v14  ;;  %v4242_v7 = vld [vmem:[#allocation8 + $0x150] sm:$0xff]  ;;  %v4243_v10 = vld [vmem:[#allocation8 + $0x158] sm:$0xff]  ;;  %v4260_v14 = vld [vmem:[#allocation8 + $0x1e0] sm:$0xff] }
 0xeed   :  { %5956 = vmatprep.subr.bf16.mxu0 %v8475_v27  ;;  %5988 = vmatprep.subr.bf16.mxu1 %v8476_v32  ;;  %v4208_v27 = vld [vmem:[#allocation8 + $0x40] sm:$0xff]  ;;  %v4209_v32 = vld [vmem:[#allocation8 + $0x48] sm:$0xff]  ;;  %v6049_v17 = vpack.c.bf16 %v4243_v10, %v4242_v7 }
 0xef0   :  { %5958 = vmatpush1.bf16.msra.mxu0 %v8477_v36  ;;  %5990 = vmatpush1.bf16.msra.mxu1 %v8478_v40  ;;  %v4226_v36 = vld [vmem:[#allocation8 + $0xd0] sm:$0xff]  ;;  %v4227_v40 = vld [vmem:[#allocation8 + $0xd8] sm:$0xff] }
 0xef1   :  { %5960 = vmatprep.subr.bf16.mxu0 %v8479_v45  ;;  %5992 = vmatprep.subr.bf16.mxu1 %v8480_v49  ;;  %v6013_v45 = vpack.c.bf16 %v4209_v32, %v4208_v27  ;;  %v6015_v49 = vpack.c.bf16 %v4227_v40, %v4226_v36  ;;  %v4245_v27 = vld [vmem:[#allocation8 + $0x168] sm:$0xff]  ;;  %v4262_v40 = vld [vmem:[#allocation8 + $0x1f0] sm:$0xff] }
 0xef4   :  { %5962 = vmatpush1.bf16.msra.mxu0 %v8481_v53  ;;  %5994 = vmatpush1.bf16.msra.mxu1 %v8482_v58  ;;  %v4210_v53 = vld [vmem:[#allocation8 + $0x50] sm:$0xff]  ;;  %v4211_v58 = vld [vmem:[#allocation8 + $0x58] sm:$0xff] }
 0xef5   :  { %5996 = vmatprep.subr.bf16.mxu0 %v5995_v9  ;;  %v6017_v9 = vpack.c.bf16 %v4211_v58, %v4210_v53  ;;  %v4246_v53 = vld [vmem:[#allocation8 + $0x170] sm:$0xff]  ;;  %v4247_v58 = vld [vmem:[#allocation8 + $0x178] sm:$0xff] }
 0xfaa   :  { %v3948_v13 = vpop.f32.mrb[14].mxu0  ;;  %v4019_v16 = vpop.f32.mrb[14].mxu1 }
 0xfab   :  { %v6073_v24 = vadd.f32 %v3948_v13, %v8483_v18  ;;  %v3950_v31 = vpop.f32.mrb[15].mxu0  ;;  %v4021_v33 = vpop.f32.mrb[15].mxu1  ;;  %v6089_v46 = vadd.f32 %v4019_v16, %v8111_v28  ;;  %v4200_v28 = vld [vmem:[#allocation8] sm:$0xff]  ;;  %v6019_v13 = vpack.c.bf16 %v4229_v5, %v4228_v63  ;;  %v4213_v18 = vld [vmem:[#allocation8 + $0x68] sm:$0xff]  ;;  %v6057_v63 = vpack.c.bf16 %v4247_v58, %v4246_v53 }
 0xfac   :  { %v6074_v39 = vadd.f32 %v3950_v31, %v8110_v34  ;;  %v6090_v55 = vadd.f32 %v4021_v33, %v8175_v48  ;;  %v5997_v19 = vpack.c.bf16 %v4201_v29, %v4200_v28  ;;  %v4212_v16 = vld [vmem:[#allocation8 + $0x60] sm:$0xff]  ;;  %v4231_v31 = vld [vmem:[#allocation8 + $0xf8] sm:$0xff]  ;;  %v4253_v29 = vld [vmem:[#allocation8 + $0x1a8] sm:$0xff] }
 0xfad   :  { %6328 = vtanh.f32 %v6073_v24  ;;  %v4230_v24 = vld [vmem:[#allocation8 + $0xf0] sm:$0xff]  ;;  %v6021_v33 = vpack.c.bf16 %v4213_v18, %v4212_v16  ;;  %v4252_v28 = vld [vmem:[#allocation8 + $0x1a0] sm:$0xff] }
 0xfae   :  { %6330 = vtanh.f32 %v6074_v39  ;;  %v6023_v39 = vpack.c.bf16 %v4231_v31, %v4230_v24  ;;  %v6035_v21 = vpack.c.bf16 %v4253_v29, %v4252_v28  ;;  %v4436_v28 = vld [vmem:[%s7874_s8] ss:$0 sm:$0xff] }
 0xfaf   :  { %6332 = vtanh.f32 %v6089_v46  ;;  %v4214_v46 = vld [vmem:[#allocation8 + $0x70] sm:$0xff] }
 0xfb0   :  { %6334 = vtanh.f32 %v6090_v55  ;;  %v4215_v55 = vld [vmem:[#allocation8 + $0x78] sm:$0xff] }
 0xfb7   :  { %v6329_v56 = vpop.eup %6328 }
 0xfb8   :  { %v4029_v62 = vmul.f32 0.5, %v6329_v56  ;;  %v6331_v12 = vpop.eup %6330  ;;  %v6025_v56 = vpack.c.bf16 %v4215_v55, %v4214_v46 }
 0xfb9   :  { %v4032_v11 = vmul.f32 0.5, %v6331_v12  ;;  %v6333_v37 = vpop.eup %6332  ;;  %v4249_v12 = vld [vmem:[#allocation8 + $0x188] sm:$0xff] }
 0xfba   :  { %v4030_v43 = vadd.f32 0.5, %v4029_v62  ;;  %v6335_v34 = vpop.eup %6334  ;;  %v4248_v62 = vld [vmem:[#allocation8 + $0x180] sm:$0xff] }
 0xfbb   :  { %v4033_v30 = vadd.f32 0.5, %v4032_v11  ;;  %v4036_v6 = vmul.f32 0.5, %v6335_v34  ;;  %v4232_v11 = vld [vmem:[#allocation8 + $0x100] sm:$0xff]  ;;  %v4235_v34 = vld [vmem:[#allocation8 + $0x118] sm:$0xff] }
 0xfbc   :  { %v4039_v52 = vmul.f32 %v6333_v37, %v4030_v43  ;;  %v6027_v43 = vpack.c.bf16 %v4249_v12, %v4248_v62  ;;  %v4233_v37 = vld [vmem:[#allocation8 + $0x108] sm:$0xff] }
 0xfbd   :  { %v4038_v25 = vmul.f32 %v4033_v30, %v8484_v59  ;;  %v4037_v48 = vadd.f32 0.5, %v4036_v6  ;;  %v6029_v30 = vpack.c.bf16 %v4233_v37, %v4232_v11  ;;  %v4251_v59 = vld [vmem:[#allocation8 + $0x198] sm:$0xff] }
 0xfbe   :  { %6028 = vmatprep.subr.bf16.mxu1 %v6027_v43 }
 0xfbf   :  { %v4040_v51 = vadd.f32 %v4039_v52, %v4038_v25  ;;  %v4250_v52 = vld [vmem:[#allocation8 + $0x190] sm:$0xff] }
 0xfc0   :  { %v6031_v25 = vpack.c.bf16 %v4251_v59, %v4250_v52 }
 0xfc1   :  { %6336 = vtanh.f32 %v4040_v51 }
 0xfcb   :  { %v6337_v61 = vpop.eup %6336 }
 0xfcc   :  { %v4042_v26 = vmul.f32 %v6337_v61, %v4037_v48  ;;  %v4237_v48 = vld [vmem:[#allocation8 + $0x128] sm:$0xff] }
 0xfcd   :  { %v6037_v61 = vpack.c.bf16 %v4237_v48, %v4236_v15 }
 0xfce   :  { %4108 = vmatmul.mubr.f32.vlgmr.msra.gmra.mrb[30].mxu0 %v4042_v26  ;;  %4179 = vmatmul.mubr.f32.vlgmr.msra.gmra.mrb[30].mxu1 %v4042_v26 }
 0xfcf   :  { %5998 = vmatpush3.bf16.msra.mxu0 %v5997_v19  ;;  %4335 = vmatprep.mubr.f32.mxu0 %v4040_v51  ;;  %v4234_v51 = vld [vmem:[#allocation8 + $0x110] sm:$0xff] }
 0xfd0   :  { %6000 = vmatprep.subr.bf16.mxu0 %v5999_v44  ;;  %6030 = vmatpush3.bf16.msra.mxu1 %v6029_v30  ;;  %v6033_v6 = vpack.c.bf16 %v4235_v34, %v4234_v51  ;;  %v4254_v19 = vld [vmem:[#allocation8 + $0x1b0] sm:$0xff] }
 0xfd1   :  { %6032 = vmatprep.subr.bf16.mxu1 %v6031_v25 }
 0xfd3   :  { %6002 = vmatpush3.bf16.msra.mxu0 %v6001_v42  ;;  %v4257_v42 = vld [vmem:[#allocation8 + $0x1c8] sm:$0xff] }
 0xfd4   :  { %6004 = vmatprep.subr.bf16.mxu0 %v6003_v47  ;;  %6034 = vmatpush3.bf16.msra.mxu1 %v6033_v6  ;;  %v4240_v47 = vld [vmem:[#allocation8 + $0x140] sm:$0xff]  ;;  %v6043_v50 = vpack.c.bf16 %v4257_v42, %v4256_v38 }
 0xfd5   :  { %6036 = vmatprep.subr.bf16.mxu1 %v6035_v21  ;;  %v6045_v57 = vpack.c.bf16 %v4241_v54, %v4240_v47 }
 0xfd7   :  { %6006 = vmatpush3.bf16.msra.mxu0 %v6005_v1  ;;  %v4259_v1 = vld [vmem:[#allocation8 + $0x1d8] sm:$0xff] }
 0xfd8   :  { %6008 = vmatprep.subr.bf16.mxu0 %v6007_v4  ;;  %6038 = vmatpush3.bf16.msra.mxu1 %v6037_v61  ;;  %v6047_v4 = vpack.c.bf16 %v4259_v1, %v4258_v60 }
 0xfdb   :  { %6010 = vmatpush3.bf16.msra.mxu0 %v6009_v20  ;;  %v4261_v20 = vld [vmem:[#allocation8 + $0x1e8] sm:$0xff] }
 0xfdc   :  { %6012 = vmatprep.subr.bf16.mxu0 %v6011_v23  ;;  %v4244_v23 = vld [vmem:[#allocation8 + $0x160] sm:$0xff]  ;;  %v6051_v32 = vpack.c.bf16 %v4261_v20, %v4260_v14 }
 0xfdd   :  { %v6053_v36 = vpack.c.bf16 %v4245_v27, %v4244_v23 }
 0xfdf   :  { %6014 = vmatpush3.bf16.msra.mxu0 %v6013_v45  ;;  %v4263_v45 = vld [vmem:[#allocation8 + $0x1f8] sm:$0xff] }
 0xfe0   :  { %6016 = vmatprep.subr.bf16.mxu0 %v6015_v49  ;;  %v6055_v49 = vpack.c.bf16 %v4263_v45, %v4262_v40 }
 0xfe3   :  { %6018 = vmatpush3.bf16.msra.mxu0 %v6017_v9 }
 0xfe4   :  { %6020 = vmatprep.subr.bf16.mxu0 %v6019_v13  ;;  %v8485_v13 = vld [vmem:[#allocation76_spill] sm:$0xff] }
 0xfe7   :  { %6022 = vmatpush3.bf16.msra.mxu0 %v6021_v33 }
 0xfe8   :  { %6024 = vmatprep.subr.bf16.mxu0 %v6023_v39 }
 0xfeb   :  { %6026 = vmatpush3.bf16.msra.mxu0 %v6025_v56 }
 0xfee   :  { %4336 = vmatmul.mubr.f32.vlgmr.msra.gmra.mrb[32].mxu0 %v4042_v26  ;;  %v4255_v26 = vld [vmem:[#allocation8 + $0x1b8] sm:$0xff] }
 0xfef   :  { %v6039_v44 = vpack.c.bf16 %v4255_v26, %v4254_v19 }
 0xff1   :  { %6040 = vmatprep.subr.bf16.mxu1 %v6039_v44 }
 0xff2   :  { %6042 = vmatpush3.bf16.msra.mxu1 %v6041_v35 }
 0xff3   :  { %6044 = vmatprep.subr.bf16.mxu1 %v6043_v50 }
 0xff6   :  { %6046 = vmatpush3.bf16.msra.mxu1 %v6045_v57 }
 0xff7   :  { %6048 = vmatprep.subr.bf16.mxu1 %v6047_v4 }
 0xffa   :  { %6050 = vmatpush3.bf16.msra.mxu1 %v6049_v17 }
 0xffb   :  { %6052 = vmatprep.subr.bf16.mxu1 %v6051_v32 }
 0xffe   :  { %6054 = vmatpush3.bf16.msra.mxu1 %v6053_v36 }
 0xfff   :  { %6056 = vmatprep.subr.bf16.mxu1 %v6055_v49 }
0x1002   :  { %6058 = vmatpush3.bf16.msra.mxu1 %v6057_v63 }
0x10a1   :  { %v4109_v5 = vpop.f32.mrb[30].mxu0  ;;  %v4180_v9 = vpop.f32.mrb[30].mxu1 }
0x10a2   :  { %v6115_v16 = vadd.f32 %v4109_v5, %v8485_v13  ;;  %v4111_v18 = vpop.f32.mrb[31].mxu0  ;;  %v4182_v24 = vpop.f32.mrb[31].mxu1  ;;  %v6117_v33 = vadd.f32 %v4180_v9, %v7025_v3 }
0x10a3   :  { %v6116_v31 = vadd.f32 %v4111_v18, %v8148_v41  ;;  %v6118_v39 = vadd.f32 %v4182_v24, %v7032_v0 }
0x10a4   :  { %6338 = vtanh.f32 %v6115_v16 }
0x10a5   :  { %6340 = vtanh.f32 %v6116_v31 }
0x10a6   :  { %6342 = vtanh.f32 %v6117_v33 }
0x10a7   :  { %6344 = vtanh.f32 %v6118_v39 }
0x10ae   :  { %v6339_v46 = vpop.eup %6338 }
0x10af   :  { %v4186_v55 = vmul.f32 0.5, %v6339_v46  ;;  %v6341_v56 = vpop.eup %6340 }
0x10b0   :  { %v4189_v12 = vmul.f32 0.5, %v6341_v56  ;;  %v6343_v43 = vpop.eup %6342 }
0x10b1   :  { %v4187_v62 = vadd.f32 0.5, %v4186_v55  ;;  %v6345_v41 = vpop.eup %6344 }
0x10b2   :  { %v4190_v11 = vadd.f32 0.5, %v4189_v12  ;;  %v4193_v3 = vmul.f32 0.5, %v6345_v41 }
0x10b3   :  { %v4196_v37 = vmul.f32 %v6343_v43, %v4187_v62 }
0x10b4   :  { %v4195_v30 = vmul.f32 %v4190_v11, %v7779_v8  ;;  %v4194_v25 = vadd.f32 0.5, %v4193_v3 }
0x10b6   :  { %v4197_v52 = vadd.f32 %v4196_v37, %v4195_v30 }
0x10b8   :  { %6346 = vtanh.f32 %v4197_v52  ;;  %4405 = vmatprep.mubr.f32.mxu1 %v4197_v52 }
0x10c1   :  { %v4469_v59 = vpop.f32.mrb[32].mxu0 }
0x10c2   :  { %v4470_v51 = vpop.f32.mrb[33].mxu0  ;;  %v6347_v0 = vpop.eup %6346 }
0x10c3   :  { %v4471_v34 = vadd.f32 %v4470_v51, %v4469_v59  ;;  %v4199_v6 = vmul.f32 %v6347_v0, %v4194_v25 }
0x10c5   :  { %4406 = vmatmul.mubr.f32.vlgmr.msra.gmra.mrb[32].mxu1 %v4199_v6  ;;  %v4338_v15 = vadd.f32 %v4471_v34, %v4436_v28 }
0x1198   :  { %v4504_v29 = vpop.f32.mrb[32].mxu1 }
0x1199   :  { %v4505_v21 = vpop.f32.mrb[33].mxu1 }
0x119a   :  { %v4506_v8 = vadd.f32 %v4505_v21, %v4504_v29 }
0x119c   :  { %v4408_v48 = vadd.f32 %v4506_v8, %v4338_v15 }
0x119e   :  { %6348 = vtanh.f32 %v4408_v48 }
0x11a8   :  { %v6349_v61 = vpop.eup %6348 }
0x11a9   :  { %4412 = vst [vmem:[%s7875_s9] sm:$0xff] %v6349_v61 }
0x11aa   :  { %4417 = vsyncpa [#allocation4], 1 }
0x11ab   :  { %4418 = vsyncpa [#allocation6], 1 }
0x11ac   :  { %4419 = vsyncpa [#allocation9], 1 }

</bundles_post_ra>
